<compile_context>
chip_gen: v7x
topology: tpu7x:2x2x1
jax: 0.10.0
libtpu: 0.0.40
codegen_flags: <defaults>
</compile_context>

<pallas_src>
import jax
import jax.numpy as jnp
from jax.experimental import pallas as pl
from jax.experimental.pallas import tpu as pltpu


def _bn_relu(a, g_ref, b_ref, inv_n, eps=1e-5):
    """Training-mode BatchNorm (biased variance, two-pass) + ReLU on (N, C)."""
    mean = jnp.sum(a, axis=0, keepdims=True) * inv_n           # (1, C)
    d = a - mean
    var = jnp.sum(d * d, axis=0, keepdims=True) * inv_n        # biased, like PyTorch BN
    scale = g_ref[...] * jax.lax.rsqrt(var + eps)              # rsqrt rides the EUP slot
    return jnp.maximum(d * scale + b_ref[...], 0.0)


def down_kernel(x_ref, w1_ref, g1_ref, b1_ref, w2_ref, g2_ref, b2_ref,
                o_ref, pad_ref, patch_ref):
    B, H, W, Cin = x_ref.shape
    Hp = H // 4
    Cout = o_ref.shape[-1]
    Cmax = pad_ref.shape[-1]
    N = B * Hp * W
    inv_n = 1.0 / float(N)

    # ---------------- MaxPool2d((4,1)) along H: fully vectorized -------------
    xr = x_ref[...].reshape(B, Hp, 4, W, Cin)
    pooled = jnp.maximum(jnp.maximum(xr[:, :, 0], xr[:, :, 1]),
                         jnp.maximum(xr[:, :, 2], xr[:, :, 3]))   # (B, Hp, W, Cin)

    # Zero only the halo of the shared padded scratch (interior is overwritten
    # by each conv before it is read).
    zrow = jnp.zeros((B, 1, W + 2, Cmax), jnp.float32)
    zcol = jnp.zeros((B, Hp + 2, 1, Cmax), jnp.float32)
    pad_ref[:, 0:1, :, :] = zrow
    pad_ref[:, Hp + 1:Hp + 2, :, :] = zrow
    pad_ref[:, :, 0:1, :] = zcol
    pad_ref[:, :, W + 1:W + 2, :] = zcol

    def conv3x3_bn_relu(inp, cin, w_ref, g_ref, b_ref):
        # inp: (B, Hp, W, cin) value; returns (N, Cout) value.
        pad_ref[:, 1:Hp + 1, 1:W + 1, 0:cin] = inp
        # im2col: gather the 9 taps into (B, Hp, W, 9*cin), then one MXU matmul.
        # TODO(synk): on v6e/v7x cast patches/weights to bf16 here (keep the
        # f32 accumulation) for ~2x MXU throughput; kept f32 for exactness.
        for dy in range(3):
            for dx in range(3):
                t = dy * 3 + dx
                patch_ref[:, :, :, t * cin:(t + 1) * cin] = (
                    pad_ref[:, dy:dy + Hp, dx:dx + W, 0:cin])
        p = patch_ref[:, :, :, 0:9 * cin].reshape(N, 9 * cin)
        a = jnp.dot(p, w_ref[...], preferred_element_type=jnp.float32)   # (N, Cout)
        return _bn_relu(a, g_ref, b_ref, inv_n)

    y1 = conv3x3_bn_relu(pooled, Cin, w1_ref, g1_ref, b1_ref)            # (N, Cout)
    y2 = conv3x3_bn_relu(y1.reshape(B, Hp, W, Cout), Cout,
                         w2_ref, g2_ref, b2_ref)                         # (N, Cout)

    # Single bulk store of the whole output tile.
    o_ref[...] = y2.reshape(B, Hp, W, Cout)


def down_pallas(x_nchw, w1_oihw, g1, b1, w2_oihw, g2, b2):
    """x_nchw: (B, Cin, H, W) f32; conv weights in PyTorch OIHW layout."""
    B, Cin, H, W = x_nchw.shape
    Cout = w1_oihw.shape[0]
    Hp = H // 4                              # MaxPool2d floors the remainder
    Cmax = max(Cin, Cout)

    x_nhwc = jnp.transpose(x_nchw[:, :, :4 * Hp, :], (0, 2, 3, 1))       # NCHW -> NHWC
    # OIHW -> HWIO -> (9*Cin, Cout), row order (dy, dx, ci) matching im2col lanes.
    w1 = jnp.transpose(w1_oihw, (2, 3, 1, 0)).reshape(9 * Cin, Cout)
    w2 = jnp.transpose(w2_oihw, (2, 3, 1, 0)).reshape(9 * Cout, Cout)
    g1r, b1r = g1.reshape(1, Cout), b1.reshape(1, Cout)
    g2r, b2r = g2.reshape(1, Cout), b2.reshape(1, Cout)

    out_nhwc = pl.pallas_call(
        down_kernel,
        out_shape=jax.ShapeDtypeStruct((B, Hp, W, Cout), jnp.float32),
        in_specs=[pl.BlockSpec(memory_space=pltpu.MemorySpace.VMEM)] * 7,
        out_specs=pl.BlockSpec(memory_space=pltpu.MemorySpace.VMEM),
        scratch_shapes=[
            pltpu.VMEM((B, Hp + 2, W + 2, Cmax), jnp.float32),   # shared padded buffer
            pltpu.VMEM((B, Hp, W, 9 * Cmax), jnp.float32),       # shared im2col buffer
        ],
    )(x_nhwc, w1, g1r, b1r, w2, g2r, b2r)

    return jnp.transpose(out_nhwc, (0, 3, 1, 2))                 # NHWC -> NCHW


def down_reference(x_nchw, w1, g1, b1, w2, g2, b2):
    """Pure-JAX reference mirroring the PyTorch module (training-mode BN)."""
    B, Cin, H, W = x_nchw.shape
    Hp = H // 4
    xp = x_nchw[:, :, :4 * Hp, :].reshape(B, Cin, Hp, 4, W).max(axis=3)

    def conv_bn_relu(x, w, g, b):
        y = jax.lax.conv_general_dilated(
            x, w, window_strides=(1, 1), padding=((1, 1), (1, 1)),
            dimension_numbers=("NCHW", "OIHW", "NCHW"))
        mean = y.mean(axis=(0, 2, 3), keepdims=True)
        var = y.var(axis=(0, 2, 3), keepdims=True)               # biased, like PyTorch BN
        y = (y - mean) * jax.lax.rsqrt(var + 1e-5)
        y = y * g.reshape(1, -1, 1, 1) + b.reshape(1, -1, 1, 1)
        return jnp.maximum(y, 0.0)

    return conv_bn_relu(conv_bn_relu(xp, w1, g1, b1), w2, g2, b2)


if __name__ == "__main__":
    B, Cin, Cout, H, W = 2, 4, 8, 16, 16

    key = jax.random.PRNGKey(0)
    kx, k1, k2, kg1, kb1, kg2, kb2 = jax.random.split(key, 7)

    x = jax.random.normal(kx, (B, Cin, H, W), dtype=jnp.float32)
    w1 = 0.2 * jax.random.normal(k1, (Cout, Cin, 3, 3), dtype=jnp.float32)
    w2 = 0.2 * jax.random.normal(k2, (Cout, Cout, 3, 3), dtype=jnp.float32)
    g1 = 1.0 + 0.1 * jax.random.normal(kg1, (Cout,), dtype=jnp.float32)
    b1 = 0.1 * jax.random.normal(kb1, (Cout,), dtype=jnp.float32)
    g2 = 1.0 + 0.1 * jax.random.normal(kg2, (Cout,), dtype=jnp.float32)
    b2 = 0.1 * jax.random.normal(kb2, (Cout,), dtype=jnp.float32)

    out = jax.block_until_ready(down_pallas(x, w1, g1, b1, w2, g2, b2))
    ref = jax.block_until_ready(down_reference(x, w1, g1, b1, w2, g2, b2))

    assert out.shape == (B, Cout, H // 4, W), out.shape
    assert jnp.allclose(out, ref, rtol=1e-3, atol=1e-3), float(
        jnp.max(jnp.abs(out - ref)))

    print("KERNEL_OK")
</pallas_src>

<mosaic_0001>
module attributes {stable_mosaic.version = 11 : i64} {
  func.func @down_kernel(%arg0: memref<2x16x16x4xf32, #tpu.memory_space<vmem>>, %arg1: memref<36x8xf32, #tpu.memory_space<vmem>>, %arg2: memref<1x8xf32, #tpu.memory_space<vmem>>, %arg3: memref<1x8xf32, #tpu.memory_space<vmem>>, %arg4: memref<72x8xf32, #tpu.memory_space<vmem>>, %arg5: memref<1x8xf32, #tpu.memory_space<vmem>>, %arg6: memref<1x8xf32, #tpu.memory_space<vmem>>, %arg7: memref<2x4x16x8xf32, #tpu.memory_space<vmem>>, %arg8: memref<2x6x18x8xf32, #tpu.memory_space<vmem>>, %arg9: memref<2x4x16x72xf32, #tpu.memory_space<vmem>>) attributes {dimension_semantics = [], scalar_prefetch = 0 : i64, scratch_operands = 2 : i64, tpu.core_type = #tpu.core_type<tc>} {
    %c0 = arith.constant 0 : index
    %c0_0 = arith.constant 0 : index
    %c0_1 = arith.constant 0 : index
    %c0_2 = arith.constant 0 : index
    %0 = vector.load %arg0[%c0, %c0_0, %c0_1, %c0_2] : memref<2x16x16x4xf32, #tpu.memory_space<vmem>>, vector<2x16x16x4xf32>
    %1 = vector.shape_cast %0 : vector<2x16x16x4xf32> to vector<2x4x4x16x4xf32>
    %2 = vector.extract_strided_slice %1 {offsets = [0, 0, 0, 0, 0], sizes = [2, 4, 1, 16, 4], strides = [1, 1, 1, 1, 1]} : vector<2x4x4x16x4xf32> to vector<2x4x1x16x4xf32>
    %3 = vector.shape_cast %2 : vector<2x4x1x16x4xf32> to vector<2x4x16x4xf32>
    %4 = vector.extract_strided_slice %1 {offsets = [0, 0, 1, 0, 0], sizes = [2, 4, 1, 16, 4], strides = [1, 1, 1, 1, 1]} : vector<2x4x4x16x4xf32> to vector<2x4x1x16x4xf32>
    %5 = vector.shape_cast %4 : vector<2x4x1x16x4xf32> to vector<2x4x16x4xf32>
    %6 = arith.maximumf %3, %5 : vector<2x4x16x4xf32>
    %7 = vector.extract_strided_slice %1 {offsets = [0, 0, 2, 0, 0], sizes = [2, 4, 1, 16, 4], strides = [1, 1, 1, 1, 1]} : vector<2x4x4x16x4xf32> to vector<2x4x1x16x4xf32>
    %8 = vector.shape_cast %7 : vector<2x4x1x16x4xf32> to vector<2x4x16x4xf32>
    %9 = vector.extract_strided_slice %1 {offsets = [0, 0, 3, 0, 0], sizes = [2, 4, 1, 16, 4], strides = [1, 1, 1, 1, 1]} : vector<2x4x4x16x4xf32> to vector<2x4x1x16x4xf32>
    %10 = vector.shape_cast %9 : vector<2x4x1x16x4xf32> to vector<2x4x16x4xf32>
    %11 = arith.maximumf %8, %10 : vector<2x4x16x4xf32>
    %12 = arith.maximumf %6, %11 : vector<2x4x16x4xf32>
    %cst = arith.constant 0.000000e+00 : f32
    %13 = vector.broadcast %cst : f32 to vector<2x1x18x8xf32>
    %cst_3 = arith.constant 0.000000e+00 : f32
    %14 = vector.broadcast %cst_3 : f32 to vector<2x6x1x8xf32>
    %c0_4 = arith.constant 0 : index
    %c0_5 = arith.constant 0 : index
    %c0_6 = arith.constant 0 : index
    %c0_7 = arith.constant 0 : index
    %15 = vector.load %arg8[%c0_4, %c0_5, %c0_6, %c0_7] : memref<2x6x18x8xf32, #tpu.memory_space<vmem>>, vector<2x1x18x8xf32>
    tpu.vector_store %arg8[%c0_4, %c0_5, %c0_6, %c0_7], %13 {strides = array<i32>} : memref<2x6x18x8xf32, #tpu.memory_space<vmem>>, vector<2x1x18x8xf32>,
    %c0_8 = arith.constant 0 : index
    %c5 = arith.constant 5 : index
    %c0_9 = arith.constant 0 : index
    %c0_10 = arith.constant 0 : index
    %16 = vector.load %arg8[%c0_8, %c5, %c0_9, %c0_10] : memref<2x6x18x8xf32, #tpu.memory_space<vmem>>, vector<2x1x18x8xf32>
    tpu.vector_store %arg8[%c0_8, %c5, %c0_9, %c0_10], %13 {strides = array<i32>} : memref<2x6x18x8xf32, #tpu.memory_space<vmem>>, vector<2x1x18x8xf32>,
    %c0_11 = arith.constant 0 : index
    %c0_12 = arith.constant 0 : index
    %c0_13 = arith.constant 0 : index
    %c0_14 = arith.constant 0 : index
    %17 = vector.load %arg8[%c0_11, %c0_12, %c0_13, %c0_14] : memref<2x6x18x8xf32, #tpu.memory_space<vmem>>, vector<2x6x1x8xf32>
    tpu.vector_store %arg8[%c0_11, %c0_12, %c0_13, %c0_14], %14 {strides = array<i32>} : memref<2x6x18x8xf32, #tpu.memory_space<vmem>>, vector<2x6x1x8xf32>,
    %c0_15 = arith.constant 0 : index
    %c0_16 = arith.constant 0 : index
    %c17 = arith.constant 17 : index
    %c0_17 = arith.constant 0 : index
    %18 = vector.load %arg8[%c0_15, %c0_16, %c17, %c0_17] : memref<2x6x18x8xf32, #tpu.memory_space<vmem>>, vector<2x6x1x8xf32>
    tpu.vector_store %arg8[%c0_15, %c0_16, %c17, %c0_17], %14 {strides = array<i32>} : memref<2x6x18x8xf32, #tpu.memory_space<vmem>>, vector<2x6x1x8xf32>,
    %c0_18 = arith.constant 0 : index
    %c1 = arith.constant 1 : index
    %c1_19 = arith.constant 1 : index
    %c0_20 = arith.constant 0 : index
    %19 = vector.load %arg8[%c0_18, %c1, %c1_19, %c0_20] : memref<2x6x18x8xf32, #tpu.memory_space<vmem>>, vector<2x4x16x4xf32>
    tpu.vector_store %arg8[%c0_18, %c1, %c1_19, %c0_20], %12 {strides = array<i32>} : memref<2x6x18x8xf32, #tpu.memory_space<vmem>>, vector<2x4x16x4xf32>,
    %c0_21 = arith.constant 0 : index
    %c0_22 = arith.constant 0 : index
    %c0_23 = arith.constant 0 : index
    %c0_24 = arith.constant 0 : index
    %20 = vector.load %arg8[%c0_21, %c0_22, %c0_23, %c0_24] : memref<2x6x18x8xf32, #tpu.memory_space<vmem>>, vector<2x4x16x4xf32>
    %c0_25 = arith.constant 0 : index
    %c0_26 = arith.constant 0 : index
    %c0_27 = arith.constant 0 : index
    %c0_28 = arith.constant 0 : index
    %21 = vector.load %arg9[%c0_25, %c0_26, %c0_27, %c0_28] : memref<2x4x16x72xf32, #tpu.memory_space<vmem>>, vector<2x4x16x4xf32>
    tpu.vector_store %arg9[%c0_25, %c0_26, %c0_27, %c0_28], %20 {strides = array<i32>} : memref<2x4x16x72xf32, #tpu.memory_space<vmem>>, vector<2x4x16x4xf32>,
    %c0_29 = arith.constant 0 : index
    %c0_30 = arith.constant 0 : index
    %c1_31 = arith.constant 1 : index
    %c0_32 = arith.constant 0 : index
    %22 = vector.load %arg8[%c0_29, %c0_30, %c1_31, %c0_32] : memref<2x6x18x8xf32, #tpu.memory_space<vmem>>, vector<2x4x16x4xf32>
    %c0_33 = arith.constant 0 : index
    %c0_34 = arith.constant 0 : index
    %c0_35 = arith.constant 0 : index
    %c4 = arith.constant 4 : index
    %23 = vector.load %arg9[%c0_33, %c0_34, %c0_35, %c4] : memref<2x4x16x72xf32, #tpu.memory_space<vmem>>, vector<2x4x16x4xf32>
    tpu.vector_store %arg9[%c0_33, %c0_34, %c0_35, %c4], %22 {strides = array<i32>} : memref<2x4x16x72xf32, #tpu.memory_space<vmem>>, vector<2x4x16x4xf32>,
    %c0_36 = arith.constant 0 : index
    %c0_37 = arith.constant 0 : index
    %c2 = arith.constant 2 : index
    %c0_38 = arith.constant 0 : index
    %24 = vector.load %arg8[%c0_36, %c0_37, %c2, %c0_38] : memref<2x6x18x8xf32, #tpu.memory_space<vmem>>, vector<2x4x16x4xf32>
    %c0_39 = arith.constant 0 : index
    %c0_40 = arith.constant 0 : index
    %c0_41 = arith.constant 0 : index
    %c8 = arith.constant 8 : index
    %25 = vector.load %arg9[%c0_39, %c0_40, %c0_41, %c8] : memref<2x4x16x72xf32, #tpu.memory_space<vmem>>, vector<2x4x16x4xf32>
    tpu.vector_store %arg9[%c0_39, %c0_40, %c0_41, %c8], %24 {strides = array<i32>} : memref<2x4x16x72xf32, #tpu.memory_space<vmem>>, vector<2x4x16x4xf32>,
    %c0_42 = arith.constant 0 : index
    %c1_43 = arith.constant 1 : index
    %c0_44 = arith.constant 0 : index
    %c0_45 = arith.constant 0 : index
    %26 = vector.load %arg8[%c0_42, %c1_43, %c0_44, %c0_45] : memref<2x6x18x8xf32, #tpu.memory_space<vmem>>, vector<2x4x16x4xf32>
    %c0_46 = arith.constant 0 : index
    %c0_47 = arith.constant 0 : index
    %c0_48 = arith.constant 0 : index
    %c12 = arith.constant 12 : index
    %27 = vector.load %arg9[%c0_46, %c0_47, %c0_48, %c12] : memref<2x4x16x72xf32, #tpu.memory_space<vmem>>, vector<2x4x16x4xf32>
    tpu.vector_store %arg9[%c0_46, %c0_47, %c0_48, %c12], %26 {strides = array<i32>} : memref<2x4x16x72xf32, #tpu.memory_space<vmem>>, vector<2x4x16x4xf32>,
    %c0_49 = arith.constant 0 : index
    %c1_50 = arith.constant 1 : index
    %c1_51 = arith.constant 1 : index
    %c0_52 = arith.constant 0 : index
    %28 = vector.load %arg8[%c0_49, %c1_50, %c1_51, %c0_52] : memref<2x6x18x8xf32, #tpu.memory_space<vmem>>, vector<2x4x16x4xf32>
    %c0_53 = arith.constant 0 : index
    %c0_54 = arith.constant 0 : index
    %c0_55 = arith.constant 0 : index
    %c16 = arith.constant 16 : index
    %29 = vector.load %arg9[%c0_53, %c0_54, %c0_55, %c16] : memref<2x4x16x72xf32, #tpu.memory_space<vmem>>, vector<2x4x16x4xf32>
    tpu.vector_store %arg9[%c0_53, %c0_54, %c0_55, %c16], %28 {strides = array<i32>} : memref<2x4x16x72xf32, #tpu.memory_space<vmem>>, vector<2x4x16x4xf32>,
    %c0_56 = arith.constant 0 : index
    %c1_57 = arith.constant 1 : index
    %c2_58 = arith.constant 2 : index
    %c0_59 = arith.constant 0 : index
    %30 = vector.load %arg8[%c0_56, %c1_57, %c2_58, %c0_59] : memref<2x6x18x8xf32, #tpu.memory_space<vmem>>, vector<2x4x16x4xf32>
    %c0_60 = arith.constant 0 : index
    %c0_61 = arith.constant 0 : index
    %c0_62 = arith.constant 0 : index
    %c20 = arith.constant 20 : index
    %31 = vector.load %arg9[%c0_60, %c0_61, %c0_62, %c20] : memref<2x4x16x72xf32, #tpu.memory_space<vmem>>, vector<2x4x16x4xf32>
    tpu.vector_store %arg9[%c0_60, %c0_61, %c0_62, %c20], %30 {strides = array<i32>} : memref<2x4x16x72xf32, #tpu.memory_space<vmem>>, vector<2x4x16x4xf32>,
    %c0_63 = arith.constant 0 : index
    %c2_64 = arith.constant 2 : index
    %c0_65 = arith.constant 0 : index
    %c0_66 = arith.constant 0 : index
    %32 = vector.load %arg8[%c0_63, %c2_64, %c0_65, %c0_66] : memref<2x6x18x8xf32, #tpu.memory_space<vmem>>, vector<2x4x16x4xf32>
    %c0_67 = arith.constant 0 : index
    %c0_68 = arith.constant 0 : index
    %c0_69 = arith.constant 0 : index
    %c24 = arith.constant 24 : index
    %33 = vector.load %arg9[%c0_67, %c0_68, %c0_69, %c24] : memref<2x4x16x72xf32, #tpu.memory_space<vmem>>, vector<2x4x16x4xf32>
    tpu.vector_store %arg9[%c0_67, %c0_68, %c0_69, %c24], %32 {strides = array<i32>} : memref<2x4x16x72xf32, #tpu.memory_space<vmem>>, vector<2x4x16x4xf32>,
    %c0_70 = arith.constant 0 : index
    %c2_71 = arith.constant 2 : index
    %c1_72 = arith.constant 1 : index
    %c0_73 = arith.constant 0 : index
    %34 = vector.load %arg8[%c0_70, %c2_71, %c1_72, %c0_73] : memref<2x6x18x8xf32, #tpu.memory_space<vmem>>, vector<2x4x16x4xf32>
    %c0_74 = arith.constant 0 : index
    %c0_75 = arith.constant 0 : index
    %c0_76 = arith.constant 0 : index
    %c28 = arith.constant 28 : index
    %35 = vector.load %arg9[%c0_74, %c0_75, %c0_76, %c28] : memref<2x4x16x72xf32, #tpu.memory_space<vmem>>, vector<2x4x16x4xf32>
    tpu.vector_store %arg9[%c0_74, %c0_75, %c0_76, %c28], %34 {strides = array<i32>} : memref<2x4x16x72xf32, #tpu.memory_space<vmem>>, vector<2x4x16x4xf32>,
    %c0_77 = arith.constant 0 : index
    %c2_78 = arith.constant 2 : index
    %c2_79 = arith.constant 2 : index
    %c0_80 = arith.constant 0 : index
    %36 = vector.load %arg8[%c0_77, %c2_78, %c2_79, %c0_80] : memref<2x6x18x8xf32, #tpu.memory_space<vmem>>, vector<2x4x16x4xf32>
    %c0_81 = arith.constant 0 : index
    %c0_82 = arith.constant 0 : index
    %c0_83 = arith.constant 0 : index
    %c32 = arith.constant 32 : index
    %37 = vector.load %arg9[%c0_81, %c0_82, %c0_83, %c32] : memref<2x4x16x72xf32, #tpu.memory_space<vmem>>, vector<2x4x16x4xf32>
    tpu.vector_store %arg9[%c0_81, %c0_82, %c0_83, %c32], %36 {strides = array<i32>} : memref<2x4x16x72xf32, #tpu.memory_space<vmem>>, vector<2x4x16x4xf32>,
    %c0_84 = arith.constant 0 : index
    %c0_85 = arith.constant 0 : index
    %c0_86 = arith.constant 0 : index
    %c0_87 = arith.constant 0 : index
    %38 = vector.load %arg9[%c0_84, %c0_85, %c0_86, %c0_87] : memref<2x4x16x72xf32, #tpu.memory_space<vmem>>, vector<2x4x16x36xf32>
    %39 = vector.shape_cast %38 : vector<2x4x16x36xf32> to vector<128x36xf32>
    %c0_88 = arith.constant 0 : index
    %c0_89 = arith.constant 0 : index
    %40 = vector.load %arg1[%c0_88, %c0_89] : memref<36x8xf32, #tpu.memory_space<vmem>>, vector<36x8xf32>
    %cst_90 = arith.constant dense<0.000000e+00> : vector<128x8xf32>
    %41 = tpu.matmul %39, %40, %cst_90 {dimension_numbers = #tpu.dot_dimension_numbers<[1], [0], [0], [1], [0, 0, 1, 1], [], []>} : vector<128x36xf32>, vector<36x8xf32>, vector<128x8xf32> -> vector<128x8xf32>
    %cst_91 = arith.constant dense<0.000000e+00> : vector<8xf32>
    %42 = vector.multi_reduction <add>, %41, %cst_91 [0] : vector<128x8xf32> to vector<8xf32>
    %43 = vector.shape_cast %42 : vector<8xf32> to vector<1x8xf32>
    %cst_92 = arith.constant 7.812500e-03 : f32
    %44 = vector.broadcast %cst_92 : f32 to vector<1x8xf32>
    %45 = arith.mulf %43, %44 : vector<1x8xf32>
    %46 = vector.broadcast %45 : vector<1x8xf32> to vector<128x8xf32>
    %47 = arith.subf %41, %46 : vector<128x8xf32>
    %48 = arith.mulf %47, %47 : vector<128x8xf32>
    %cst_93 = arith.constant dense<0.000000e+00> : vector<8xf32>
    %49 = vector.multi_reduction <add>, %48, %cst_93 [0] : vector<128x8xf32> to vector<8xf32>
    %50 = vector.shape_cast %49 : vector<8xf32> to vector<1x8xf32>
    %cst_94 = arith.constant 7.812500e-03 : f32
    %51 = vector.broadcast %cst_94 : f32 to vector<1x8xf32>
    %52 = arith.mulf %50, %51 : vector<1x8xf32>
    %c0_95 = arith.constant 0 : index
    %c0_96 = arith.constant 0 : index
    %53 = vector.load %arg2[%c0_95, %c0_96] : memref<1x8xf32, #tpu.memory_space<vmem>>, vector<1x8xf32>
    %cst_97 = arith.constant 9.99999974E-6 : f32
    %54 = vector.broadcast %cst_97 : f32 to vector<1x8xf32>
    %55 = arith.addf %52, %54 : vector<1x8xf32>
    %56 = math.rsqrt %55 : vector<1x8xf32>
    %57 = arith.mulf %53, %56 : vector<1x8xf32>
    %58 = vector.broadcast %57 : vector<1x8xf32> to vector<128x8xf32>
    %59 = arith.mulf %47, %58 : vector<128x8xf32>
    %c0_98 = arith.constant 0 : index
    %c0_99 = arith.constant 0 : index
    %60 = vector.load %arg3[%c0_98, %c0_99] : memref<1x8xf32, #tpu.memory_space<vmem>>, vector<1x8xf32>
    %61 = vector.broadcast %60 : vector<1x8xf32> to vector<128x8xf32>
    %62 = arith.addf %59, %61 : vector<128x8xf32>
    %cst_100 = arith.constant 0.000000e+00 : f32
    %63 = vector.broadcast %cst_100 : f32 to vector<128x8xf32>
    %64 = arith.maximumf %62, %63 : vector<128x8xf32>
    %65 = vector.shape_cast %64 : vector<128x8xf32> to vector<2x4x16x8xf32>
    %c0_101 = arith.constant 0 : index
    %c1_102 = arith.constant 1 : index
    %c1_103 = arith.constant 1 : index
    %c0_104 = arith.constant 0 : index
    %66 = vector.load %arg8[%c0_101, %c1_102, %c1_103, %c0_104] : memref<2x6x18x8xf32, #tpu.memory_space<vmem>>, vector<2x4x16x8xf32>
    tpu.vector_store %arg8[%c0_101, %c1_102, %c1_103, %c0_104], %65 {strides = array<i32>} : memref<2x6x18x8xf32, #tpu.memory_space<vmem>>, vector<2x4x16x8xf32>,
    %c0_105 = arith.constant 0 : index
    %c0_106 = arith.constant 0 : index
    %c0_107 = arith.constant 0 : index
    %c0_108 = arith.constant 0 : index
    %67 = vector.load %arg8[%c0_105, %c0_106, %c0_107, %c0_108] : memref<2x6x18x8xf32, #tpu.memory_space<vmem>>, vector<2x4x16x8xf32>
    %c0_109 = arith.constant 0 : index
    %c0_110 = arith.constant 0 : index
    %c0_111 = arith.constant 0 : index
    %c0_112 = arith.constant 0 : index
    %68 = vector.load %arg9[%c0_109, %c0_110, %c0_111, %c0_112] : memref<2x4x16x72xf32, #tpu.memory_space<vmem>>, vector<2x4x16x8xf32>
    tpu.vector_store %arg9[%c0_109, %c0_110, %c0_111, %c0_112], %67 {strides = array<i32>} : memref<2x4x16x72xf32, #tpu.memory_space<vmem>>, vector<2x4x16x8xf32>,
    %c0_113 = arith.constant 0 : index
    %c0_114 = arith.constant 0 : index
    %c1_115 = arith.constant 1 : index
    %c0_116 = arith.constant 0 : index
    %69 = vector.load %arg8[%c0_113, %c0_114, %c1_115, %c0_116] : memref<2x6x18x8xf32, #tpu.memory_space<vmem>>, vector<2x4x16x8xf32>
    %c0_117 = arith.constant 0 : index
    %c0_118 = arith.constant 0 : index
    %c0_119 = arith.constant 0 : index
    %c8_120 = arith.constant 8 : index
    %70 = vector.load %arg9[%c0_117, %c0_118, %c0_119, %c8_120] : memref<2x4x16x72xf32, #tpu.memory_space<vmem>>, vector<2x4x16x8xf32>
    tpu.vector_store %arg9[%c0_117, %c0_118, %c0_119, %c8_120], %69 {strides = array<i32>} : memref<2x4x16x72xf32, #tpu.memory_space<vmem>>, vector<2x4x16x8xf32>,
    %c0_121 = arith.constant 0 : index
    %c0_122 = arith.constant 0 : index
    %c2_123 = arith.constant 2 : index
    %c0_124 = arith.constant 0 : index
    %71 = vector.load %arg8[%c0_121, %c0_122, %c2_123, %c0_124] : memref<2x6x18x8xf32, #tpu.memory_space<vmem>>, vector<2x4x16x8xf32>
    %c0_125 = arith.constant 0 : index
    %c0_126 = arith.constant 0 : index
    %c0_127 = arith.constant 0 : index
    %c16_128 = arith.constant 16 : index
    %72 = vector.load %arg9[%c0_125, %c0_126, %c0_127, %c16_128] : memref<2x4x16x72xf32, #tpu.memory_space<vmem>>, vector<2x4x16x8xf32>
    tpu.vector_store %arg9[%c0_125, %c0_126, %c0_127, %c16_128], %71 {strides = array<i32>} : memref<2x4x16x72xf32, #tpu.memory_space<vmem>>, vector<2x4x16x8xf32>,
    %c0_129 = arith.constant 0 : index
    %c1_130 = arith.constant 1 : index
    %c0_131 = arith.constant 0 : index
    %c0_132 = arith.constant 0 : index
    %73 = vector.load %arg8[%c0_129, %c1_130, %c0_131, %c0_132] : memref<2x6x18x8xf32, #tpu.memory_space<vmem>>, vector<2x4x16x8xf32>
    %c0_133 = arith.constant 0 : index
    %c0_134 = arith.constant 0 : index
    %c0_135 = arith.constant 0 : index
    %c24_136 = arith.constant 24 : index
    %74 = vector.load %arg9[%c0_133, %c0_134, %c0_135, %c24_136] : memref<2x4x16x72xf32, #tpu.memory_space<vmem>>, vector<2x4x16x8xf32>
    tpu.vector_store %arg9[%c0_133, %c0_134, %c0_135, %c24_136], %73 {strides = array<i32>} : memref<2x4x16x72xf32, #tpu.memory_space<vmem>>, vector<2x4x16x8xf32>,
    %c0_137 = arith.constant 0 : index
    %c1_138 = arith.constant 1 : index
    %c1_139 = arith.constant 1 : index
    %c0_140 = arith.constant 0 : index
    %75 = vector.load %arg8[%c0_137, %c1_138, %c1_139, %c0_140] : memref<2x6x18x8xf32, #tpu.memory_space<vmem>>, vector<2x4x16x8xf32>
    %c0_141 = arith.constant 0 : index
    %c0_142 = arith.constant 0 : index
    %c0_143 = arith.constant 0 : index
    %c32_144 = arith.constant 32 : index
    %76 = vector.load %arg9[%c0_141, %c0_142, %c0_143, %c32_144] : memref<2x4x16x72xf32, #tpu.memory_space<vmem>>, vector<2x4x16x8xf32>
    tpu.vector_store %arg9[%c0_141, %c0_142, %c0_143, %c32_144], %75 {strides = array<i32>} : memref<2x4x16x72xf32, #tpu.memory_space<vmem>>, vector<2x4x16x8xf32>,
    %c0_145 = arith.constant 0 : index
    %c1_146 = arith.constant 1 : index
    %c2_147 = arith.constant 2 : index
    %c0_148 = arith.constant 0 : index
    %77 = vector.load %arg8[%c0_145, %c1_146, %c2_147, %c0_148] : memref<2x6x18x8xf32, #tpu.memory_space<vmem>>, vector<2x4x16x8xf32>
    %c0_149 = arith.constant 0 : index
    %c0_150 = arith.constant 0 : index
    %c0_151 = arith.constant 0 : index
    %c40 = arith.constant 40 : index
    %78 = vector.load %arg9[%c0_149, %c0_150, %c0_151, %c40] : memref<2x4x16x72xf32, #tpu.memory_space<vmem>>, vector<2x4x16x8xf32>
    tpu.vector_store %arg9[%c0_149, %c0_150, %c0_151, %c40], %77 {strides = array<i32>} : memref<2x4x16x72xf32, #tpu.memory_space<vmem>>, vector<2x4x16x8xf32>,
    %c0_152 = arith.constant 0 : index
    %c2_153 = arith.constant 2 : index
    %c0_154 = arith.constant 0 : index
    %c0_155 = arith.constant 0 : index
    %79 = vector.load %arg8[%c0_152, %c2_153, %c0_154, %c0_155] : memref<2x6x18x8xf32, #tpu.memory_space<vmem>>, vector<2x4x16x8xf32>
    %c0_156 = arith.constant 0 : index
    %c0_157 = arith.constant 0 : index
    %c0_158 = arith.constant 0 : index
    %c48 = arith.constant 48 : index
    %80 = vector.load %arg9[%c0_156, %c0_157, %c0_158, %c48] : memref<2x4x16x72xf32, #tpu.memory_space<vmem>>, vector<2x4x16x8xf32>
    tpu.vector_store %arg9[%c0_156, %c0_157, %c0_158, %c48], %79 {strides = array<i32>} : memref<2x4x16x72xf32, #tpu.memory_space<vmem>>, vector<2x4x16x8xf32>,
    %c0_159 = arith.constant 0 : index
    %c2_160 = arith.constant 2 : index
    %c1_161 = arith.constant 1 : index
    %c0_162 = arith.constant 0 : index
    %81 = vector.load %arg8[%c0_159, %c2_160, %c1_161, %c0_162] : memref<2x6x18x8xf32, #tpu.memory_space<vmem>>, vector<2x4x16x8xf32>
    %c0_163 = arith.constant 0 : index
    %c0_164 = arith.constant 0 : index
    %c0_165 = arith.constant 0 : index
    %c56 = arith.constant 56 : index
    %82 = vector.load %arg9[%c0_163, %c0_164, %c0_165, %c56] : memref<2x4x16x72xf32, #tpu.memory_space<vmem>>, vector<2x4x16x8xf32>
    tpu.vector_store %arg9[%c0_163, %c0_164, %c0_165, %c56], %81 {strides = array<i32>} : memref<2x4x16x72xf32, #tpu.memory_space<vmem>>, vector<2x4x16x8xf32>,
    %c0_166 = arith.constant 0 : index
    %c2_167 = arith.constant 2 : index
    %c2_168 = arith.constant 2 : index
    %c0_169 = arith.constant 0 : index
    %83 = vector.load %arg8[%c0_166, %c2_167, %c2_168, %c0_169] : memref<2x6x18x8xf32, #tpu.memory_space<vmem>>, vector<2x4x16x8xf32>
    %c0_170 = arith.constant 0 : index
    %c0_171 = arith.constant 0 : index
    %c0_172 = arith.constant 0 : index
    %c64 = arith.constant 64 : index
    %84 = vector.load %arg9[%c0_170, %c0_171, %c0_172, %c64] : memref<2x4x16x72xf32, #tpu.memory_space<vmem>>, vector<2x4x16x8xf32>
    tpu.vector_store %arg9[%c0_170, %c0_171, %c0_172, %c64], %83 {strides = array<i32>} : memref<2x4x16x72xf32, #tpu.memory_space<vmem>>, vector<2x4x16x8xf32>,
    %c0_173 = arith.constant 0 : index
    %c0_174 = arith.constant 0 : index
    %c0_175 = arith.constant 0 : index
    %c0_176 = arith.constant 0 : index
    %85 = vector.load %arg9[%c0_173, %c0_174, %c0_175, %c0_176] : memref<2x4x16x72xf32, #tpu.memory_space<vmem>>, vector<2x4x16x72xf32>
    %86 = vector.shape_cast %85 : vector<2x4x16x72xf32> to vector<128x72xf32>
    %c0_177 = arith.constant 0 : index
    %c0_178 = arith.constant 0 : index
    %87 = vector.load %arg4[%c0_177, %c0_178] : memref<72x8xf32, #tpu.memory_space<vmem>>, vector<72x8xf32>
    %cst_179 = arith.constant dense<0.000000e+00> : vector<128x8xf32>
    %88 = tpu.matmul %86, %87, %cst_179 {dimension_numbers = #tpu.dot_dimension_numbers<[1], [0], [0], [1], [0, 0, 1, 1], [], []>} : vector<128x72xf32>, vector<72x8xf32>, vector<128x8xf32> -> vector<128x8xf32>
    %cst_180 = arith.constant dense<0.000000e+00> : vector<8xf32>
    %89 = vector.multi_reduction <add>, %88, %cst_180 [0] : vector<128x8xf32> to vector<8xf32>
    %90 = vector.shape_cast %89 : vector<8xf32> to vector<1x8xf32>
    %cst_181 = arith.constant 7.812500e-03 : f32
    %91 = vector.broadcast %cst_181 : f32 to vector<1x8xf32>
    %92 = arith.mulf %90, %91 : vector<1x8xf32>
    %93 = vector.broadcast %92 : vector<1x8xf32> to vector<128x8xf32>
    %94 = arith.subf %88, %93 : vector<128x8xf32>
    %95 = arith.mulf %94, %94 : vector<128x8xf32>
    %cst_182 = arith.constant dense<0.000000e+00> : vector<8xf32>
    %96 = vector.multi_reduction <add>, %95, %cst_182 [0] : vector<128x8xf32> to vector<8xf32>
    %97 = vector.shape_cast %96 : vector<8xf32> to vector<1x8xf32>
    %cst_183 = arith.constant 7.812500e-03 : f32
    %98 = vector.broadcast %cst_183 : f32 to vector<1x8xf32>
    %99 = arith.mulf %97, %98 : vector<1x8xf32>
    %c0_184 = arith.constant 0 : index
    %c0_185 = arith.constant 0 : index
    %100 = vector.load %arg5[%c0_184, %c0_185] : memref<1x8xf32, #tpu.memory_space<vmem>>, vector<1x8xf32>
    %cst_186 = arith.constant 9.99999974E-6 : f32
    %101 = vector.broadcast %cst_186 : f32 to vector<1x8xf32>
    %102 = arith.addf %99, %101 : vector<1x8xf32>
    %103 = math.rsqrt %102 : vector<1x8xf32>
    %104 = arith.mulf %100, %103 : vector<1x8xf32>
    %105 = vector.broadcast %104 : vector<1x8xf32> to vector<128x8xf32>
    %106 = arith.mulf %94, %105 : vector<128x8xf32>
    %c0_187 = arith.constant 0 : index
    %c0_188 = arith.constant 0 : index
    %107 = vector.load %arg6[%c0_187, %c0_188] : memref<1x8xf32, #tpu.memory_space<vmem>>, vector<1x8xf32>
    %108 = vector.broadcast %107 : vector<1x8xf32> to vector<128x8xf32>
    %109 = arith.addf %106, %108 : vector<128x8xf32>
    %cst_189 = arith.constant 0.000000e+00 : f32
    %110 = vector.broadcast %cst_189 : f32 to vector<128x8xf32>
    %111 = arith.maximumf %109, %110 : vector<128x8xf32>
    %112 = vector.shape_cast %111 : vector<128x8xf32> to vector<2x4x16x8xf32>
    %c0_190 = arith.constant 0 : index
    %c0_191 = arith.constant 0 : index
    %c0_192 = arith.constant 0 : index
    %c0_193 = arith.constant 0 : index
    %113 = vector.load %arg7[%c0_190, %c0_191, %c0_192, %c0_193] : memref<2x4x16x8xf32, #tpu.memory_space<vmem>>, vector<2x4x16x8xf32>
    tpu.vector_store %arg7[%c0_190, %c0_191, %c0_192, %c0_193], %112 {strides = array<i32>} : memref<2x4x16x8xf32, #tpu.memory_space<vmem>>, vector<2x4x16x8xf32>,
    return
  }
}

</mosaic_0001>

<bundles_post_ra>
// kernel: tpu_custom_call.1
= control target key start
LH: loop header
LB: loop body
LE: loop exit
PB: predicated region body
PF: predicated region fallthrough
CT: control target
= control target key end

     0   :  { %vm138_vm0 = vcmask 64512   ;;  %vm141_vm1 = vcmask 58368   ;;  %vm153_vm2 = vcmask 57344   ;;  %v2841_v0 = vmov 0.0   ;;  %s2842_s20 = smov 8   ;;  %s2843_s21 = smov 4   ;;  %s4218_s0 = inlined_call_operand.vmem [shape: f32[2,16,16,4], index: 0, kind: input, shape index: {}]   ;;  %s4219_s1 = inlined_call_operand.vmem [shape: f32[36,8], index: 1, kind: input, shape index: {}]   ;;  %s4220_s2 = inlined_call_operand.vmem [shape: f32[1,8], index: 2, kind: input, shape index: {}]   ;;  %s4221_s3 = inlined_call_operand.vmem [shape: f32[1,8], index: 3, kind: input, shape index: {}]   ;;  %s4222_s4 = inlined_call_operand.vmem [shape: f32[72,8], index: 4, kind: input, shape index: {}]   ;;  %s4223_s5 = inlined_call_operand.vmem [shape: f32[1,8], index: 5, kind: input, shape index: {}]   ;;  %s4224_s6 = inlined_call_operand.vmem [shape: f32[1,8], index: 6, kind: input, shape index: {}]   ;;  %s4225_s7 = inlined_call_operand.vmem [shape: f32[2,4,16,8], index: 7, kind: output, shape index: {}]  }
   0x1   :  { %139 = vst.msk [vmem:[#allocation2] sm:$0xff] %vm138_vm0, %v2841_v0  ;;  %140 = vst.msk [vmem:[#allocation2 + $0x8] sm:$0xff] %vm138_vm0, %v2841_v0  ;;  %v26_v1 = vld [vmem:[%s4218_s0] sm:$0xff]  ;;  %v27_v2 = vld [vmem:[%s4218_s0 + $0x8] sm:$0xff]  ;;  %vm179_vm3 = vcmask 31744   ;;  %s2844_s23 = smov 12  }
   0x2   :  { %143 = vst.msk [vmem:[#allocation2 + $0x90] sm:$0xff] %vm138_vm0, %v2841_v0  ;;  %144 = vst.msk [vmem:[#allocation2 + $0x98] sm:$0xff] %vm138_vm0, %v2841_v0  ;;  %v28_v3 = vld [vmem:[%s4218_s0 + $0x10] sm:$0xff]  ;;  %v29_v4 = vld [vmem:[%s4218_s0 + $0x18] sm:$0xff]  ;;  %s2845_s30 = smov 16   ;;  %s2846_s10 = smov 20  }
   0x3   :  { %147 = vst.msk [vmem:[#allocation2 + $0x78] sm:$0xff] %vm138_vm0, %v2841_v0  ;;  %148 = vst.msk [vmem:[#allocation2 + $0x80] sm:$0xff] %vm138_vm0, %v2841_v0  ;;  %v30_v5 = vld [vmem:[%s4218_s0 + $0x20] sm:$0xff]  ;;  %v31_v6 = vld [vmem:[%s4218_s0 + $0x28] sm:$0xff]  ;;  %v90_v7 = vmax.f32 %v26_v1, %v28_v3  ;;  %v91_v10 = vmax.f32 %v27_v2, %v29_v4  ;;  %s2847_s17 = smov 24   ;;  %s2848_s25 = smov 28  }
   0x4   :  { %150 = vst.msk [vmem:[#allocation2 + $0x108] sm:$0xff] %vm138_vm0, %v2841_v0  ;;  %151 = vst.msk [vmem:[#allocation2 + $0x110] sm:$0xff] %vm138_vm0, %v2841_v0  ;;  %v32_v8 = vld [vmem:[%s4218_s0 + $0x30] sm:$0xff]  ;;  %v33_v9 = vld [vmem:[%s4218_s0 + $0x38] sm:$0xff]  ;;  %s2849_s8 = smov 32   ;;  %vm1075_vm4 = vcmask 1043456  }
   0x5   :  { %142 = vst.msk [vmem:[#allocation2 + $0x10] sm:$0x3] %vm141_vm1, %v2841_v0  ;;  %145 = vst.msk [vmem:[#allocation2 + $0xa0] sm:$0x3] %vm141_vm1, %v2841_v0  ;;  %v34_v11 = vld [vmem:[%s4218_s0 + $0x40] sm:$0xff]  ;;  %v106_v12 = vmax.f32 %v30_v5, %v32_v8  ;;  %v107_v13 = vmax.f32 %v31_v6, %v33_v9  ;;  %v36_v14 = vld [vmem:[%s4218_s0 + $0x50] sm:$0xff] }
   0x6   :  { %149 = vst.msk [vmem:[#allocation2 + $0x88] sm:$0x3] %vm141_vm1, %v2841_v0  ;;  %152 = vst.msk [vmem:[#allocation2 + $0x118] sm:$0x3] %vm141_vm1, %v2841_v0  ;;  %v38_v15 = vld [vmem:[%s4218_s0 + $0x60] sm:$0xff]  ;;  %v40_v16 = vld [vmem:[%s4218_s0 + $0x70] sm:$0xff]  ;;  %v92_v17 = vmax.f32 %v34_v11, %v36_v14 }
   0x7   :  { %155 = vst.msk [vmem:[#allocation2 + $0x18] sm:$0x1] %vm153_vm2, %v2841_v0  ;;  %156 = vst.msk [vmem:[#allocation2 + $0x30] sm:$0x1] %vm153_vm2, %v2841_v0  ;;  %v108_v18 = vmax.f32 %v38_v15, %v40_v16  ;;  %v35_v19 = vld [vmem:[%s4218_s0 + $0x48] sm:$0xff]  ;;  %v37_v20 = vld [vmem:[%s4218_s0 + $0x58] sm:$0xff]  ;;  %v122_v22 = vmax.f32 %v90_v7, %v106_v12  ;;  %v123_v23 = vmax.f32 %v91_v10, %v107_v13 }
   0x8   :  { %157 = vst.msk [vmem:[#allocation2 + $0x48] sm:$0x1] %vm153_vm2, %v2841_v0  ;;  %158 = vst.msk [vmem:[#allocation2 + $0x60] sm:$0x1] %vm153_vm2, %v2841_v0  ;;  %v39_v21 = vld [vmem:[%s4218_s0 + $0x68] sm:$0xff]  ;;  %v41_v24 = vld [vmem:[%s4218_s0 + $0x78] sm:$0xff]  ;;  %v93_v25 = vmax.f32 %v35_v19, %v37_v20 }
   0x9   :  { %161 = vst.msk [vmem:[#allocation2 + $0xa8] sm:$0x1] %vm153_vm2, %v2841_v0  ;;  %162 = vst.msk [vmem:[#allocation2 + $0xc0] sm:$0x1] %vm153_vm2, %v2841_v0  ;;  %v42_v26 = vld [vmem:[%s4218_s0 + $0x80] sm:$0xff]  ;;  %v44_v27 = vld [vmem:[%s4218_s0 + $0x90] sm:$0xff]  ;;  %v124_v28 = vmax.f32 %v92_v17, %v108_v18  ;;  %v109_v29 = vmax.f32 %v39_v21, %v41_v24 }
   0xa   :  { %163 = vst.msk [vmem:[#allocation2 + $0xd8] sm:$0x1] %vm153_vm2, %v2841_v0  ;;  %164 = vst.msk [vmem:[#allocation2 + $0xf0] sm:$0x1] %vm153_vm2, %v2841_v0  ;;  %v46_v30 = vld [vmem:[%s4218_s0 + $0xa0] sm:$0xff]  ;;  %v48_v31 = vld [vmem:[%s4218_s0 + $0xb0] sm:$0xff]  ;;  %v94_v32 = vmax.f32 %v42_v26, %v44_v27 }
   0xb   :  { %167 = vst.msk [vmem:[#allocation2 + $0x29] sm:$0x1] %vm153_vm2, %v2841_v0  ;;  %168 = vst.msk [vmem:[#allocation2 + $0x41] sm:$0x1] %vm153_vm2, %v2841_v0  ;;  %v43_v33 = vld [vmem:[%s4218_s0 + $0x88] sm:$0xff]  ;;  %v110_v37 = vmax.f32 %v46_v30, %v48_v31  ;;  %v125_v39 = vmax.f32 %v93_v25, %v109_v29  ;;  %v45_v40 = vld [vmem:[%s4218_s0 + $0x98] sm:$0xff] }
   0xc   :  { %169 = vst.msk [vmem:[#allocation2 + $0x59] sm:$0x1] %vm153_vm2, %v2841_v0  ;;  %170 = vst.msk [vmem:[#allocation2 + $0x71] sm:$0x1] %vm153_vm2, %v2841_v0  ;;  %v325_v34 = vld [vmem:[#allocation2 + $0x2] sm:$0xff]  ;;  %v49_v43 = vld [vmem:[%s4218_s0 + $0xb8] sm:$0xff]  ;;  %v95_v44 = vmax.f32 %v43_v33, %v45_v40 }
   0xd   :  { %173 = vst.msk [vmem:[#allocation2 + $0xb9] sm:$0x1] %vm153_vm2, %v2841_v0  ;;  %174 = vst.msk [vmem:[#allocation2 + $0xd1] sm:$0x1] %vm153_vm2, %v2841_v0  ;;  %v228_v35 = vld [vmem:[#allocation2 + $0x1] sm:$0xff]  ;;  %v229_v36 = vld [vmem:[#allocation2 + $0x9] sm:$0xff]  ;;  %357 = vrot.lane.b32.xlu1 %v325_v34, %s2842_s20  ;;  %v126_v42 = vmax.f32 %v94_v32, %v110_v37 }
   0xe   :  { %175 = vst.msk [vmem:[#allocation2 + $0xe9] sm:$0x1] %vm153_vm2, %v2841_v0  ;;  %176 = vst.msk [vmem:[#allocation2 + $0x101] sm:$0x1] %vm153_vm2, %v2841_v0  ;;  %260 = vrot.lane.b32.xlu0 %v228_v35, %s2843_s21  ;;  %v47_v41 = vld [vmem:[%s4218_s0 + $0xa8] sm:$0xff]  ;;  %v50_v45 = vld [vmem:[%s4218_s0 + $0xc0] sm:$0xff] }
   0xf   :  { %166 = vst.msk [vmem:[#allocation2 + $0x11] sm:$0x1] %vm153_vm2, %v2841_v0  ;;  %154 = vst.msk [vmem:[#allocation2] sm:$0x1] %vm153_vm2, %v2841_v0  ;;  %v52_v46 = vld [vmem:[%s4218_s0 + $0xd0] sm:$0xff]  ;;  %v111_v47 = vmax.f32 %v47_v41, %v49_v43  ;;  %v54_v48 = vld [vmem:[%s4218_s0 + $0xe0] sm:$0xff] }
  0x10   :  { %159 = vst.msk [vmem:[#allocation2 + $0x78] sm:$0x1] %vm153_vm2, %v2841_v0  ;;  %160 = vst.msk [vmem:[#allocation2 + $0x90] sm:$0x1] %vm153_vm2, %v2841_v0  ;;  %v56_v49 = vld [vmem:[%s4218_s0 + $0xf0] sm:$0xff]  ;;  %v96_v50 = vmax.f32 %v50_v45, %v52_v46  ;;  %v51_v51 = vld [vmem:[%s4218_s0 + $0xc8] sm:$0xff] }
  0x11   :  { %165 = vst.msk [vmem:[#allocation2 + $0x108] sm:$0x1] %vm153_vm2, %v2841_v0  ;;  %171 = vst.msk [vmem:[#allocation2 + $0x89] sm:$0x1] %vm153_vm2, %v2841_v0  ;;  %v112_v52 = vmax.f32 %v54_v48, %v56_v49  ;;  %v53_v53 = vld [vmem:[%s4218_s0 + $0xd8] sm:$0xff]  ;;  %v55_v54 = vld [vmem:[%s4218_s0 + $0xe8] sm:$0xff]  ;;  %v127_v56 = vmax.f32 %v95_v44, %v111_v47 }
  0x12   :  { %172 = vst.msk [vmem:[#allocation2 + $0xa1] sm:$0x1] %vm153_vm2, %v2841_v0  ;;  %177 = vst.msk [vmem:[#allocation2 + $0x119] sm:$0x1] %vm153_vm2, %v2841_v0  ;;  %v57_v55 = vld [vmem:[%s4218_s0 + $0xf8] sm:$0xff]  ;;  %262 = vrot.lane.b32.xlu0 %v229_v36, %s2843_s21  ;;  %v97_v57 = vmax.f32 %v51_v51, %v53_v53  ;;  %v197_v61 = vld [vmem:[#allocation2 + $0x8] sm:$0xff] }
  0x13   :  { %180 = vst.msk [vmem:[#allocation2 + $0x19] sm:$0xff] %vm179_vm3, %v122_v22  ;;  %181 = vst.msk [vmem:[#allocation2 + $0x21] sm:$0xff] %vm179_vm3, %v123_v23  ;;  %v113_v58 = vmax.f32 %v55_v54, %v57_v55  ;;  %v128_v60 = vmax.f32 %v96_v50, %v112_v52  ;;  %v58_v5 = vld [vmem:[%s4218_s0 + $0x100] sm:$0xff]  ;;  %v60_v6 = vld [vmem:[%s4218_s0 + $0x110] sm:$0xff]  ;;  %vm308_vm5 = vcmask 64544   ;;  %vm405_vm6 = vcmask 97344  }
  0x14   :  { %182 = vst.msk [vmem:[#allocation2 + $0x31] sm:$0xff] %vm179_vm3, %v124_v28  ;;  %183 = vst.msk [vmem:[#allocation2 + $0x39] sm:$0xff] %vm179_vm3, %v125_v39  ;;  %v62_v7 = vld [vmem:[%s4218_s0 + $0x120] sm:$0xff]  ;;  %v64_v8 = vld [vmem:[%s4218_s0 + $0x130] sm:$0xff]  ;;  %v98_v9 = vmax.f32 %v58_v5, %v60_v6  ;;  %vm502_vm7 = vcmask 130144   ;;  %vm599_vm8 = vcmask 162944  }
  0x15   :  { %184 = vst.msk [vmem:[#allocation2 + $0x49] sm:$0xff] %vm179_vm3, %v126_v42  ;;  %185 = vst.msk [vmem:[#allocation2 + $0x51] sm:$0xff] %vm179_vm3, %v127_v56  ;;  %v129_v0 = vmax.f32 %v97_v57, %v113_v58  ;;  %v114_v13 = vmax.f32 %v62_v7, %v64_v8  ;;  %v59_v15 = vld [vmem:[%s4218_s0 + $0x108] sm:$0xff]  ;;  %v61_v16 = vld [vmem:[%s4218_s0 + $0x118] sm:$0xff]  ;;  %vm696_vm9 = vcmask 195744   ;;  %vm794_vm10 = vcmask 228544  }
  0x16   :  { %v326_v38 = vld [vmem:[#allocation2 + $0xa] sm:$0xff]  ;;  %v196_v59 = vld [vmem:[#allocation2] sm:$0xff]  ;;  %213 = vst.msk [vmem:[#allocation3 + $0x8] sm:$0xff] %vm179_vm3, %v197_v61  ;;  %186 = vst.msk [vmem:[#allocation2 + $0x61] sm:$0xff] %vm179_vm3, %v128_v60  ;;  %v99_v19 = vmax.f32 %v59_v15, %v61_v16  ;;  %vm891_vm11 = vcmask 261344   ;;  %vm988_vm12 = vcmask 294144  }
  0x17   :  { %359 = vrot.lane.b32.xlu1 %v326_v38, %s2842_s20  ;;  %212 = vst.msk [vmem:[#allocation3] sm:$0xff] %vm179_vm3, %v196_v59  ;;  %187 = vst.msk [vmem:[#allocation2 + $0x69] sm:$0xff] %vm179_vm3, %v129_v0  ;;  %v130_v14 = vmax.f32 %v98_v9, %v114_v13  ;;  %v63_v17 = vld [vmem:[%s4218_s0 + $0x128] sm:$0xff]  ;;  %v65_v18 = vld [vmem:[%s4218_s0 + $0x138] sm:$0xff]  ;;  %vm1026_vm13 = vcmask 293888   ;;  %vm1525_vm14 = vcmask 130112  }
  0x18   :  { %v115_v20 = vmax.f32 %v63_v17, %v65_v18  ;;  %v66_v21 = vld [vmem:[%s4218_s0 + $0x140] sm:$0xff]  ;;  %v68_v22 = vld [vmem:[%s4218_s0 + $0x150] sm:$0xff]  ;;  %v67_v28 = vld [vmem:[%s4218_s0 + $0x148] sm:$0xff]  ;;  %vm1622_vm15 = vcmask 195712   ;;  %vm1719_vm1 = vcmask 261312   ;;  %vm1816_vm2 = vcmask 326912  }
  0x19   :  { %188 = vst.msk [vmem:[#allocation2 + $0xa9] sm:$0xff] %vm179_vm3, %v130_v14  ;;  %v70_v23 = vld [vmem:[%s4218_s0 + $0x160] sm:$0xff]  ;;  %v72_v24 = vld [vmem:[%s4218_s0 + $0x170] sm:$0xff]  ;;  %v100_v26 = vmax.f32 %v66_v21, %v68_v22  ;;  %v69_v29 = vld [vmem:[%s4218_s0 + $0x158] sm:$0xff] }
  0x1a   :  { %v423_v62 = vld [vmem:[#allocation2 + $0x20] sm:$0xff]  ;;  %v422_v63 = vld [vmem:[#allocation2 + $0x18] sm:$0xff]  ;;  %v131_v25 = vmax.f32 %v99_v19, %v115_v20  ;;  %v116_v27 = vmax.f32 %v70_v23, %v72_v24  ;;  %v71_v31 = vld [vmem:[%s4218_s0 + $0x168] sm:$0xff]  ;;  %v101_v33 = vmax.f32 %v67_v28, %v69_v29 }
  0x1b   :  { %214 = vst.msk [vmem:[#allocation3 + $0x10] sm:$0xff] %vm179_vm3, %v422_v63  ;;  %215 = vst.msk [vmem:[#allocation3 + $0x18] sm:$0xff] %vm179_vm3, %v423_v62  ;;  %456 = vrot.lane.b32.xlu1 %v423_v62, %s2844_s23  ;;  %454 = vrot.lane.b32.xlu0 %v422_v63, %s2844_s23  ;;  %v714_v1 = vld [vmem:[#allocation2 + $0x30] sm:$0xff]  ;;  %v519_v2 = vld [vmem:[#allocation2 + $0x19] sm:$0xff] }
  0x1c   :  { %v3040_v3 = vld [vmem:[#allocation2 + $0x38] sm:$0xff]  ;;  %216 = vst.msk [vmem:[#allocation3 + $0x20] sm:$0xff] %vm179_vm3, %v714_v1  ;;  %v3043_v4 = vld [vmem:[#allocation2 + $0x48] sm:$0xff]  ;;  %v3063_v12 = vld [vmem:[#allocation2 + $0x50] sm:$0xff]  ;;  %v132_v34 = vmax.f32 %v100_v26, %v116_v27 }
  0x1d   :  { %217 = vst.msk [vmem:[#allocation3 + $0x28] sm:$0xff] %vm179_vm3, %v3040_v3  ;;  %218 = vst.msk [vmem:[#allocation3 + $0x30] sm:$0xff] %vm179_vm3, %v3043_v4  ;;  %v520_v10 = vld [vmem:[#allocation2 + $0x21] sm:$0xff]  ;;  %v73_v32 = vld [vmem:[%s4218_s0 + $0x178] sm:$0xff] }
  0x1e   :  { %v616_v11 = vld [vmem:[#allocation2 + $0x1a] sm:$0xff]  ;;  %219 = vst.msk [vmem:[#allocation3 + $0x38] sm:$0xff] %vm179_vm3, %v3063_v12  ;;  %v617_v30 = vld [vmem:[#allocation2 + $0x22] sm:$0xff]  ;;  %189 = vst.msk [vmem:[#allocation2 + $0xb1] sm:$0xff] %vm179_vm3, %v131_v25  ;;  %v117_v35 = vmax.f32 %v71_v31, %v73_v32 }
  0x1f   :  { %551 = vrot.lane.b32.xlu0 %v519_v2, %s2845_s30  ;;  %264 = vrot.lane.b32.xlu1 %v519_v2, %s2843_s21  ;;  %190 = vst.msk [vmem:[#allocation2 + $0xc1] sm:$0xff] %vm179_vm3, %v132_v34  ;;  %v811_v38 = vld [vmem:[#allocation2 + $0x31] sm:$0xff]  ;;  %v1021_v40 = vld [vmem:[%s4219_s1] sm:$0xff]  ;;  %v1022_v41 = vld [vmem:[%s4219_s1 + $0x8] sm:$0xff] }
  0x20   :  { %v3111_v36 = vld [vmem:[#allocation2 + $0xa8] sm:$0xff]  ;;  %v133_v37 = vmax.f32 %v101_v33, %v117_v35  ;;  %v2790_v43 = vpack.c.bf16 %v1022_v41, %v1021_v40  ;;  %v1023_v45 = vld [vmem:[%s4219_s1 + $0x10] sm:$0xff]  ;;  %v1024_v46 = vld [vmem:[%s4219_s1 + $0x18] sm:$0xff] }
  0x21   :  { %222 = vst.msk [vmem:[#allocation3 + $0x50] sm:$0xff] %vm179_vm3, %v3111_v36  ;;  %v2794_v47 = vpack.c.bf16 %v1024_v46, %v1023_v45  ;;  %v812_v48 = vld [vmem:[#allocation2 + $0x39] sm:$0xff]  ;;  %v76_v52 = vld [vmem:[%s4218_s0 + $0x190] sm:$0xff]  ;;  %v75_v59 = vld [vmem:[%s4218_s0 + $0x188] sm:$0xff] }
  0x22   :  { %191 = vst.msk [vmem:[#allocation2 + $0xc9] sm:$0xff] %vm179_vm3, %v133_v37  ;;  %2791 = vmatprep.subr.bf16.mxu0 %v2790_v43  ;;  %v908_v49 = vld [vmem:[#allocation2 + $0x32] sm:$0xff]  ;;  %v1025_v50 = vld [vmem:[%s4219_s1 + $0x20] sm:$0xf]  ;;  %v79_v61 = vld [vmem:[%s4218_s0 + $0x1a8] sm:$0xff] }
  0x23   :  { %553 = vrot.lane.b32.xlu0 %v520_v10, %s2845_s30  ;;  %648 = vrot.lane.b32.xlu1 %v616_v11, %s2846_s10  ;;  %v74_v51 = vld [vmem:[%s4218_s0 + $0x180] sm:$0xff]  ;;  %v80_v54 = vld [vmem:[%s4218_s0 + $0x1b0] sm:$0xff]  ;;  %v719_v24 = vld [vmem:[#allocation2 + $0x68] sm:$0xff] }
  0x24   :  { %2793 = vmatpush3.bf16.msra.mxu0 %v2790_v43  ;;  %v78_v53 = vld [vmem:[%s4218_s0 + $0x1a0] sm:$0xff]  ;;  %v102_v55 = vmax.f32 %v74_v51, %v76_v52  ;;  %v77_v60 = vld [vmem:[%s4218_s0 + $0x198] sm:$0xff]  ;;  %v910_v7 = vld [vmem:[#allocation2 + $0x4a] sm:$0xff] }
  0x25   :  { %v3119_v39 = vld [vmem:[#allocation2 + $0xb0] sm:$0xff]  ;;  %2795 = vmatprep.subr.bf16.mxu0 %v2794_v47  ;;  %v909_v56 = vld [vmem:[#allocation2 + $0x3a] sm:$0xff]  ;;  %v118_v57 = vmax.f32 %v78_v53, %v80_v54  ;;  %v103_v63 = vmax.f32 %v75_v59, %v77_v60  ;;  %v83_v15 = vld [vmem:[%s4218_s0 + $0x1c8] sm:$0xff] }
  0x26   :  { %223 = vst.msk [vmem:[#allocation3 + $0x58] sm:$0xff] %vm179_vm3, %v3119_v39  ;;  %v3129_v42 = vld [vmem:[#allocation2 + $0xc0] sm:$0xff]  ;;  %v81_v62 = vld [vmem:[%s4218_s0 + $0x1b8] sm:$0xff]  ;;  %v84_v8 = vld [vmem:[%s4218_s0 + $0x1d0] sm:$0xff] }
  0x27   :  { %266 = vrot.lane.b32.xlu0 %v520_v10, %s2843_s21  ;;  %361 = vrot.lane.b32.xlu1 %v616_v11, %s2842_s20  ;;  %224 = vst.msk [vmem:[#allocation3 + $0x60] sm:$0xff] %vm179_vm3, %v3129_v42  ;;  %v134_v58 = vmax.f32 %v102_v55, %v118_v57  ;;  %v119_v0 = vmax.f32 %v79_v61, %v81_v62  ;;  %v814_v6 = vld [vmem:[#allocation2 + $0x51] sm:$0xff]  ;;  %v86_v10 = vld [vmem:[%s4218_s0 + $0x1e0] sm:$0xff]  ;;  %v87_v17 = vld [vmem:[%s4218_s0 + $0x1e8] sm:$0xff] }
  0x28   :  { %2797 = vmatpush3.bf16.msra.mxu0 %v2794_v47  ;;  %v911_v9 = vld [vmem:[#allocation2 + $0x52] sm:$0xff]  ;;  %v718_v20 = vld [vmem:[#allocation2 + $0x60] sm:$0xff]  ;;  %v816_v27 = vld [vmem:[#allocation2 + $0x69] sm:$0xff] }
  0x29   :  { %v3136_v44 = vld [vmem:[#allocation2 + $0xc8] sm:$0xff]  ;;  %2722 = vmatprep.subr.msk.mxu0 %vm1075_vm4, %v1025_v50  ;;  %192 = vst.msk [vmem:[#allocation2 + $0xd9] sm:$0xff] %vm179_vm3, %v134_v58  ;;  %v88_v11 = vld [vmem:[%s4218_s0 + $0x1f0] sm:$0xff]  ;;  %v85_v16 = vld [vmem:[%s4218_s0 + $0x1d8] sm:$0xff] }
  0x2a   :  { %225 = vst.msk [vmem:[#allocation3 + $0x68] sm:$0xff] %vm179_vm3, %v3136_v44  ;;  %v120_v13 = vmax.f32 %v86_v10, %v88_v11  ;;  %v89_v18 = vld [vmem:[%s4218_s0 + $0x1f8] sm:$0xff]  ;;  %v105_v19 = vmax.f32 %v83_v15, %v85_v16  ;;  %v204_v23 = vld [vmem:[#allocation2 + $0x90] sm:$0xff]  ;;  %v815_v25 = vld [vmem:[#allocation2 + $0x61] sm:$0xff] }
  0x2b   :  { %650 = vrot.lane.b32.xlu0 %v617_v30, %s2846_s10  ;;  %746 = vrot.lane.b32.xlu1 %v714_v1, %s2847_s17  ;;  %v121_v21 = vmax.f32 %v87_v17, %v89_v18  ;;  %220 = vst.msk [vmem:[#allocation3 + $0x40] sm:$0xff] %vm179_vm3, %v204_v23  ;;  %v205_v26 = vld [vmem:[#allocation2 + $0x98] sm:$0xff]  ;;  %v912_v28 = vld [vmem:[#allocation2 + $0x62] sm:$0xff] }
  0x2c   :  { %2723 = vmatpush3.msk.msra.mxu0 %vm1075_vm4, %v1025_v50  ;;  %221 = vst.msk [vmem:[#allocation3 + $0x48] sm:$0xff] %vm179_vm3, %v205_v26  ;;  %v236_v29 = vld [vmem:[#allocation2 + $0x91] sm:$0xff]  ;;  %v237_v31 = vld [vmem:[#allocation2 + $0x99] sm:$0xff]  ;;  %v915_v58 = vld [vmem:[#allocation2 + $0x82] sm:$0xff]  ;;  %vm2010_vm4 = vcmask 458112  }
  0x2d   :  { %v137_v22 = vmax.f32 %v105_v19, %v121_v21  ;;  %v333_v32 = vld [vmem:[#allocation2 + $0x92] sm:$0xff]  ;;  %v334_v40 = vld [vmem:[#allocation2 + $0x9a] sm:$0xff] }
  0x2e   :  { %v720_v35 = vld [vmem:[#allocation2 + $0x78] sm:$0xff]  ;;  %v721_v45 = vld [vmem:[#allocation2 + $0x80] sm:$0xff] }
  0x2f   :  { %363 = vrot.lane.b32.xlu0 %v617_v30, %s2842_s20  ;;  %458 = vrot.lane.b32.xlu1 %v714_v1, %s2844_s23  ;;  %v135_v1 = vmax.f32 %v103_v63, %v119_v0  ;;  %195 = vst.msk [vmem:[#allocation2 + $0xf9] sm:$0xff] %vm179_vm3, %v137_v22  ;;  %v913_v30 = vld [vmem:[#allocation2 + $0x6a] sm:$0xff]  ;;  %v817_v46 = vld [vmem:[#allocation2 + $0x79] sm:$0xff] }
  0x30   :  { %v3188_v2 = vld [vmem:[#allocation2 + $0xd8] sm:$0xff] }
  0x31   :  { %193 = vst.msk [vmem:[#allocation2 + $0xe1] sm:$0xff] %vm179_vm3, %v135_v1  ;;  %226 = vst.msk [vmem:[#allocation3 + $0x70] sm:$0xff] %vm179_vm3, %v3188_v2  ;;  %v914_v52 = vld [vmem:[#allocation2 + $0x7a] sm:$0xff]  ;;  %v528_v55 = vld [vmem:[#allocation2 + $0xb1] sm:$0xff] }
  0x32   :  { %v625_v63 = vld [vmem:[#allocation2 + $0xb2] sm:$0xff] }
  0x33   :  { %748 = vrot.lane.b32.xlu0 %v3040_v3, %s2847_s17  ;;  %843 = vrot.lane.b32.xlu1 %v811_v38, %s2848_s25  ;;  %v821_v26 = vld [vmem:[#allocation2 + $0xd9] sm:$0xff] }
  0x37   :  { %460 = vrot.lane.b32.xlu0 %v3040_v3, %s2844_s23  ;;  %555 = vrot.lane.b32.xlu1 %v811_v38, %s2845_s30  ;;  %v813_v3 = vld [vmem:[#allocation2 + $0x49] sm:$0xff] }
  0x38   :  { %v3199_v5 = vld [vmem:[#allocation2 + $0xe0] sm:$0xff] }
  0x39   :  { %227 = vst.msk [vmem:[#allocation3 + $0x78] sm:$0xff] %vm179_vm3, %v3199_v5 }
  0x3b   :  { %845 = vrot.lane.b32.xlu0 %v812_v48, %s2848_s25  ;;  %940 = vrot.lane.b32.xlu1 %v908_v49, %s2849_s8 }
  0x3f   :  { %268 = vrot.lane.b32.xlu0 %v811_v38, %s2843_s21  ;;  %557 = vrot.lane.b32.xlu1 %v812_v48, %s2845_s30 }
  0x43   :  { %652 = vrot.lane.b32.xlu0 %v908_v49, %s2846_s10  ;;  %942 = vrot.lane.b32.xlu1 %v909_v56, %s2849_s8 }
  0x47   :  { %270 = vrot.lane.b32.xlu0 %v812_v48, %s2843_s21  ;;  %365 = vrot.lane.b32.xlu1 %v908_v49, %s2842_s20  ;;  %v527_v49 = vld [vmem:[#allocation2 + $0xa9] sm:$0xff] }
  0x4b   :  { %654 = vrot.lane.b32.xlu0 %v909_v56, %s2846_s10  ;;  %750 = vrot.lane.b32.xlu1 %v3043_v4, %s2847_s17 }
  0x4f   :  { %367 = vrot.lane.b32.xlu0 %v909_v56, %s2842_s20  ;;  %462 = vrot.lane.b32.xlu1 %v3043_v4, %s2844_s23  ;;  %v82_v4 = vld [vmem:[%s4218_s0 + $0x1c0] sm:$0xff]  ;;  %s2850_s0 = smov 48  }
  0x53   :  { %752 = vrot.lane.b32.xlu0 %v3063_v12, %s2847_s17  ;;  %847 = vrot.lane.b32.xlu1 %v813_v3, %s2848_s25 }
  0x57   :  { %464 = vrot.lane.b32.xlu0 %v3063_v12, %s2844_s23  ;;  %559 = vrot.lane.b32.xlu1 %v813_v3, %s2845_s30  ;;  %v104_v12 = vmax.f32 %v82_v4, %v84_v8 }
  0x59   :  { %v136_v14 = vmax.f32 %v104_v12, %v120_v13  ;;  %v916_v12 = vld [vmem:[#allocation2 + $0xc2] sm:$0xff] }
  0x5b   :  { %849 = vrot.lane.b32.xlu0 %v814_v6, %s2848_s25  ;;  %944 = vrot.lane.b32.xlu1 %v910_v7, %s2849_s8  ;;  %194 = vst.msk [vmem:[#allocation2 + $0xf1] sm:$0xff] %vm179_vm3, %v136_v14  ;;  %vm1913_vm3 = vcmask 392512  }
  0x5f   :  { %272 = vrot.lane.b32.xlu0 %v813_v3, %s2843_s21  ;;  %561 = vrot.lane.b32.xlu1 %v814_v6, %s2845_s30 }
  0x63   :  { %656 = vrot.lane.b32.xlu0 %v910_v7, %s2846_s10  ;;  %946 = vrot.lane.b32.xlu1 %v911_v9, %s2849_s8 }
  0x67   :  { %274 = vrot.lane.b32.xlu0 %v814_v6, %s2843_s21  ;;  %369 = vrot.lane.b32.xlu1 %v910_v7, %s2842_s20  ;;  %v819_v7 = vld [vmem:[#allocation2 + $0xc1] sm:$0xff] }
  0x6b   :  { %658 = vrot.lane.b32.xlu0 %v911_v9, %s2846_s10  ;;  %754 = vrot.lane.b32.xlu1 %v718_v20, %s2847_s17 }
  0x6f   :  { %371 = vrot.lane.b32.xlu0 %v911_v9, %s2842_s20  ;;  %466 = vrot.lane.b32.xlu1 %v718_v20, %s2844_s23 }
  0x73   :  { %756 = vrot.lane.b32.xlu0 %v719_v24, %s2847_s17  ;;  %851 = vrot.lane.b32.xlu1 %v815_v25, %s2848_s25 }
  0x77   :  { %468 = vrot.lane.b32.xlu0 %v719_v24, %s2844_s23  ;;  %563 = vrot.lane.b32.xlu1 %v815_v25, %s2845_s30 }
  0x7b   :  { %853 = vrot.lane.b32.xlu0 %v816_v27, %s2848_s25  ;;  %948 = vrot.lane.b32.xlu1 %v912_v28, %s2849_s8 }
  0x7f   :  { %276 = vrot.lane.b32.xlu0 %v236_v29, %s2843_s21  ;;  %565 = vrot.lane.b32.xlu1 %v816_v27, %s2845_s30  ;;  %v358_v33 = vpop.permute.xlu1 %357 }
  0x80   :  { %v261_v34 = vpop.permute.xlu0 %260 }
  0x81   :  { %309 = vst.msk [vmem:[#allocation3] sm:$0xff] %vm308_vm5, %v261_v34 }
  0x82   :  { %406 = vst.msk [vmem:[#allocation3] sm:$0xff] %vm405_vm6, %v358_v33 }
  0x83   :  { %660 = vrot.lane.b32.xlu0 %v912_v28, %s2846_s10  ;;  %950 = vrot.lane.b32.xlu1 %v913_v30, %s2849_s8 }
  0x84   :  { %v263_v38 = vpop.permute.xlu0 %262 }
  0x85   :  { %310 = vst.msk [vmem:[#allocation3 + $0x8] sm:$0xff] %vm308_vm5, %v263_v38 }
  0x87   :  { %278 = vrot.lane.b32.xlu0 %v237_v31, %s2843_s21  ;;  %373 = vrot.lane.b32.xlu1 %v333_v32, %s2842_s20  ;;  %v918_v32 = vld [vmem:[#allocation2 + $0xda] sm:$0xff] }
  0x89   :  { %v360_v37 = vpop.permute.xlu1 %359 }
  0x8a   :  { %407 = vst.msk [vmem:[#allocation3 + $0x8] sm:$0xff] %vm405_vm6, %v360_v37 }
  0x8b   :  { %662 = vrot.lane.b32.xlu0 %v913_v30, %s2846_s10  ;;  %758 = vrot.lane.b32.xlu1 %v720_v35, %s2847_s17 }
  0x8d   :  { %v457_v41 = vpop.permute.xlu1 %456  ;;  %v455_v43 = vpop.permute.xlu0 %454 }
  0x8e   :  { %504 = vst.msk [vmem:[#allocation3 + $0x8] sm:$0xff] %vm502_vm7, %v457_v41  ;;  %503 = vst.msk [vmem:[#allocation3] sm:$0xff] %vm502_vm7, %v455_v43 }
  0x8f   :  { %375 = vrot.lane.b32.xlu0 %v334_v40, %s2842_s20  ;;  %470 = vrot.lane.b32.xlu1 %v3111_v36, %s2844_s23  ;;  %v818_v36 = vld [vmem:[#allocation2 + $0x81] sm:$0xff] }
  0x91   :  { %v552_v47 = vpop.permute.xlu0 %551  ;;  %v265_v48 = vpop.permute.xlu1 %264 }
  0x92   :  { %600 = vst.msk [vmem:[#allocation3] sm:$0xff] %vm599_vm8, %v552_v47 }
  0x93   :  { %311 = vst.msk [vmem:[#allocation3 + $0x10] sm:$0xff] %vm308_vm5, %v265_v48  ;;  %760 = vrot.lane.b32.xlu0 %v721_v45, %s2847_s17  ;;  %855 = vrot.lane.b32.xlu1 %v817_v46, %s2848_s25  ;;  %v726_v46 = vld [vmem:[#allocation2 + $0xf0] sm:$0xff] }
  0x95   :  { %v554_v50 = vpop.permute.xlu0 %553  ;;  %v649_v51 = vpop.permute.xlu1 %648 }
  0x96   :  { %601 = vst.msk [vmem:[#allocation3 + $0x8] sm:$0xff] %vm599_vm8, %v554_v50 }
  0x97   :  { %697 = vst.msk [vmem:[#allocation3] sm:$0xff] %vm696_vm9, %v649_v51  ;;  %472 = vrot.lane.b32.xlu0 %v3119_v39, %s2844_s23  ;;  %567 = vrot.lane.b32.xlu1 %v527_v49, %s2845_s30  ;;  %v624_v39 = vld [vmem:[#allocation2 + $0xaa] sm:$0xff]  ;;  %v727_v51 = vld [vmem:[#allocation2 + $0xf8] sm:$0xff] }
  0x99   :  { %v267_v53 = vpop.permute.xlu0 %266  ;;  %v362_v54 = vpop.permute.xlu1 %361 }
  0x9a   :  { %312 = vst.msk [vmem:[#allocation3 + $0x18] sm:$0xff] %vm308_vm5, %v267_v53 }
  0x9b   :  { %408 = vst.msk [vmem:[#allocation3 + $0x10] sm:$0xff] %vm405_vm6, %v362_v54  ;;  %857 = vrot.lane.b32.xlu0 %v818_v36, %s2848_s25  ;;  %952 = vrot.lane.b32.xlu1 %v914_v52, %s2849_s8  ;;  %v823_v36 = vld [vmem:[#allocation2 + $0xf1] sm:$0xff] }
  0x9d   :  { %v651_v56 = vpop.permute.xlu0 %650  ;;  %v747_v57 = vpop.permute.xlu1 %746 }
  0x9e   :  { %698 = vst.msk [vmem:[#allocation3 + $0x8] sm:$0xff] %vm696_vm9, %v651_v56 }
  0x9f   :  { %795 = vst.msk [vmem:[#allocation3] sm:$0xff] %vm794_vm10, %v747_v57  ;;  %280 = vrot.lane.b32.xlu0 %v527_v49, %s2843_s21  ;;  %569 = vrot.lane.b32.xlu1 %v528_v55, %s2845_s30  ;;  %v824_v57 = vld [vmem:[#allocation2 + $0xf9] sm:$0xff] }
  0xa1   :  { %v364_v59 = vpop.permute.xlu0 %363  ;;  %v459_v60 = vpop.permute.xlu1 %458 }
  0xa2   :  { %409 = vst.msk [vmem:[#allocation3 + $0x18] sm:$0xff] %vm405_vm6, %v364_v59 }
  0xa3   :  { %505 = vst.msk [vmem:[#allocation3 + $0x10] sm:$0xff] %vm502_vm7, %v459_v60  ;;  %664 = vrot.lane.b32.xlu0 %v624_v39, %s2846_s10  ;;  %954 = vrot.lane.b32.xlu1 %v915_v58, %s2849_s8 }
  0xa5   :  { %v749_v61 = vpop.permute.xlu0 %748  ;;  %v844_v62 = vpop.permute.xlu1 %843 }
  0xa6   :  { %796 = vst.msk [vmem:[#allocation3 + $0x8] sm:$0xff] %vm794_vm10, %v749_v61 }
  0xa7   :  { %892 = vst.msk [vmem:[#allocation3] sm:$0xff] %vm891_vm11, %v844_v62  ;;  %282 = vrot.lane.b32.xlu0 %v528_v55, %s2843_s21  ;;  %377 = vrot.lane.b32.xlu1 %v624_v39, %s2842_s20  ;;  %v920_v39 = vld [vmem:[#allocation2 + $0xf2] sm:$0xff] }
  0xa9   :  { %v461_v0 = vpop.permute.xlu0 %460  ;;  %v556_v1 = vpop.permute.xlu1 %555 }
  0xaa   :  { %506 = vst.msk [vmem:[#allocation3 + $0x18] sm:$0xff] %vm502_vm7, %v461_v0 }
  0xab   :  { %602 = vst.msk [vmem:[#allocation3 + $0x10] sm:$0xff] %vm599_vm8, %v556_v1  ;;  %666 = vrot.lane.b32.xlu0 %v625_v63, %s2846_s10  ;;  %762 = vrot.lane.b32.xlu1 %v3129_v42, %s2847_s17 }
  0xad   :  { %v846_v3 = vpop.permute.xlu0 %845  ;;  %v941_v6 = vpop.permute.xlu1 %940 }
  0xae   :  { %893 = vst.msk [vmem:[#allocation3 + $0x8] sm:$0xff] %vm891_vm11, %v846_v3  ;;  %v728_v3 = vld [vmem:[#allocation2 + $0x108] sm:$0xff] }
  0xaf   :  { %989 = vst.msk [vmem:[#allocation3] sm:$0xff] %vm988_vm12, %v941_v6  ;;  %379 = vrot.lane.b32.xlu0 %v625_v63, %s2842_s20  ;;  %474 = vrot.lane.b32.xlu1 %v3129_v42, %s2844_s23  ;;  %v820_v42 = vld [vmem:[#allocation2 + $0xc9] sm:$0xff]  ;;  %v921_v63 = vld [vmem:[#allocation2 + $0xfa] sm:$0xff] }
  0xb0   :  { %v729_v6 = vld [vmem:[#allocation2 + $0x110] sm:$0xff] }
  0xb1   :  { %v269_v4 = vpop.permute.xlu0 %268  ;;  %v558_v8 = vpop.permute.xlu1 %557 }
  0xb2   :  { %313 = vst.msk [vmem:[#allocation3 + $0x20] sm:$0xff] %vm308_vm5, %v269_v4 }
  0xb3   :  { %603 = vst.msk [vmem:[#allocation3 + $0x18] sm:$0xff] %vm599_vm8, %v558_v8  ;;  %764 = vrot.lane.b32.xlu0 %v3136_v44, %s2847_s17  ;;  %859 = vrot.lane.b32.xlu1 %v819_v7, %s2848_s25  ;;  %v825_v8 = vld [vmem:[#allocation2 + $0x109] sm:$0xff] }
  0xb5   :  { %v653_v9 = vpop.permute.xlu0 %652  ;;  %v943_v10 = vpop.permute.xlu1 %942 }
  0xb6   :  { %v1005_v11 = vld [vmem:[#allocation3] sm:$0xff]  ;;  %699 = vst.msk [vmem:[#allocation3 + $0x10] sm:$0xff] %vm696_vm9, %v653_v9  ;;  %v826_v9 = vld [vmem:[#allocation2 + $0x111] sm:$0xff] }
  0xb7   :  { %990 = vst.msk [vmem:[#allocation3 + $0x8] sm:$0xff] %vm988_vm12, %v943_v10  ;;  %2724 = vmatprep.mubr.msk.f32.mxu0 %vm1026_vm13, %v1005_v11  ;;  %476 = vrot.lane.b32.xlu0 %v3136_v44, %s2844_s23  ;;  %v917_v44 = vld [vmem:[#allocation2 + $0xca] sm:$0xff] }
  0xb8   :  { %571 = vrot.lane.b32.xlu1 %v819_v7, %s2845_s30 }
  0xb9   :  { %v271_v13 = vpop.permute.xlu0 %270  ;;  %v366_v14 = vpop.permute.xlu1 %365 }
  0xba   :  { %314 = vst.msk [vmem:[#allocation3 + $0x28] sm:$0xff] %vm308_vm5, %v271_v13 }
  0xbb   :  { %410 = vst.msk [vmem:[#allocation3 + $0x20] sm:$0xff] %vm405_vm6, %v366_v14  ;;  %861 = vrot.lane.b32.xlu0 %v820_v42, %s2848_s25 }
  0xbc   :  { %956 = vrot.lane.b32.xlu1 %v916_v12, %s2849_s8 }
  0xbd   :  { %v655_v15 = vpop.permute.xlu0 %654  ;;  %v751_v16 = vpop.permute.xlu1 %750 }
  0xbe   :  { %v1006_v17 = vld [vmem:[#allocation3 + $0x8] sm:$0xff]  ;;  %700 = vst.msk [vmem:[#allocation3 + $0x18] sm:$0xff] %vm696_vm9, %v655_v15 }
  0xbf   :  { %797 = vst.msk [vmem:[#allocation3 + $0x10] sm:$0xff] %vm794_vm10, %v751_v16  ;;  %2725 = vmatmul.mubr.msk.f32.vlgmr.msra.gmra.mrb[0].mxu0 %vm1026_vm13, %v1006_v17  ;;  %284 = vrot.lane.b32.xlu0 %v819_v7, %s2843_s21 }
  0xc0   :  { %573 = vrot.lane.b32.xlu1 %v820_v42, %s2845_s30 }
  0xc1   :  { %v368_v18 = vpop.permute.xlu0 %367  ;;  %v463_v19 = vpop.permute.xlu1 %462 }
  0xc2   :  { %411 = vst.msk [vmem:[#allocation3 + $0x28] sm:$0xff] %vm405_vm6, %v368_v18 }
  0xc3   :  { %507 = vst.msk [vmem:[#allocation3 + $0x20] sm:$0xff] %vm502_vm7, %v463_v19  ;;  %668 = vrot.lane.b32.xlu0 %v916_v12, %s2846_s10 }
  0xc4   :  { %958 = vrot.lane.b32.xlu1 %v917_v44, %s2849_s8 }
  0xc5   :  { %v753_v20 = vpop.permute.xlu0 %752  ;;  %v848_v21 = vpop.permute.xlu1 %847 }
  0xc6   :  { %798 = vst.msk [vmem:[#allocation3 + $0x18] sm:$0xff] %vm794_vm10, %v753_v20 }
  0xc7   :  { %894 = vst.msk [vmem:[#allocation3 + $0x10] sm:$0xff] %vm891_vm11, %v848_v21  ;;  %286 = vrot.lane.b32.xlu0 %v820_v42, %s2843_s21  ;;  %v922_v42 = vld [vmem:[#allocation2 + $0x10a] sm:$0xff] }
  0xc8   :  { %381 = vrot.lane.b32.xlu1 %v916_v12, %s2842_s20  ;;  %v923_v12 = vld [vmem:[#allocation2 + $0x112] sm:$0xff] }
  0xc9   :  { %v465_v22 = vpop.permute.xlu0 %464  ;;  %v560_v23 = vpop.permute.xlu1 %559 }
  0xca   :  { %508 = vst.msk [vmem:[#allocation3 + $0x28] sm:$0xff] %vm502_vm7, %v465_v22 }
  0xcb   :  { %604 = vst.msk [vmem:[#allocation3 + $0x20] sm:$0xff] %vm599_vm8, %v560_v23  ;;  %670 = vrot.lane.b32.xlu0 %v917_v44, %s2846_s10 }
  0xcc   :  { %766 = vrot.lane.b32.xlu1 %v3188_v2, %s2847_s17 }
  0xcd   :  { %v850_v24 = vpop.permute.xlu0 %849  ;;  %v945_v25 = vpop.permute.xlu1 %944 }
  0xce   :  { %895 = vst.msk [vmem:[#allocation3 + $0x18] sm:$0xff] %vm891_vm11, %v850_v24 }
  0xcf   :  { %991 = vst.msk [vmem:[#allocation3 + $0x10] sm:$0xff] %vm988_vm12, %v945_v25  ;;  %383 = vrot.lane.b32.xlu0 %v917_v44, %s2842_s20 }
  0xd0   :  { %478 = vrot.lane.b32.xlu1 %v3188_v2, %s2844_s23  ;;  %v822_v2 = vld [vmem:[#allocation2 + $0xe1] sm:$0xff] }
  0xd1   :  { %v273_v27 = vpop.permute.xlu0 %272  ;;  %v562_v28 = vpop.permute.xlu1 %561 }
  0xd2   :  { %315 = vst.msk [vmem:[#allocation3 + $0x30] sm:$0xff] %vm308_vm5, %v273_v27 }
  0xd3   :  { %605 = vst.msk [vmem:[#allocation3 + $0x28] sm:$0xff] %vm599_vm8, %v562_v28  ;;  %768 = vrot.lane.b32.xlu0 %v3199_v5, %s2847_s17 }
  0xd4   :  { %863 = vrot.lane.b32.xlu1 %v821_v26, %s2848_s25 }
  0xd5   :  { %v657_v29 = vpop.permute.xlu0 %656  ;;  %v947_v30 = vpop.permute.xlu1 %946 }
  0xd6   :  { %v1007_v31 = vld [vmem:[#allocation3 + $0x10] sm:$0xff]  ;;  %701 = vst.msk [vmem:[#allocation3 + $0x20] sm:$0xff] %vm696_vm9, %v657_v29 }
  0xd7   :  { %992 = vst.msk [vmem:[#allocation3 + $0x18] sm:$0xff] %vm988_vm12, %v947_v30  ;;  %2727 = vmatprep.mubr.msk.f32.mxu0 %vm1026_vm13, %v1007_v31  ;;  %480 = vrot.lane.b32.xlu0 %v3199_v5, %s2844_s23  ;;  %v919_v5 = vld [vmem:[#allocation2 + $0xe2] sm:$0xff] }
  0xd8   :  { %575 = vrot.lane.b32.xlu1 %v821_v26, %s2845_s30 }
  0xd9   :  { %v275_v33 = vpop.permute.xlu0 %274  ;;  %v370_v34 = vpop.permute.xlu1 %369 }
  0xda   :  { %316 = vst.msk [vmem:[#allocation3 + $0x38] sm:$0xff] %vm308_vm5, %v275_v33 }
  0xdb   :  { %412 = vst.msk [vmem:[#allocation3 + $0x30] sm:$0xff] %vm405_vm6, %v370_v34  ;;  %865 = vrot.lane.b32.xlu0 %v822_v2, %s2848_s25 }
  0xdc   :  { %960 = vrot.lane.b32.xlu1 %v918_v32, %s2849_s8 }
  0xdd   :  { %v659_v35 = vpop.permute.xlu0 %658  ;;  %v755_v37 = vpop.permute.xlu1 %754 }
  0xde   :  { %v1008_v38 = vld [vmem:[#allocation3 + $0x18] sm:$0xff]  ;;  %702 = vst.msk [vmem:[#allocation3 + $0x28] sm:$0xff] %vm696_vm9, %v659_v35 }
  0xdf   :  { %799 = vst.msk [vmem:[#allocation3 + $0x20] sm:$0xff] %vm794_vm10, %v755_v37  ;;  %2728 = vmatmul.mubr.msk.f32.gmra.mrb[2].mxu0 %vm1026_vm13, %v1008_v38  ;;  %288 = vrot.lane.b32.xlu0 %v821_v26, %s2843_s21 }
  0xe0   :  { %577 = vrot.lane.b32.xlu1 %v822_v2, %s2845_s30 }
  0xe1   :  { %v372_v40 = vpop.permute.xlu0 %371  ;;  %v467_v41 = vpop.permute.xlu1 %466 }
  0xe2   :  { %413 = vst.msk [vmem:[#allocation3 + $0x38] sm:$0xff] %vm405_vm6, %v372_v40 }
  0xe3   :  { %509 = vst.msk [vmem:[#allocation3 + $0x30] sm:$0xff] %vm502_vm7, %v467_v41  ;;  %672 = vrot.lane.b32.xlu0 %v918_v32, %s2846_s10 }
  0xe4   :  { %962 = vrot.lane.b32.xlu1 %v919_v5, %s2849_s8 }
  0xe5   :  { %v757_v43 = vpop.permute.xlu0 %756  ;;  %v852_v45 = vpop.permute.xlu1 %851 }
  0xe6   :  { %800 = vst.msk [vmem:[#allocation3 + $0x28] sm:$0xff] %vm794_vm10, %v757_v43 }
  0xe7   :  { %896 = vst.msk [vmem:[#allocation3 + $0x20] sm:$0xff] %vm891_vm11, %v852_v45  ;;  %290 = vrot.lane.b32.xlu0 %v822_v2, %s2843_s21  ;;  %s2851_s21 = smov 56  }
  0xe8   :  { %385 = vrot.lane.b32.xlu1 %v918_v32, %s2842_s20 }
  0xe9   :  { %v469_v47 = vpop.permute.xlu0 %468  ;;  %v564_v48 = vpop.permute.xlu1 %563 }
  0xea   :  { %510 = vst.msk [vmem:[#allocation3 + $0x38] sm:$0xff] %vm502_vm7, %v469_v47 }
  0xeb   :  { %606 = vst.msk [vmem:[#allocation3 + $0x30] sm:$0xff] %vm599_vm8, %v564_v48  ;;  %674 = vrot.lane.b32.xlu0 %v919_v5, %s2846_s10 }
  0xec   :  { %770 = vrot.lane.b32.xlu1 %v726_v46, %s2847_s17 }
  0xed   :  { %v854_v49 = vpop.permute.xlu0 %853  ;;  %v949_v50 = vpop.permute.xlu1 %948 }
  0xee   :  { %897 = vst.msk [vmem:[#allocation3 + $0x28] sm:$0xff] %vm891_vm11, %v854_v49 }
  0xef   :  { %993 = vst.msk [vmem:[#allocation3 + $0x20] sm:$0xff] %vm988_vm12, %v949_v50  ;;  %387 = vrot.lane.b32.xlu0 %v919_v5, %s2842_s20 }
  0xf0   :  { %482 = vrot.lane.b32.xlu1 %v726_v46, %s2844_s23 }
  0xf1   :  { %v277_v52 = vpop.permute.xlu0 %276  ;;  %v566_v53 = vpop.permute.xlu1 %565 }
  0xf2   :  { %317 = vst.msk [vmem:[#allocation3 + $0x40] sm:$0xff] %vm308_vm5, %v277_v52 }
  0xf3   :  { %607 = vst.msk [vmem:[#allocation3 + $0x38] sm:$0xff] %vm599_vm8, %v566_v53  ;;  %772 = vrot.lane.b32.xlu0 %v727_v51, %s2847_s17 }
  0xf4   :  { %867 = vrot.lane.b32.xlu1 %v823_v36, %s2848_s25 }
  0xf5   :  { %v661_v54 = vpop.permute.xlu0 %660  ;;  %v951_v55 = vpop.permute.xlu1 %950 }
  0xf6   :  { %v1009_v56 = vld [vmem:[#allocation3 + $0x20] sm:$0xff]  ;;  %703 = vst.msk [vmem:[#allocation3 + $0x30] sm:$0xff] %vm696_vm9, %v661_v54 }
  0xf7   :  { %994 = vst.msk [vmem:[#allocation3 + $0x28] sm:$0xff] %vm988_vm12, %v951_v55  ;;  %2730 = vmatprep.mubr.msk.f32.mxu0 %vm1026_vm13, %v1009_v56  ;;  %484 = vrot.lane.b32.xlu0 %v727_v51, %s2844_s23  ;;  %s2852_s23 = smov 64  }
  0xf8   :  { %579 = vrot.lane.b32.xlu1 %v823_v36, %s2845_s30 }
  0xf9   :  { %v279_v58 = vpop.permute.xlu0 %278  ;;  %v374_v59 = vpop.permute.xlu1 %373 }
  0xfa   :  { %318 = vst.msk [vmem:[#allocation3 + $0x48] sm:$0xff] %vm308_vm5, %v279_v58 }
  0xfb   :  { %414 = vst.msk [vmem:[#allocation3 + $0x40] sm:$0xff] %vm405_vm6, %v374_v59  ;;  %869 = vrot.lane.b32.xlu0 %v824_v57, %s2848_s25 }
  0xfc   :  { %964 = vrot.lane.b32.xlu1 %v920_v39, %s2849_s8 }
  0xfd   :  { %v663_v60 = vpop.permute.xlu0 %662  ;;  %v759_v61 = vpop.permute.xlu1 %758 }
  0xfe   :  { %v1010_v62 = vld [vmem:[#allocation3 + $0x28] sm:$0xff]  ;;  %704 = vst.msk [vmem:[#allocation3 + $0x38] sm:$0xff] %vm696_vm9, %v663_v60 }
  0xff   :  { %801 = vst.msk [vmem:[#allocation3 + $0x30] sm:$0xff] %vm794_vm10, %v759_v61  ;;  %2731 = vmatmul.mubr.msk.f32.gmra.mrb[4].mxu0 %vm1026_vm13, %v1010_v62  ;;  %581 = vrot.lane.b32.xlu0 %v824_v57, %s2845_s30 }
 0x100   :  { %676 = vrot.lane.b32.xlu1 %v920_v39, %s2846_s10 }
 0x101   :  { %v376_v0 = vpop.permute.xlu0 %375  ;;  %v471_v1 = vpop.permute.xlu1 %470 }
 0x102   :  { %415 = vst.msk [vmem:[#allocation3 + $0x48] sm:$0xff] %vm405_vm6, %v376_v0 }
 0x103   :  { %511 = vst.msk [vmem:[#allocation3 + $0x40] sm:$0xff] %vm502_vm7, %v471_v1  ;;  %966 = vrot.lane.b32.xlu0 %v921_v63, %s2849_s8 }
 0x104   :  { %678 = vrot.lane.b32.xlu1 %v921_v63, %s2846_s10 }
 0x105   :  { %v761_v7 = vpop.permute.xlu0 %760  ;;  %v856_v4 = vpop.permute.xlu1 %855 }
 0x106   :  { %802 = vst.msk [vmem:[#allocation3 + $0x38] sm:$0xff] %vm794_vm10, %v761_v7 }
 0x107   :  { %898 = vst.msk [vmem:[#allocation3 + $0x30] sm:$0xff] %vm891_vm11, %v856_v4  ;;  %774 = vrot.lane.b32.xlu0 %v728_v3, %s2847_s17 }
 0x108   :  { %776 = vrot.lane.b32.xlu1 %v729_v6, %s2847_s17 }
 0x109   :  { %v473_v10 = vpop.permute.xlu0 %472  ;;  %v568_v11 = vpop.permute.xlu1 %567 }
 0x10a   :  { %512 = vst.msk [vmem:[#allocation3 + $0x48] sm:$0xff] %vm502_vm7, %v473_v10 }
 0x10b   :  { %608 = vst.msk [vmem:[#allocation3 + $0x40] sm:$0xff] %vm599_vm8, %v568_v11  ;;  %871 = vrot.lane.b32.xlu0 %v825_v8, %s2848_s25 }
 0x10c   :  { %873 = vrot.lane.b32.xlu1 %v826_v9, %s2848_s25 }
 0x10d   :  { %v858_v13 = vpop.permute.xlu0 %857  ;;  %v953_v14 = vpop.permute.xlu1 %952 }
 0x10e   :  { %899 = vst.msk [vmem:[#allocation3 + $0x38] sm:$0xff] %vm891_vm11, %v858_v13 }
 0x10f   :  { %995 = vst.msk [vmem:[#allocation3 + $0x30] sm:$0xff] %vm988_vm12, %v953_v14  ;;  %968 = vrot.lane.b32.xlu0 %v922_v42, %s2849_s8 }
 0x110   :  { %970 = vrot.lane.b32.xlu1 %v923_v12, %s2849_s8 }
 0x111   :  { %v281_v15 = vpop.permute.xlu0 %280  ;;  %v570_v16 = vpop.permute.xlu1 %569 }
 0x112   :  { %319 = vst.msk [vmem:[#allocation3 + $0x50] sm:$0xff] %vm308_vm5, %v281_v15 }
 0x113   :  { %609 = vst.msk [vmem:[#allocation3 + $0x48] sm:$0xff] %vm599_vm8, %v570_v16 }
 0x115   :  { %v665_v17 = vpop.permute.xlu0 %664  ;;  %v955_v44 = vpop.permute.xlu1 %954 }
 0x116   :  { %v1011_v18 = vld [vmem:[#allocation3 + $0x30] sm:$0xff]  ;;  %705 = vst.msk [vmem:[#allocation3 + $0x40] sm:$0xff] %vm696_vm9, %v665_v17 }
 0x117   :  { %996 = vst.msk [vmem:[#allocation3 + $0x38] sm:$0xff] %vm988_vm12, %v955_v44  ;;  %2733 = vmatprep.mubr.msk.f32.mxu0 %vm1026_vm13, %v1011_v18 }
 0x119   :  { %v283_v19 = vpop.permute.xlu0 %282  ;;  %v378_v20 = vpop.permute.xlu1 %377 }
 0x11a   :  { %320 = vst.msk [vmem:[#allocation3 + $0x58] sm:$0xff] %vm308_vm5, %v283_v19 }
 0x11b   :  { %416 = vst.msk [vmem:[#allocation3 + $0x50] sm:$0xff] %vm405_vm6, %v378_v20 }
 0x11d   :  { %v667_v21 = vpop.permute.xlu0 %666  ;;  %v763_v22 = vpop.permute.xlu1 %762 }
 0x11e   :  { %v1012_v23 = vld [vmem:[#allocation3 + $0x38] sm:$0xff]  ;;  %706 = vst.msk [vmem:[#allocation3 + $0x48] sm:$0xff] %vm696_vm9, %v667_v21 }
 0x11f   :  { %803 = vst.msk [vmem:[#allocation3 + $0x40] sm:$0xff] %vm794_vm10, %v763_v22  ;;  %2734 = vmatmul.mubr.msk.f32.gmra.mrb[6].mxu0 %vm1026_vm13, %v1012_v23 }
 0x121   :  { %v380_v24 = vpop.permute.xlu0 %379  ;;  %v475_v25 = vpop.permute.xlu1 %474 }
 0x122   :  { %417 = vst.msk [vmem:[#allocation3 + $0x58] sm:$0xff] %vm405_vm6, %v380_v24 }
 0x123   :  { %513 = vst.msk [vmem:[#allocation3 + $0x50] sm:$0xff] %vm502_vm7, %v475_v25 }
 0x125   :  { %v765_v26 = vpop.permute.xlu0 %764  ;;  %v860_v27 = vpop.permute.xlu1 %859 }
 0x126   :  { %804 = vst.msk [vmem:[#allocation3 + $0x48] sm:$0xff] %vm794_vm10, %v765_v26 }
 0x127   :  { %900 = vst.msk [vmem:[#allocation3 + $0x40] sm:$0xff] %vm891_vm11, %v860_v27 }
 0x129   :  { %v477_v28 = vpop.permute.xlu0 %476 }
 0x12a   :  { %v572_v29 = vpop.permute.xlu1 %571  ;;  %514 = vst.msk [vmem:[#allocation3 + $0x58] sm:$0xff] %vm502_vm7, %v477_v28 }
 0x12b   :  { %610 = vst.msk [vmem:[#allocation3 + $0x50] sm:$0xff] %vm599_vm8, %v572_v29 }
 0x12d   :  { %v862_v30 = vpop.permute.xlu0 %861 }
 0x12e   :  { %v957_v31 = vpop.permute.xlu1 %956  ;;  %901 = vst.msk [vmem:[#allocation3 + $0x48] sm:$0xff] %vm891_vm11, %v862_v30 }
 0x12f   :  { %997 = vst.msk [vmem:[#allocation3 + $0x40] sm:$0xff] %vm988_vm12, %v957_v31 }
 0x131   :  { %v285_v2 = vpop.permute.xlu0 %284 }
 0x132   :  { %v574_v32 = vpop.permute.xlu1 %573  ;;  %321 = vst.msk [vmem:[#allocation3 + $0x60] sm:$0xff] %vm308_vm5, %v285_v2 }
 0x133   :  { %611 = vst.msk [vmem:[#allocation3 + $0x58] sm:$0xff] %vm599_vm8, %v574_v32 }
 0x135   :  { %v669_v33 = vpop.permute.xlu0 %668 }
 0x136   :  { %v959_v34 = vpop.permute.xlu1 %958  ;;  %v1013_v35 = vld [vmem:[#allocation3 + $0x40] sm:$0xff]  ;;  %707 = vst.msk [vmem:[#allocation3 + $0x50] sm:$0xff] %vm696_vm9, %v669_v33 }
 0x137   :  { %998 = vst.msk [vmem:[#allocation3 + $0x48] sm:$0xff] %vm988_vm12, %v959_v34  ;;  %2736 = vmatprep.mubr.msk.f32.mxu0 %vm1026_vm13, %v1013_v35 }
 0x139   :  { %v287_v37 = vpop.permute.xlu0 %286 }
 0x13a   :  { %v382_v38 = vpop.permute.xlu1 %381  ;;  %322 = vst.msk [vmem:[#allocation3 + $0x68] sm:$0xff] %vm308_vm5, %v287_v37 }
 0x13b   :  { %418 = vst.msk [vmem:[#allocation3 + $0x60] sm:$0xff] %vm405_vm6, %v382_v38 }
 0x13d   :  { %v671_v5 = vpop.permute.xlu0 %670 }
 0x13e   :  { %v767_v40 = vpop.permute.xlu1 %766  ;;  %v1014_v41 = vld [vmem:[#allocation3 + $0x48] sm:$0xff]  ;;  %708 = vst.msk [vmem:[#allocation3 + $0x58] sm:$0xff] %vm696_vm9, %v671_v5 }
 0x13f   :  { %805 = vst.msk [vmem:[#allocation3 + $0x50] sm:$0xff] %vm794_vm10, %v767_v40  ;;  %2737 = vmatmul.mubr.msk.f32.gmra.mrb[8].mxu0 %vm1026_vm13, %v1014_v41 }
 0x141   :  { %v384_v43 = vpop.permute.xlu0 %383 }
 0x142   :  { %v479_v45 = vpop.permute.xlu1 %478  ;;  %419 = vst.msk [vmem:[#allocation3 + $0x68] sm:$0xff] %vm405_vm6, %v384_v43 }
 0x143   :  { %515 = vst.msk [vmem:[#allocation3 + $0x60] sm:$0xff] %vm502_vm7, %v479_v45 }
 0x145   :  { %v769_v46 = vpop.permute.xlu0 %768 }
 0x146   :  { %v864_v47 = vpop.permute.xlu1 %863  ;;  %806 = vst.msk [vmem:[#allocation3 + $0x58] sm:$0xff] %vm794_vm10, %v769_v46 }
 0x147   :  { %902 = vst.msk [vmem:[#allocation3 + $0x50] sm:$0xff] %vm891_vm11, %v864_v47 }
 0x149   :  { %v481_v48 = vpop.permute.xlu0 %480 }
 0x14a   :  { %v576_v49 = vpop.permute.xlu1 %575  ;;  %516 = vst.msk [vmem:[#allocation3 + $0x68] sm:$0xff] %vm502_vm7, %v481_v48 }
 0x14b   :  { %612 = vst.msk [vmem:[#allocation3 + $0x60] sm:$0xff] %vm599_vm8, %v576_v49  ;;  %v1445_v49 = vld [vmem:[#allocation2 + $0x1] sm:$0xff] }
 0x14c   :  { %1477 = vrot.lane.b32.xlu0 %v1445_v49, %s2842_s20 }
 0x14d   :  { %v866_v50 = vpop.permute.xlu0 %865 }
 0x14e   :  { %v961_v51 = vpop.permute.xlu1 %960  ;;  %903 = vst.msk [vmem:[#allocation3 + $0x58] sm:$0xff] %vm891_vm11, %v866_v50  ;;  %v1542_v50 = vld [vmem:[#allocation2 + $0x2] sm:$0xff] }
 0x14f   :  { %999 = vst.msk [vmem:[#allocation3 + $0x50] sm:$0xff] %vm988_vm12, %v961_v51 }
 0x150   :  { %1574 = vrot.lane.b32.xlu0 %v1542_v50, %s2845_s30 }
 0x151   :  { %v289_v36 = vpop.permute.xlu0 %288 }
 0x152   :  { %v578_v52 = vpop.permute.xlu1 %577  ;;  %323 = vst.msk [vmem:[#allocation3 + $0x70] sm:$0xff] %vm308_vm5, %v289_v36 }
 0x153   :  { %613 = vst.msk [vmem:[#allocation3 + $0x68] sm:$0xff] %vm599_vm8, %v578_v52 }
 0x155   :  { %v673_v53 = vpop.permute.xlu0 %672 }
 0x156   :  { %v963_v54 = vpop.permute.xlu1 %962  ;;  %v1015_v55 = vld [vmem:[#allocation3 + $0x50] sm:$0xff]  ;;  %709 = vst.msk [vmem:[#allocation3 + $0x60] sm:$0xff] %vm696_vm9, %v673_v53 }
 0x157   :  { %1000 = vst.msk [vmem:[#allocation3 + $0x58] sm:$0xff] %vm988_vm12, %v963_v54  ;;  %2739 = vmatprep.mubr.msk.f32.mxu0 %vm1026_vm13, %v1015_v55  ;;  %v1543_v54 = vld [vmem:[#allocation2 + $0xa] sm:$0xff] }
 0x158   :  { %1576 = vrot.lane.b32.xlu0 %v1543_v54, %s2845_s30 }
 0x159   :  { %v291_v56 = vpop.permute.xlu0 %290 }
 0x15a   :  { %v386_v57 = vpop.permute.xlu1 %385  ;;  %324 = vst.msk [vmem:[#allocation3 + $0x78] sm:$0xff] %vm308_vm5, %v291_v56  ;;  %v1446_v56 = vld [vmem:[#allocation2 + $0x9] sm:$0xff]  ;;  %vm2107_vm5 = vcmask 523712  }
 0x15b   :  { %420 = vst.msk [vmem:[#allocation3 + $0x70] sm:$0xff] %vm405_vm6, %v386_v57  ;;  %1479 = vrot.lane.b32.xlu1 %v1446_v56, %s2842_s20 }
 0x15d   :  { %v675_v39 = vpop.permute.xlu0 %674 }
 0x15e   :  { %v771_v58 = vpop.permute.xlu1 %770  ;;  %v1016_v59 = vld [vmem:[#allocation3 + $0x58] sm:$0xff]  ;;  %710 = vst.msk [vmem:[#allocation3 + $0x68] sm:$0xff] %vm696_vm9, %v675_v39 }
 0x15f   :  { %807 = vst.msk [vmem:[#allocation3 + $0x60] sm:$0xff] %vm794_vm10, %v771_v58  ;;  %2740 = vmatmul.mubr.msk.f32.gmra.mrb[10].mxu0 %vm1026_vm13, %v1016_v59  ;;  %v1453_v39 = vld [vmem:[#allocation2 + $0x91] sm:$0xff]  ;;  %v1454_v59 = vld [vmem:[#allocation2 + $0x99] sm:$0xff] }
 0x160   :  { %1493 = vrot.lane.b32.xlu0 %v1453_v39, %s2842_s20  ;;  %v1550_v58 = vld [vmem:[#allocation2 + $0x92] sm:$0xff] }
 0x161   :  { %v388_v60 = vpop.permute.xlu0 %387  ;;  %1590 = vrot.lane.b32.xlu1 %v1550_v58, %s2845_s30 }
 0x162   :  { %v483_v61 = vpop.permute.xlu1 %482  ;;  %421 = vst.msk [vmem:[#allocation3 + $0x78] sm:$0xff] %vm405_vm6, %v388_v60  ;;  %v1936_v60 = vld [vmem:[#allocation2 + $0x78] sm:$0xff]  ;;  %vm2204_vm6 = vcmask 589312  }
 0x163   :  { %517 = vst.msk [vmem:[#allocation3 + $0x70] sm:$0xff] %vm502_vm7, %v483_v61  ;;  %v1551_v61 = vld [vmem:[#allocation2 + $0x9a] sm:$0xff] }
 0x164   :  { %1495 = vrot.lane.b32.xlu0 %v1454_v59, %s2842_s20 }
 0x165   :  { %v773_v62 = vpop.permute.xlu0 %772  ;;  %1974 = vrot.lane.b32.xlu1 %v1936_v60, %s2850_s0 }
 0x166   :  { %v868_v63 = vpop.permute.xlu1 %867  ;;  %808 = vst.msk [vmem:[#allocation3 + $0x68] sm:$0xff] %vm794_vm10, %v773_v62  ;;  %v2033_v62 = vld [vmem:[#allocation2 + $0x79] sm:$0xff] }
 0x167   :  { %904 = vst.msk [vmem:[#allocation3 + $0x60] sm:$0xff] %vm891_vm11, %v868_v63  ;;  %v1937_v63 = vld [vmem:[#allocation2 + $0x80] sm:$0xff] }
 0x168   :  { %1592 = vrot.lane.b32.xlu0 %v1551_v61, %s2845_s30 }
 0x169   :  { %v485_v0 = vpop.permute.xlu0 %484  ;;  %2071 = vrot.lane.b32.xlu1 %v2033_v62, %s2851_s21 }
 0x16a   :  { %v580_v1 = vpop.permute.xlu1 %579  ;;  %518 = vst.msk [vmem:[#allocation3 + $0x78] sm:$0xff] %vm502_vm7, %v485_v0  ;;  %v2130_v0 = vld [vmem:[#allocation2 + $0x7a] sm:$0xff]  ;;  %vm2246_vm7 = vcmask 588800  }
 0x16b   :  { %614 = vst.msk [vmem:[#allocation3 + $0x70] sm:$0xff] %vm599_vm8, %v580_v1  ;;  %v2034_v1 = vld [vmem:[#allocation2 + $0x81] sm:$0xff] }
 0x16c   :  { %1976 = vrot.lane.b32.xlu0 %v1937_v63, %s2850_s0 }
 0x16d   :  { %v870_v3 = vpop.permute.xlu0 %869  ;;  %2168 = vrot.lane.b32.xlu1 %v2130_v0, %s2852_s23 }
 0x16e   :  { %v965_v6 = vpop.permute.xlu1 %964  ;;  %905 = vst.msk [vmem:[#allocation3 + $0x68] sm:$0xff] %vm891_vm11, %v870_v3  ;;  %v2131_v3 = vld [vmem:[#allocation2 + $0x82] sm:$0xff] }
 0x16f   :  { %1001 = vst.msk [vmem:[#allocation3 + $0x60] sm:$0xff] %vm988_vm12, %v965_v6 }
 0x170   :  { %2073 = vrot.lane.b32.xlu0 %v2034_v1, %s2851_s21 }
 0x171   :  { %v582_v7 = vpop.permute.xlu0 %581  ;;  %2170 = vrot.lane.b32.xlu1 %v2131_v3, %s2852_s23 }
 0x172   :  { %v677_v4 = vpop.permute.xlu1 %676  ;;  %615 = vst.msk [vmem:[#allocation3 + $0x78] sm:$0xff] %vm599_vm8, %v582_v7 }
 0x173   :  { %711 = vst.msk [vmem:[#allocation3 + $0x70] sm:$0xff] %vm696_vm9, %v677_v4 }
 0x175   :  { %v967_v8 = vpop.permute.xlu0 %966 }
 0x176   :  { %v679_v9 = vpop.permute.xlu1 %678  ;;  %v1017_v10 = vld [vmem:[#allocation3 + $0x60] sm:$0xff]  ;;  %1002 = vst.msk [vmem:[#allocation3 + $0x68] sm:$0xff] %vm988_vm12, %v967_v8 }
 0x177   :  { %712 = vst.msk [vmem:[#allocation3 + $0x78] sm:$0xff] %vm696_vm9, %v679_v9  ;;  %2742 = vmatprep.mubr.msk.f32.mxu0 %vm1026_vm13, %v1017_v10 }
 0x179   :  { %v775_v11 = vpop.permute.xlu0 %774 }
 0x17a   :  { %v777_v42 = vpop.permute.xlu1 %776  ;;  %809 = vst.msk [vmem:[#allocation3 + $0x70] sm:$0xff] %vm794_vm10, %v775_v11 }
 0x17b   :  { %810 = vst.msk [vmem:[#allocation3 + $0x78] sm:$0xff] %vm794_vm10, %v777_v42 }
 0x17d   :  { %v872_v12 = vpop.permute.xlu0 %871  ;;  %v1018_v14 = vld [vmem:[#allocation3 + $0x68] sm:$0xff] }
 0x17e   :  { %v874_v13 = vpop.permute.xlu1 %873  ;;  %906 = vst.msk [vmem:[#allocation3 + $0x70] sm:$0xff] %vm891_vm11, %v872_v12  ;;  %2743 = vmatmul.mubr.msk.f32.gmra.mrb[12].mxu0 %vm1026_vm13, %v1018_v14 }
 0x17f   :  { %907 = vst.msk [vmem:[#allocation3 + $0x78] sm:$0xff] %vm891_vm11, %v874_v13 }
 0x181   :  { %v969_v15 = vpop.permute.xlu0 %968 }
 0x182   :  { %v971_v16 = vpop.permute.xlu1 %970  ;;  %1003 = vst.msk [vmem:[#allocation3 + $0x70] sm:$0xff] %vm988_vm12, %v969_v15 }
 0x183   :  { %1004 = vst.msk [vmem:[#allocation3 + $0x78] sm:$0xff] %vm988_vm12, %v971_v16 }
 0x189   :  { %v1019_v17 = vld [vmem:[#allocation3 + $0x70] sm:$0xff] }
 0x18a   :  { %v1020_v44 = vld [vmem:[#allocation3 + $0x78] sm:$0xff]  ;;  %2745 = vmatprep.mubr.msk.f32.mxu0 %vm1026_vm13, %v1019_v17 }
 0x18b   :  { %2746 = vmatmul.mubr.msk.f32.gmra.mrb[14].mxu0 %vm1026_vm13, %v1020_v44 }
 0x192   :  { %v3480_v18 = vpop.f32.mrb[0].mxu0 }
 0x193   :  { %v1225_v19 = vsel %vm138_vm0, %v3480_v18, 0.0  ;;  %v3484_v20 = vpop.f32.mrb[1].mxu0 }
 0x194   :  { %v1224_v21 = vsel %vm138_vm0, %v3484_v20, 0.0 }
 0x195   :  { %v1226_v22 = vadd.f32 %v1225_v19, %v1224_v21 }
 0x1b2   :  { %v3488_v23 = vpop.f32.mrb[2].mxu0 }
 0x1b3   :  { %v3490_v24 = vpop.f32.mrb[3].mxu0  ;;  %v1229_v27 = vsel %vm138_vm0, %v3488_v23, 0.0 }
 0x1b4   :  { %v1227_v25 = vsel %vm138_vm0, %v3490_v24, 0.0 }
 0x1b5   :  { %v1228_v26 = vadd.f32 %v1227_v25, %v1226_v22 }
 0x1b7   :  { %v1230_v28 = vadd.f32 %v1229_v27, %v1228_v26 }
 0x1d2   :  { %v3496_v29 = vpop.f32.mrb[4].mxu0 }
 0x1d3   :  { %v3498_v30 = vpop.f32.mrb[5].mxu0  ;;  %v1233_v32 = vsel %vm138_vm0, %v3496_v29, 0.0 }
 0x1d4   :  { %v1231_v31 = vsel %vm138_vm0, %v3498_v30, 0.0 }
 0x1d5   :  { %v1232_v2 = vadd.f32 %v1231_v31, %v1230_v28 }
 0x1d7   :  { %v1234_v33 = vadd.f32 %v1233_v32, %v1232_v2 }
 0x1f2   :  { %v3504_v34 = vpop.f32.mrb[6].mxu0 }
 0x1f3   :  { %v3506_v35 = vpop.f32.mrb[7].mxu0  ;;  %v1237_v5 = vsel %vm138_vm0, %v3504_v34, 0.0 }
 0x1f4   :  { %v1235_v37 = vsel %vm138_vm0, %v3506_v35, 0.0 }
 0x1f5   :  { %v1236_v38 = vadd.f32 %v1235_v37, %v1234_v33 }
 0x1f7   :  { %v1238_v40 = vadd.f32 %v1237_v5, %v1236_v38 }
 0x212   :  { %v3512_v41 = vpop.f32.mrb[8].mxu0 }
 0x213   :  { %v3514_v43 = vpop.f32.mrb[9].mxu0  ;;  %v1241_v47 = vsel %vm138_vm0, %v3512_v41, 0.0 }
 0x214   :  { %v1239_v45 = vsel %vm138_vm0, %v3514_v43, 0.0 }
 0x215   :  { %v1240_v46 = vadd.f32 %v1239_v45, %v1238_v40 }
 0x217   :  { %v1242_v48 = vadd.f32 %v1241_v47, %v1240_v46 }
 0x232   :  { %v3521_v51 = vpop.f32.mrb[10].mxu0 }
 0x233   :  { %v1195_v36 = vpop.f32.mrb[11].mxu0  ;;  %v1245_v55 = vsel %vm138_vm0, %v3521_v51, 0.0 }
 0x234   :  { %v1243_v52 = vsel %vm138_vm0, %v1195_v36, 0.0 }
 0x235   :  { %v1244_v53 = vadd.f32 %v1243_v52, %v1242_v48 }
 0x237   :  { %v1246_v57 = vadd.f32 %v1245_v55, %v1244_v53 }
 0x251   :  { %v2744_v6 = vpop.f32.mrb[12].mxu0 }
 0x252   :  { %v1205_v7 = vpop.f32.mrb[13].mxu0  ;;  %v1249_v9 = vsel %vm138_vm0, %v2744_v6, 0.0 }
 0x253   :  { %v1247_v4 = vsel %vm138_vm0, %v1205_v7, 0.0 }
 0x254   :  { %v1248_v8 = vadd.f32 %v1247_v4, %v1246_v57 }
 0x256   :  { %v1250_v10 = vadd.f32 %v1249_v9, %v1248_v8 }
 0x25e   :  { %v2747_v11 = vpop.f32.mrb[14].mxu0 }
 0x25f   :  { %v1215_v42 = vpop.f32.mrb[15].mxu0  ;;  %v1253_v14 = vsel %vm138_vm0, %v2747_v11, 0.0 }
 0x260   :  { %v1251_v12 = vsel %vm138_vm0, %v1215_v42, 0.0 }
 0x261   :  { %v1252_v13 = vadd.f32 %v1251_v12, %v1250_v10 }
 0x263   :  { %v1254_v15 = vadd.f32 %v1253_v14, %v1252_v13 }
 0x265   :  { %v1255_v16 = vrot.slane %v1254_v15, 4 }
 0x267   :  { %v1256_v17 = vadd.f32 %v1255_v16, %v1254_v15 }
 0x269   :  { %v1257_v44 = vrot.slane %v1256_v17, 2 }
 0x26b   :  { %v1258_v19 = vadd.f32 %v1257_v44, %v1256_v17 }
 0x26d   :  { %v1259_v21 = vrot.slane %v1258_v19, 1 }
 0x26f   :  { %v1260_v22 = vadd.f32 %v1259_v21, %v1258_v19 }
 0x271   :  { %v1261_v25 = vmul.f32 0.0078125, %v1260_v22 }
 0x273   :  { %v3544_v26 = vsub.f32 %v3484_v20, %v1261_v25  ;;  %v3547_v27 = vsub.f32 %v3480_v18, %v1261_v25  ;;  %v3550_v28 = vsub.f32 %v3490_v24, %v1261_v25  ;;  %v3553_v31 = vsub.f32 %v3488_v23, %v1261_v25 }
 0x274   :  { %v3556_v2 = vsub.f32 %v3498_v30, %v1261_v25  ;;  %v3559_v32 = vsub.f32 %v3496_v29, %v1261_v25  ;;  %v3562_v33 = vsub.f32 %v3506_v35, %v1261_v25  ;;  %v3565_v20 = vsub.f32 %v3504_v34, %v1261_v25 }
 0x275   :  { %v3568_v18 = vsub.f32 %v3514_v43, %v1261_v25  ;;  %v3571_v24 = vsub.f32 %v3512_v41, %v1261_v25  ;;  %v3573_v23 = vsub.f32 %v1195_v36, %v1261_v25  ;;  %v3576_v30 = vsub.f32 %v3521_v51, %v1261_v25 }
 0x276   :  { %v3578_v37 = vsub.f32 %v1205_v7, %v1261_v25  ;;  %v3580_v29 = vsub.f32 %v2744_v6, %v1261_v25  ;;  %v3582_v35 = vsub.f32 %v1215_v42, %v1261_v25  ;;  %v3584_v38 = vsub.f32 %v2747_v11, %v1261_v25 }
 0x277   :  { %v1278_v34 = vmul.f32 %v3544_v26, %v3544_v26  ;;  %v1279_v5 = vmul.f32 %v3547_v27, %v3547_v27  ;;  %v1280_v40 = vmul.f32 %v3550_v28, %v3550_v28  ;;  %v1281_v41 = vmul.f32 %v3553_v31, %v3553_v31 }
 0x278   :  { %v1282_v47 = vmul.f32 %v3556_v2, %v3556_v2  ;;  %v1283_v50 = vmul.f32 %v3559_v32, %v3559_v32  ;;  %v1284_v52 = vmul.f32 %v3562_v33, %v3562_v33  ;;  %v1285_v55 = vmul.f32 %v3565_v20, %v3565_v20 }
 0x279   :  { %v1294_v43 = vsel %vm138_vm0, %v1278_v34, 0.0  ;;  %v1295_v45 = vsel %vm138_vm0, %v1279_v5, 0.0  ;;  %v1297_v48 = vsel %vm138_vm0, %v1280_v40, 0.0  ;;  %v1299_v51 = vsel %vm138_vm0, %v1281_v41, 0.0  ;;  %v1413_v34 = vld [vmem:[#allocation2] sm:$0xff]  ;;  %v1478_v41 = vpop.permute.xlu0 %1477 }
 0x27a   :  { %v1296_v46 = vadd.f32 %v1295_v45, %v1294_v43  ;;  %v1301_v53 = vsel %vm138_vm0, %v1282_v47, 0.0  ;;  %v1303_v56 = vsel %vm138_vm0, %v1283_v50, 0.0  ;;  %v1286_v39 = vmul.f32 %v3568_v18, %v3568_v18  ;;  %1429 = vst.msk [vmem:[#allocation3] sm:$0xff] %vm138_vm0, %v1413_v34  ;;  %v1414_v47 = vld [vmem:[#allocation2 + $0x8] sm:$0xff] }
 0x27b   :  { %v1305_v58 = vsel %vm138_vm0, %v1284_v52, 0.0  ;;  %v1287_v60 = vmul.f32 %v3571_v24, %v3571_v24  ;;  %v1307_v61 = vsel %vm138_vm0, %v1285_v55, 0.0  ;;  %v1288_v63 = vmul.f32 %v3573_v23, %v3573_v23  ;;  %1526 = vst.msk [vmem:[#allocation3] sm:$0xff] %vm1525_vm14, %v1478_v41  ;;  %v1480_v52 = vpop.permute.xlu1 %1479  ;;  %v1422_v55 = vld [vmem:[#allocation2 + $0x98] sm:$0xff] }
 0x27c   :  { %v1298_v49 = vadd.f32 %v1297_v48, %v1296_v46  ;;  %v1309_v0 = vsel %vm138_vm0, %v1286_v39, 0.0  ;;  %v1289_v3 = vmul.f32 %v3576_v30, %v3576_v30  ;;  %v1290_v4 = vmul.f32 %v3578_v37, %v3578_v37  ;;  %1430 = vst.msk [vmem:[#allocation3 + $0x8] sm:$0xff] %vm138_vm0, %v1414_v47  ;;  %1438 = vst.msk [vmem:[#allocation3 + $0x48] sm:$0xff] %vm138_vm0, %v1422_v55 }
 0x27d   :  { %v1311_v6 = vsel %vm138_vm0, %v1287_v60, 0.0  ;;  %v1313_v8 = vsel %vm138_vm0, %v1288_v63, 0.0  ;;  %v1291_v10 = vmul.f32 %v3580_v29, %v3580_v29  ;;  %v1292_v12 = vmul.f32 %v3582_v35, %v3582_v35  ;;  %v1575_v46 = vpop.permute.xlu0 %1574  ;;  %1527 = vst.msk [vmem:[#allocation3 + $0x8] sm:$0xff] %vm1525_vm14, %v1480_v52 }
 0x27e   :  { %v1300_v36 = vadd.f32 %v1299_v51, %v1298_v49  ;;  %v1315_v11 = vsel %vm138_vm0, %v1289_v3, 0.0  ;;  %v1317_v13 = vsel %vm138_vm0, %v1290_v4, 0.0  ;;  %v1293_v15 = vmul.f32 %v3584_v38, %v3584_v38  ;;  %1623 = vst.msk [vmem:[#allocation3] sm:$0xff] %vm1622_vm15, %v1575_v46  ;;  %v1421_v51 = vld [vmem:[#allocation2 + $0x90] sm:$0xff] }
 0x27f   :  { %v1319_v16 = vsel %vm138_vm0, %v1291_v10, 0.0  ;;  %v1321_v44 = vsel %vm138_vm0, %v1292_v12, 0.0  ;;  %1437 = vst.msk [vmem:[#allocation3 + $0x40] sm:$0xff] %vm138_vm0, %v1421_v51  ;;  %v2650_v10 = vld [vmem:[%s4221_s3] ss:$0 sm:$0xff]  ;;  %s2853_s3 = smov 40  }
 0x280   :  { %v1302_v54 = vadd.f32 %v1301_v53, %v1300_v36  ;;  %v1323_v21 = vsel %vm138_vm0, %v1293_v15, 0.0  ;;  %v1337_v53 = vlaneseq }
 0x281   :  { %v1577_v50 = vpop.permute.xlu0 %1576 }
 0x282   :  { %v1304_v57 = vadd.f32 %v1303_v56, %v1302_v54  ;;  %1624 = vst.msk [vmem:[#allocation3 + $0x8] sm:$0xff] %vm1622_vm15, %v1577_v50  ;;  %v1591_v56 = vpop.permute.xlu1 %1590 }
 0x284   :  { %v1306_v59 = vadd.f32 %v1305_v58, %v1304_v57  ;;  %v3644_v57 = vshrl.u32 %v1337_v53, 7  ;;  %v1332_v58 = vld [vmem:[%s4220_s2] sm:$0x1] }
 0x285   :  { %v1494_v54 = vpop.permute.xlu0 %1493 }
 0x286   :  { %v1308_v62 = vadd.f32 %v1307_v61, %v1306_v59  ;;  %1534 = vst.msk [vmem:[#allocation3 + $0x40] sm:$0xff] %vm1525_vm14, %v1494_v54  ;;  %v1339_v59 = vsub.s32 0, %v3644_v57  ;;  %v2667_v57 = vld [vmem:[%s4224_s6] ss:$0 sm:$0xff] }
 0x287   :  { %1631 = vst.msk [vmem:[#allocation3 + $0x40] sm:$0xff] %vm1622_vm15, %v1591_v56 }
 0x288   :  { %v1310_v1 = vadd.f32 %v1309_v0, %v1308_v62 }
 0x289   :  { %v1496_v39 = vpop.permute.xlu0 %1495 }
 0x28a   :  { %v1312_v7 = vadd.f32 %v1311_v6, %v1310_v1  ;;  %1535 = vst.msk [vmem:[#allocation3 + $0x48] sm:$0xff] %vm1525_vm14, %v1496_v39 }
 0x28c   :  { %v1314_v9 = vadd.f32 %v1313_v8, %v1312_v7 }
 0x28d   :  { %v1593_v61 = vpop.permute.xlu0 %1592 }
 0x28e   :  { %v1316_v42 = vadd.f32 %v1315_v11, %v1314_v9  ;;  %1632 = vst.msk [vmem:[#allocation3 + $0x48] sm:$0xff] %vm1622_vm15, %v1593_v61 }
 0x290   :  { %v1318_v14 = vadd.f32 %v1317_v13, %v1316_v42 }
 0x292   :  { %v1320_v17 = vadd.f32 %v1319_v16, %v1318_v14 }
 0x294   :  { %v1322_v19 = vadd.f32 %v1321_v44, %v1320_v17 }
 0x296   :  { %v1324_v22 = vadd.f32 %v1323_v21, %v1322_v19 }
 0x298   :  { %v1325_v25 = vrot.slane %v1324_v22, 4 }
 0x29a   :  { %v1326_v5 = vadd.f32 %v1325_v25, %v1324_v22 }
 0x29c   :  { %v1327_v40 = vrot.slane %v1326_v5, 2 }
 0x29e   :  { %v1328_v43 = vadd.f32 %v1327_v40, %v1326_v5 }
 0x2a0   :  { %v1329_v45 = vrot.slane %v1328_v43, 1 }
 0x2a2   :  { %v1330_v48 = vadd.f32 %v1329_v45, %v1328_v43 }
 0x2a4   :  { %v1331_v49 = vmul.f32 0.0078125, %v1330_v48 }
 0x2a6   :  { %v1333_v36 = vadd.f32 1e-05, %v1331_v49 }
 0x2a8   :  { %2837 = vrsqrt.f32 %v1333_v36 }
 0x2b2   :  { %v2838_v60 = vpop.eup %2837 }
 0x2b3   :  { %v1335_v62 = vmul.f32 %v2838_v60, %v1332_v58 }
 0x2b5   :  { %v1340_v63 = vrot.slane %v1335_v62, %v1339_v59 }
 0x2b7   :  { %v1342_v0 = vmul.f32 %v1340_v63, %v3544_v26  ;;  %v1343_v1 = vmul.f32 %v1340_v63, %v3547_v27  ;;  %v1344_v3 = vmul.f32 %v1340_v63, %v3550_v28  ;;  %v1345_v6 = vmul.f32 %v1340_v63, %v3553_v31 }
 0x2b8   :  { %v1346_v7 = vmul.f32 %v1340_v63, %v3556_v2  ;;  %v1347_v4 = vmul.f32 %v1340_v63, %v3559_v32  ;;  %v1348_v8 = vmul.f32 %v1340_v63, %v3562_v33  ;;  %v1349_v9 = vmul.f32 %v1340_v63, %v3565_v20 }
 0x2b9   :  { %v1350_v26 = vmul.f32 %v1340_v63, %v3568_v18  ;;  %v1351_v27 = vmul.f32 %v1340_v63, %v3571_v24  ;;  %v1352_v28 = vmul.f32 %v1340_v63, %v3573_v23  ;;  %v1353_v31 = vmul.f32 %v1340_v63, %v3576_v30 }
 0x2ba   :  { %v1354_v2 = vmul.f32 %v1340_v63, %v3578_v37  ;;  %v1355_v32 = vmul.f32 %v1340_v63, %v3580_v29  ;;  %v1356_v33 = vmul.f32 %v1340_v63, %v3582_v35  ;;  %v1357_v20 = vmul.f32 %v1340_v63, %v3584_v38 }
 0x2bb   :  { %v1365_v11 = vadd.f32 %v2650_v10, %v1342_v0  ;;  %v1366_v42 = vadd.f32 %v2650_v10, %v1343_v1  ;;  %v1367_v12 = vadd.f32 %v2650_v10, %v1344_v3  ;;  %v1368_v13 = vadd.f32 %v2650_v10, %v1345_v6 }
 0x2bc   :  { %v1369_v14 = vadd.f32 %v2650_v10, %v1346_v7  ;;  %v1370_v18 = vadd.f32 %v2650_v10, %v1347_v4  ;;  %v1371_v15 = vadd.f32 %v2650_v10, %v1348_v8  ;;  %v1372_v24 = vadd.f32 %v2650_v10, %v1349_v9  ;;  %v2237_v8 = vld [vmem:[%s4222_s4] sm:$0xff]  ;;  %v2238_v9 = vld [vmem:[%s4222_s4 + $0x8] sm:$0xff] }
 0x2bd   :  { %v1373_v16 = vadd.f32 %v2650_v10, %v1350_v26  ;;  %v1374_v23 = vadd.f32 %v2650_v10, %v1351_v27  ;;  %v1375_v17 = vadd.f32 %v2650_v10, %v1352_v28  ;;  %v1376_v30 = vadd.f32 %v2650_v10, %v1353_v31  ;;  %v2239_v26 = vld [vmem:[%s4222_s4 + $0x10] sm:$0xff]  ;;  %v2240_v27 = vld [vmem:[%s4222_s4 + $0x18] sm:$0xff] }
 0x2be   :  { %v1377_v44 = vadd.f32 %v2650_v10, %v1354_v2  ;;  %v1378_v37 = vadd.f32 %v2650_v10, %v1355_v32  ;;  %v1379_v19 = vadd.f32 %v2650_v10, %v1356_v33  ;;  %v1380_v29 = vadd.f32 %v2650_v10, %v1357_v20  ;;  %v2241_v2 = vld [vmem:[%s4222_s4 + $0x20] sm:$0xff]  ;;  %v2242_v32 = vld [vmem:[%s4222_s4 + $0x28] sm:$0xff]  ;;  %v2243_v20 = vld [vmem:[%s4222_s4 + $0x30] sm:$0xff] }
 0x2bf   :  { %v1381_v21 = vmax.f32 %v1365_v11, 0.0  ;;  %v1382_v35 = vmax.f32 %v1366_v42, 0.0  ;;  %v1383_v22 = vmax.f32 %v1367_v12, 0.0  ;;  %v1384_v38 = vmax.f32 %v1368_v13, 0.0  ;;  %v2244_v11 = vld [vmem:[%s4222_s4 + $0x38] sm:$0xff]  ;;  %v2245_v13 = vld [vmem:[%s4222_s4 + $0x40] sm:$0xff] }
 0x2c0   :  { %v1385_v25 = vmax.f32 %v1369_v14, 0.0  ;;  %v1386_v34 = vmax.f32 %v1370_v18, 0.0  ;;  %v1387_v5 = vmax.f32 %v1371_v15, 0.0  ;;  %v1388_v40 = vmax.f32 %v1372_v24, 0.0 }
 0x2c1   :  { %v1389_v41 = vmax.f32 %v1373_v16, 0.0  ;;  %v1390_v43 = vmax.f32 %v1374_v23, 0.0  ;;  %v1391_v45 = vmax.f32 %v1375_v17, 0.0  ;;  %v1392_v46 = vmax.f32 %v1376_v30, 0.0  ;;  %1397 = vst.msk [vmem:[#allocation2 + $0x19] sm:$0xff] %vm138_vm0, %v1381_v21  ;;  %1398 = vst.msk [vmem:[#allocation2 + $0x21] sm:$0xff] %vm138_vm0, %v1382_v35  ;;  %v3802_v23 = vpop.permute.xlu1 %1974 }
 0x2c2   :  { %1399 = vst.msk [vmem:[#allocation2 + $0x31] sm:$0xff] %vm138_vm0, %v1383_v22  ;;  %1400 = vst.msk [vmem:[#allocation2 + $0x39] sm:$0xff] %vm138_vm0, %v1384_v38  ;;  %v1393_v47 = vmax.f32 %v1377_v44, 0.0  ;;  %v1394_v48 = vmax.f32 %v1378_v37, 0.0  ;;  %v1395_v49 = vmax.f32 %v1379_v19, 0.0  ;;  %v1396_v50 = vmax.f32 %v1380_v29, 0.0  ;;  %v3812_v29 = vpop.permute.xlu0 %1976 }
 0x2c3   :  { %1401 = vst.msk [vmem:[#allocation2 + $0x49] sm:$0xff] %vm138_vm0, %v1385_v25  ;;  %1402 = vst.msk [vmem:[#allocation2 + $0x51] sm:$0xff] %vm138_vm0, %v1386_v34  ;;  %v2798_v10 = vpack.c.bf16 %v2238_v9, %v2237_v8  ;;  %v2802_v28 = vpack.c.bf16 %v2240_v27, %v2239_v26  ;;  %v2806_v33 = vpack.c.bf16 %v2242_v32, %v2241_v2 }
 0x2c4   :  { %1403 = vst.msk [vmem:[#allocation2 + $0x61] sm:$0xff] %vm138_vm0, %v1387_v5  ;;  %1404 = vst.msk [vmem:[#allocation2 + $0x69] sm:$0xff] %vm138_vm0, %v1388_v40  ;;  %v2810_v42 = vpack.c.bf16 %v2244_v11, %v2243_v20 }
 0x2c5   :  { %1405 = vst.msk [vmem:[#allocation2 + $0xa9] sm:$0xff] %vm138_vm0, %v1389_v41  ;;  %1406 = vst.msk [vmem:[#allocation2 + $0xb1] sm:$0xff] %vm138_vm0, %v1390_v43  ;;  %2799 = vmatprep.subr.bf16.mxu0 %v2798_v10  ;;  %2814 = vmatprep.subr.bf16.mxu1 %v2798_v10  ;;  %v3808_v37 = vpop.permute.xlu1 %2071 }
 0x2c6   :  { %1407 = vst.msk [vmem:[#allocation2 + $0xc1] sm:$0xff] %vm138_vm0, %v1391_v45  ;;  %1408 = vst.msk [vmem:[#allocation2 + $0xc9] sm:$0xff] %vm138_vm0, %v1392_v46  ;;  %2801 = vmatpush3.bf16.msra.mxu0 %v2798_v10  ;;  %2819 = vmatpush3.bf16.msra.mxu1 %v2798_v10  ;;  %v3821_v22 = vpop.permute.xlu0 %2073 }
 0x2c7   :  { %1409 = vst.msk [vmem:[#allocation2 + $0xd9] sm:$0xff] %vm138_vm0, %v1393_v47  ;;  %1410 = vst.msk [vmem:[#allocation2 + $0xe1] sm:$0xff] %vm138_vm0, %v1394_v48  ;;  %2803 = vmatprep.subr.bf16.mxu0 %v2802_v28  ;;  %2815 = vmatprep.subr.bf16.mxu1 %v2802_v28 }
 0x2c8   :  { %1411 = vst.msk [vmem:[#allocation2 + $0xf1] sm:$0xff] %vm138_vm0, %v1395_v49  ;;  %1412 = vst.msk [vmem:[#allocation2 + $0xf9] sm:$0xff] %vm138_vm0, %v1396_v50  ;;  %v1448_v51 = vld [vmem:[#allocation2 + $0x21] sm:$0xff]  ;;  %v1447_v36 = vld [vmem:[#allocation2 + $0x19] sm:$0xff] }
 0x2c9   :  { %v1640_v52 = vld [vmem:[#allocation2 + $0x20] sm:$0xff]  ;;  %1483 = vrot.lane.b32.xlu0 %v1448_v51, %s2842_s20  ;;  %1481 = vrot.lane.b32.xlu1 %v1447_v36, %s2842_s20  ;;  %v1639_v53 = vld [vmem:[#allocation2 + $0x18] sm:$0xff]  ;;  %v1641_v55 = vld [vmem:[#allocation2 + $0x30] sm:$0xff]  ;;  %v3814_v21 = vpop.permute.xlu1 %2168 }
 0x2ca   :  { %1432 = vst.msk [vmem:[#allocation3 + $0x18] sm:$0xff] %vm138_vm0, %v1640_v52  ;;  %v1642_v54 = vld [vmem:[#allocation2 + $0x38] sm:$0xff]  ;;  %1431 = vst.msk [vmem:[#allocation3 + $0x10] sm:$0xff] %vm138_vm0, %v1639_v53  ;;  %v3693_v56 = vld [vmem:[#allocation2 + $0x48] sm:$0xff]  ;;  %2805 = vmatpush3.bf16.msra.mxu0 %v2802_v28  ;;  %2820 = vmatpush3.bf16.msra.mxu1 %v2802_v28 }
 0x2cb   :  { %1433 = vst.msk [vmem:[#allocation3 + $0x20] sm:$0xff] %vm138_vm0, %v1641_v55  ;;  %1434 = vst.msk [vmem:[#allocation3 + $0x28] sm:$0xff] %vm138_vm0, %v1642_v54  ;;  %v3697_v39 = vld [vmem:[#allocation2 + $0x50] sm:$0xff]  ;;  %v1545_v58 = vld [vmem:[#allocation2 + $0x22] sm:$0xff]  ;;  %2807 = vmatprep.subr.bf16.mxu0 %v2806_v33  ;;  %2816 = vmatprep.subr.bf16.mxu1 %v2806_v33 }
 0x2cc   :  { %1435 = vst.msk [vmem:[#allocation3 + $0x30] sm:$0xff] %vm138_vm0, %v3693_v56  ;;  %1436 = vst.msk [vmem:[#allocation3 + $0x38] sm:$0xff] %vm138_vm0, %v3697_v39  ;;  %v1544_v60 = vld [vmem:[#allocation2 + $0x1a] sm:$0xff]  ;;  %v3705_v61 = vld [vmem:[#allocation2 + $0xb0] sm:$0xff] }
 0x2cd   :  { %1673 = vrot.lane.b32.xlu0 %v1640_v52, %s2847_s17  ;;  %1671 = vrot.lane.b32.xlu1 %v1639_v53, %s2847_s17  ;;  %v3709_v62 = vld [vmem:[#allocation2 + $0xa8] sm:$0xff]  ;;  %1440 = vst.msk [vmem:[#allocation3 + $0x58] sm:$0xff] %vm138_vm0, %v3705_v61  ;;  %v3715_v0 = vld [vmem:[#allocation2 + $0xc0] sm:$0xff]  ;;  %v1449_v6 = vld [vmem:[#allocation2 + $0x31] sm:$0xff]  ;;  %v3823_v38 = vpop.permute.xlu1 %2170 }
 0x2ce   :  { %v3713_v63 = vld [vmem:[#allocation2 + $0xc8] sm:$0xff]  ;;  %1439 = vst.msk [vmem:[#allocation3 + $0x50] sm:$0xff] %vm138_vm0, %v3709_v62  ;;  %1441 = vst.msk [vmem:[#allocation3 + $0x60] sm:$0xff] %vm138_vm0, %v3715_v0  ;;  %v3723_v1 = vld [vmem:[#allocation2 + $0xe0] sm:$0xff]  ;;  %2809 = vmatpush3.bf16.msra.mxu0 %v2806_v33  ;;  %2821 = vmatpush3.bf16.msra.mxu1 %v2806_v33 }
 0x2cf   :  { %1442 = vst.msk [vmem:[#allocation3 + $0x68] sm:$0xff] %vm138_vm0, %v3713_v63  ;;  %v3725_v3 = vld [vmem:[#allocation2 + $0xd8] sm:$0xff]  ;;  %1444 = vst.msk [vmem:[#allocation3 + $0x78] sm:$0xff] %vm138_vm0, %v3723_v1  ;;  %v2029_v12 = vld [vmem:[#allocation2 + $0x49] sm:$0xff]  ;;  %2811 = vmatprep.subr.bf16.mxu0 %v2810_v42  ;;  %2817 = vmatprep.subr.bf16.mxu1 %v2810_v42 }
 0x2d0   :  { %1443 = vst.msk [vmem:[#allocation3 + $0x70] sm:$0xff] %vm138_vm0, %v3725_v3  ;;  %v1835_v7 = vld [vmem:[#allocation2 + $0x32] sm:$0xff]  ;;  %v1836_v31 = vld [vmem:[#allocation2 + $0x3a] sm:$0xff]  ;;  %v1837_v18 = vld [vmem:[#allocation2 + $0x4a] sm:$0xff] }
 0x2d1   :  { %1580 = vrot.lane.b32.xlu0 %v1545_v58, %s2845_s30  ;;  %1578 = vrot.lane.b32.xlu1 %v1544_v60, %s2845_s30  ;;  %v1739_v4 = vld [vmem:[#allocation2 + $0x39] sm:$0xff]  ;;  %v2030_v14 = vld [vmem:[#allocation2 + $0x51] sm:$0xff]  ;;  %v1935_v24 = vld [vmem:[#allocation2 + $0x68] sm:$0xff] }
 0x2d2   :  { %2813 = vmatpush3.bf16.msra.mxu0 %v2810_v42  ;;  %2822 = vmatpush3.bf16.msra.mxu1 %v2810_v42  ;;  %v1838_v15 = vld [vmem:[#allocation2 + $0x52] sm:$0xff]  ;;  %v1934_v16 = vld [vmem:[#allocation2 + $0x60] sm:$0xff]  ;;  %v2032_v17 = vld [vmem:[#allocation2 + $0x69] sm:$0xff] }
 0x2d3   :  { %2764 = vmatprep.subr.mxu0 %v2245_v13  ;;  %2818 = vmatprep.subr.mxu1 %v2245_v13  ;;  %v2031_v30 = vld [vmem:[#allocation2 + $0x61] sm:$0xff]  ;;  %v1840_v19 = vld [vmem:[#allocation2 + $0x6a] sm:$0xff]  ;;  %v1842_v45 = vld [vmem:[#allocation2 + $0xb2] sm:$0xff] }
 0x2d4   :  { %v1839_v44 = vld [vmem:[#allocation2 + $0x62] sm:$0xff]  ;;  %v1841_v25 = vld [vmem:[#allocation2 + $0xaa] sm:$0xff]  ;;  %v2037_v32 = vld [vmem:[#allocation2 + $0xd9] sm:$0xff] }
 0x2d5   :  { %1770 = vrot.lane.b32.xlu0 %v1448_v51, %s2849_s8  ;;  %1768 = vrot.lane.b32.xlu1 %v1447_v36, %s2849_s8  ;;  %v1455_v35 = vld [vmem:[#allocation2 + $0xa9] sm:$0xff]  ;;  %v1456_v40 = vld [vmem:[#allocation2 + $0xb1] sm:$0xff]  ;;  %v2038_v2 = vld [vmem:[#allocation2 + $0xe1] sm:$0xff] }
 0x2d6   :  { %2765 = vmatpush3.msra.mxu0 %v2245_v13  ;;  %2823 = vmatpush3.msra.mxu1 %v2245_v13  ;;  %v2036_v53 = vld [vmem:[#allocation2 + $0xc9] sm:$0xff]  ;;  %v1845_v11 = vld [vmem:[#allocation2 + $0xda] sm:$0xff] }
 0x2d9   :  { %1677 = vrot.lane.b32.xlu0 %v1642_v54, %s2847_s17  ;;  %1675 = vrot.lane.b32.xlu1 %v1641_v55, %s2847_s17 }
 0x2dd   :  { %1867 = vrot.lane.b32.xlu0 %v1545_v58, %s2853_s3  ;;  %1865 = vrot.lane.b32.xlu1 %v1544_v60, %s2853_s3  ;;  %v1843_v60 = vld [vmem:[#allocation2 + $0xc2] sm:$0xff] }
 0x2e1   :  { %1485 = vrot.lane.b32.xlu0 %v1449_v6, %s2842_s20  ;;  %1772 = vrot.lane.b32.xlu1 %v1449_v6, %s2849_s8 }
 0x2e5   :  { %1869 = vrot.lane.b32.xlu0 %v1835_v7, %s2853_s3  ;;  %1962 = vrot.lane.b32.xlu1 %v1641_v55, %s2850_s0 }
 0x2e9   :  { %2059 = vrot.lane.b32.xlu0 %v1449_v6, %s2851_s21  ;;  %1774 = vrot.lane.b32.xlu1 %v1739_v4, %s2849_s8  ;;  %v1844_v6 = vld [vmem:[#allocation2 + $0xca] sm:$0xff] }
 0x2ed   :  { %1582 = vrot.lane.b32.xlu0 %v1835_v7, %s2845_s30  ;;  %1964 = vrot.lane.b32.xlu1 %v1642_v54, %s2850_s0  ;;  %v2035_v54 = vld [vmem:[#allocation2 + $0xc1] sm:$0xff] }
 0x2f1   :  { %1966 = vrot.lane.b32.xlu0 %v3693_v56, %s2850_s0  ;;  %1487 = vrot.lane.b32.xlu1 %v1739_v4, %s2842_s20 }
 0x2f5   :  { %2156 = vrot.lane.b32.xlu0 %v1835_v7, %s2852_s23  ;;  %1871 = vrot.lane.b32.xlu1 %v1836_v31, %s2853_s3 }
 0x2f9   :  { %1679 = vrot.lane.b32.xlu0 %v3693_v56, %s2847_s17  ;;  %2061 = vrot.lane.b32.xlu1 %v1739_v4, %s2851_s21 }
 0x2fd   :  { %2063 = vrot.lane.b32.xlu0 %v2029_v12, %s2851_s21  ;;  %1584 = vrot.lane.b32.xlu1 %v1836_v31, %s2845_s30 }
 0x301   :  { %1681 = vrot.lane.b32.xlu0 %v3697_v39, %s2847_s17  ;;  %1968 = vrot.lane.b32.xlu1 %v3697_v39, %s2850_s0 }
 0x305   :  { %2065 = vrot.lane.b32.xlu0 %v2030_v14, %s2851_s21  ;;  %2158 = vrot.lane.b32.xlu1 %v1836_v31, %s2852_s23 }
 0x309   :  { %1489 = vrot.lane.b32.xlu0 %v2029_v12, %s2842_s20  ;;  %1776 = vrot.lane.b32.xlu1 %v2029_v12, %s2849_s8 }
 0x30d   :  { %1873 = vrot.lane.b32.xlu0 %v1837_v18, %s2853_s3  ;;  %2160 = vrot.lane.b32.xlu1 %v1837_v18, %s2852_s23 }
 0x311   :  { %1491 = vrot.lane.b32.xlu0 %v2030_v14, %s2842_s20  ;;  %1778 = vrot.lane.b32.xlu1 %v2030_v14, %s2849_s8 }
 0x315   :  { %1875 = vrot.lane.b32.xlu0 %v1838_v15, %s2853_s3  ;;  %2162 = vrot.lane.b32.xlu1 %v1838_v15, %s2852_s23 }
 0x319   :  { %1588 = vrot.lane.b32.xlu0 %v1838_v15, %s2845_s30  ;;  %1586 = vrot.lane.b32.xlu1 %v1837_v18, %s2845_s30  ;;  %v1846_v15 = vld [vmem:[#allocation2 + $0xe2] sm:$0xff] }
 0x31d   :  { %1972 = vrot.lane.b32.xlu0 %v1935_v24, %s2850_s0  ;;  %1970 = vrot.lane.b32.xlu1 %v1934_v16, %s2850_s0 }
 0x321   :  { %1685 = vrot.lane.b32.xlu0 %v1935_v24, %s2847_s17  ;;  %1683 = vrot.lane.b32.xlu1 %v1934_v16, %s2847_s17 }
 0x325   :  { %2069 = vrot.lane.b32.xlu0 %v2032_v17, %s2851_s21  ;;  %2067 = vrot.lane.b32.xlu1 %v2031_v30, %s2851_s21 }
 0x329   :  { %1877 = vrot.lane.b32.xlu0 %v1839_v44, %s2853_s3  ;;  %1780 = vrot.lane.b32.xlu1 %v2031_v30, %s2849_s8 }
 0x32d   :  { %1879 = vrot.lane.b32.xlu0 %v1840_v19, %s2853_s3  ;;  %2164 = vrot.lane.b32.xlu1 %v1839_v44, %s2852_s23 }
 0x331   :  { %1689 = vrot.lane.b32.xlu0 %v3705_v61, %s2847_s17  ;;  %1782 = vrot.lane.b32.xlu1 %v2032_v17, %s2849_s8 }
 0x335   :  { %1497 = vrot.lane.b32.xlu0 %v1455_v35, %s2842_s20  ;;  %2166 = vrot.lane.b32.xlu1 %v1840_v19, %s2852_s23  ;;  %v1943_v19 = vld [vmem:[#allocation2 + $0xf8] sm:$0xff] }
 0x339   :  { %1881 = vrot.lane.b32.xlu0 %v1841_v25, %s2853_s3  ;;  %1687 = vrot.lane.b32.xlu1 %v3709_v62, %s2847_s17 }
 0x33b   :  { %v1484_v34 = vpop.permute.xlu0 %1483  ;;  %v1482_v5 = vpop.permute.xlu1 %1481 }
 0x33c   :  { %1529 = vst.msk [vmem:[#allocation3 + $0x18] sm:$0xff] %vm1525_vm14, %v1484_v34  ;;  %1528 = vst.msk [vmem:[#allocation3 + $0x10] sm:$0xff] %vm1525_vm14, %v1482_v5 }
 0x33d   :  { %1499 = vrot.lane.b32.xlu0 %v1456_v40, %s2842_s20  ;;  %1784 = vrot.lane.b32.xlu1 %v1455_v35, %s2849_s8  ;;  %v1942_v35 = vld [vmem:[#allocation2 + $0xf0] sm:$0xff] }
 0x33f   :  { %v1674_v41 = vpop.permute.xlu0 %1673  ;;  %v1672_v43 = vpop.permute.xlu1 %1671 }
 0x340   :  { %1721 = vst.msk [vmem:[#allocation3 + $0x8] sm:$0xff] %vm1719_vm1, %v1674_v41  ;;  %1720 = vst.msk [vmem:[#allocation3] sm:$0xff] %vm1719_vm1, %v1672_v43  ;;  %v2040_v43 = vld [vmem:[#allocation2 + $0xf9] sm:$0xff] }
 0x341   :  { %1883 = vrot.lane.b32.xlu0 %v1842_v45, %s2853_s3  ;;  %1786 = vrot.lane.b32.xlu1 %v1456_v40, %s2849_s8 }
 0x343   :  { %v1581_v46 = vpop.permute.xlu0 %1580  ;;  %v1579_v47 = vpop.permute.xlu1 %1578 }
 0x344   :  { %1626 = vst.msk [vmem:[#allocation3 + $0x18] sm:$0xff] %vm1622_vm15, %v1581_v46  ;;  %1625 = vst.msk [vmem:[#allocation3 + $0x10] sm:$0xff] %vm1622_vm15, %v1579_v47 }
 0x345   :  { %1596 = vrot.lane.b32.xlu0 %v1842_v45, %s2845_s30  ;;  %1594 = vrot.lane.b32.xlu1 %v1841_v25, %s2845_s30  ;;  %v2039_v45 = vld [vmem:[#allocation2 + $0xf1] sm:$0xff] }
 0x347   :  { %v1771_v48 = vpop.permute.xlu0 %1770  ;;  %v1769_v49 = vpop.permute.xlu1 %1768 }
 0x348   :  { %1818 = vst.msk [vmem:[#allocation3 + $0x8] sm:$0xff] %vm1816_vm2, %v1771_v48  ;;  %1817 = vst.msk [vmem:[#allocation3] sm:$0xff] %vm1816_vm2, %v1769_v49 }
 0x349   :  { %1980 = vrot.lane.b32.xlu0 %v3713_v63, %s2850_s0  ;;  %1978 = vrot.lane.b32.xlu1 %v3715_v0, %s2850_s0 }
 0x34b   :  { %v1678_v50 = vpop.permute.xlu0 %1677  ;;  %v1676_v51 = vpop.permute.xlu1 %1675 }
 0x34c   :  { %1723 = vst.msk [vmem:[#allocation3 + $0x18] sm:$0xff] %vm1719_vm1, %v1678_v50  ;;  %1722 = vst.msk [vmem:[#allocation3 + $0x10] sm:$0xff] %vm1719_vm1, %v1676_v51  ;;  %v2137_v50 = vld [vmem:[#allocation2 + $0xfa] sm:$0xff]  ;;  %v2136_v51 = vld [vmem:[#allocation2 + $0xf2] sm:$0xff] }
 0x34d   :  { %1693 = vrot.lane.b32.xlu0 %v3713_v63, %s2847_s17  ;;  %1691 = vrot.lane.b32.xlu1 %v3715_v0, %s2847_s17 }
 0x34f   :  { %v1868_v36 = vpop.permute.xlu0 %1867  ;;  %v1866_v52 = vpop.permute.xlu1 %1865 }
 0x350   :  { %1915 = vst.msk [vmem:[#allocation3 + $0x8] sm:$0xff] %vm1913_vm3, %v1868_v36  ;;  %1914 = vst.msk [vmem:[#allocation3] sm:$0xff] %vm1913_vm3, %v1866_v52  ;;  %v1944_v36 = vld [vmem:[#allocation2 + $0x108] sm:$0xff] }
 0x351   :  { %2077 = vrot.lane.b32.xlu0 %v2036_v53, %s2851_s21  ;;  %2075 = vrot.lane.b32.xlu1 %v2035_v54, %s2851_s21 }
 0x353   :  { %v1486_v55 = vpop.permute.xlu0 %1485  ;;  %v1773_v56 = vpop.permute.xlu1 %1772 }
 0x354   :  { %1530 = vst.msk [vmem:[#allocation3 + $0x20] sm:$0xff] %vm1525_vm14, %v1486_v55 }
 0x355   :  { %1819 = vst.msk [vmem:[#allocation3 + $0x10] sm:$0xff] %vm1816_vm2, %v1773_v56  ;;  %1501 = vrot.lane.b32.xlu0 %v2035_v54, %s2842_s20  ;;  %1788 = vrot.lane.b32.xlu1 %v2035_v54, %s2849_s8  ;;  %v2041_v54 = vld [vmem:[#allocation2 + $0x109] sm:$0xff] }
 0x357   :  { %v1870_v39 = vpop.permute.xlu0 %1869  ;;  %v1963_v58 = vpop.permute.xlu1 %1962 }
 0x358   :  { %1916 = vst.msk [vmem:[#allocation3 + $0x10] sm:$0xff] %vm1913_vm3, %v1870_v39  ;;  %v1945_v39 = vld [vmem:[#allocation2 + $0x110] sm:$0xff] }
 0x359   :  { %2011 = vst.msk [vmem:[#allocation3] sm:$0xff] %vm2010_vm4, %v1963_v58  ;;  %1885 = vrot.lane.b32.xlu0 %v1843_v60, %s2853_s3  ;;  %2172 = vrot.lane.b32.xlu1 %v1843_v60, %s2852_s23  ;;  %v2138_v58 = vld [vmem:[#allocation2 + $0x10a] sm:$0xff] }
 0x35b   :  { %v2060_v61 = vpop.permute.xlu0 %2059  ;;  %v1775_v62 = vpop.permute.xlu1 %1774 }
 0x35c   :  { %2108 = vst.msk [vmem:[#allocation3] sm:$0xff] %vm2107_vm5, %v2060_v61 }
 0x35d   :  { %1820 = vst.msk [vmem:[#allocation3 + $0x18] sm:$0xff] %vm1816_vm2, %v1775_v62  ;;  %1503 = vrot.lane.b32.xlu0 %v2036_v53, %s2842_s20  ;;  %1790 = vrot.lane.b32.xlu1 %v2036_v53, %s2849_s8 }
 0x35f   :  { %v1583_v63 = vpop.permute.xlu0 %1582  ;;  %v1965_v0 = vpop.permute.xlu1 %1964 }
 0x360   :  { %1627 = vst.msk [vmem:[#allocation3 + $0x20] sm:$0xff] %vm1622_vm15, %v1583_v63  ;;  %v2139_v63 = vld [vmem:[#allocation2 + $0x112] sm:$0xff] }
 0x361   :  { %2012 = vst.msk [vmem:[#allocation3 + $0x8] sm:$0xff] %vm2010_vm4, %v1965_v0  ;;  %1887 = vrot.lane.b32.xlu0 %v1844_v6, %s2853_s3  ;;  %2174 = vrot.lane.b32.xlu1 %v1844_v6, %s2852_s23 }
 0x363   :  { %v1967_v7 = vpop.permute.xlu0 %1966  ;;  %v1488_v4 = vpop.permute.xlu1 %1487 }
 0x364   :  { %2013 = vst.msk [vmem:[#allocation3 + $0x10] sm:$0xff] %vm2010_vm4, %v1967_v7 }
 0x365   :  { %1531 = vst.msk [vmem:[#allocation3 + $0x28] sm:$0xff] %vm1525_vm14, %v1488_v4  ;;  %1600 = vrot.lane.b32.xlu0 %v1844_v6, %s2845_s30  ;;  %1598 = vrot.lane.b32.xlu1 %v1843_v60, %s2845_s30 }
 0x367   :  { %v2157_v8 = vpop.permute.xlu0 %2156  ;;  %v1872_v9 = vpop.permute.xlu1 %1871 }
 0x368   :  { %2205 = vst.msk [vmem:[#allocation3] sm:$0xff] %vm2204_vm6, %v2157_v8 }
 0x369   :  { %1917 = vst.msk [vmem:[#allocation3 + $0x18] sm:$0xff] %vm1913_vm3, %v1872_v9  ;;  %1984 = vrot.lane.b32.xlu0 %v3723_v1, %s2850_s0  ;;  %1982 = vrot.lane.b32.xlu1 %v3725_v3, %s2850_s0 }
 0x36b   :  { %v1680_v10 = vpop.permute.xlu0 %1679  ;;  %v2062_v26 = vpop.permute.xlu1 %2061 }
 0x36c   :  { %1724 = vst.msk [vmem:[#allocation3 + $0x20] sm:$0xff] %vm1719_vm1, %v1680_v10 }
 0x36d   :  { %2109 = vst.msk [vmem:[#allocation3 + $0x8] sm:$0xff] %vm2107_vm5, %v2062_v26  ;;  %1697 = vrot.lane.b32.xlu0 %v3723_v1, %s2847_s17  ;;  %1695 = vrot.lane.b32.xlu1 %v3725_v3, %s2847_s17 }
 0x36f   :  { %v2064_v27 = vpop.permute.xlu0 %2063  ;;  %v1585_v28 = vpop.permute.xlu1 %1584  ;;  %v2221_v31 = vld [vmem:[#allocation3] sm:$0xff] }
 0x370   :  { %2110 = vst.msk [vmem:[#allocation3 + $0x10] sm:$0xff] %vm2107_vm5, %v2064_v27  ;;  %2766 = vmatprep.mubr.msk.f32.mxu0 %vm2246_vm7, %v2221_v31 }
 0x371   :  { %1628 = vst.msk [vmem:[#allocation3 + $0x28] sm:$0xff] %vm1622_vm15, %v1585_v28  ;;  %2081 = vrot.lane.b32.xlu0 %v2038_v2, %s2851_s21  ;;  %2079 = vrot.lane.b32.xlu1 %v2037_v32, %s2851_s21 }
 0x373   :  { %v1682_v1 = vpop.permute.xlu0 %1681  ;;  %v1969_v33 = vpop.permute.xlu1 %1968 }
 0x374   :  { %1725 = vst.msk [vmem:[#allocation3 + $0x28] sm:$0xff] %vm1719_vm1, %v1682_v1 }
 0x375   :  { %2014 = vst.msk [vmem:[#allocation3 + $0x18] sm:$0xff] %vm2010_vm4, %v1969_v33  ;;  %1505 = vrot.lane.b32.xlu0 %v2037_v32, %s2842_s20  ;;  %1792 = vrot.lane.b32.xlu1 %v2037_v32, %s2849_s8 }
 0x377   :  { %v2066_v3 = vpop.permute.xlu0 %2065  ;;  %v2159_v20 = vpop.permute.xlu1 %2158 }
 0x378   :  { %2111 = vst.msk [vmem:[#allocation3 + $0x18] sm:$0xff] %vm2107_vm5, %v2066_v3 }
 0x379   :  { %2206 = vst.msk [vmem:[#allocation3 + $0x8] sm:$0xff] %vm2204_vm6, %v2159_v20  ;;  %1889 = vrot.lane.b32.xlu0 %v1845_v11, %s2853_s3  ;;  %2176 = vrot.lane.b32.xlu1 %v1845_v11, %s2852_s23 }
 0x37b   :  { %v1490_v42 = vpop.permute.xlu0 %1489  ;;  %v1777_v12 = vpop.permute.xlu1 %1776 }
 0x37c   :  { %1532 = vst.msk [vmem:[#allocation3 + $0x30] sm:$0xff] %vm1525_vm14, %v1490_v42 }
 0x37d   :  { %1821 = vst.msk [vmem:[#allocation3 + $0x20] sm:$0xff] %vm1816_vm2, %v1777_v12  ;;  %1507 = vrot.lane.b32.xlu0 %v2038_v2, %s2842_s20  ;;  %1794 = vrot.lane.b32.xlu1 %v2038_v2, %s2849_s8 }
 0x37f   :  { %v1874_v13 = vpop.permute.xlu0 %1873  ;;  %v2161_v14 = vpop.permute.xlu1 %2160 }
 0x380   :  { %v2222_v18 = vld [vmem:[#allocation3 + $0x8] sm:$0xff]  ;;  %1918 = vst.msk [vmem:[#allocation3 + $0x20] sm:$0xff] %vm1913_vm3, %v1874_v13 }
 0x381   :  { %2207 = vst.msk [vmem:[#allocation3 + $0x10] sm:$0xff] %vm2204_vm6, %v2161_v14  ;;  %2767 = vmatmul.mubr.msk.f32.vlgmr.msra.gmra.mrb[16].mxu0 %vm2246_vm7, %v2222_v18  ;;  %1891 = vrot.lane.b32.xlu0 %v1846_v15, %s2853_s3 }
 0x382   :  { %2178 = vrot.lane.b32.xlu1 %v1846_v15, %s2852_s23 }
 0x383   :  { %v1492_v24 = vpop.permute.xlu0 %1491  ;;  %v1779_v16 = vpop.permute.xlu1 %1778 }
 0x384   :  { %1533 = vst.msk [vmem:[#allocation3 + $0x38] sm:$0xff] %vm1525_vm14, %v1492_v24 }
 0x385   :  { %1822 = vst.msk [vmem:[#allocation3 + $0x28] sm:$0xff] %vm1816_vm2, %v1779_v16  ;;  %1604 = vrot.lane.b32.xlu0 %v1846_v15, %s2845_s30 }
 0x386   :  { %1602 = vrot.lane.b32.xlu1 %v1845_v11, %s2845_s30 }
 0x387   :  { %v1876_v17 = vpop.permute.xlu0 %1875  ;;  %v2163_v30 = vpop.permute.xlu1 %2162 }
 0x388   :  { %v2223_v44 = vld [vmem:[#allocation3 + $0x10] sm:$0xff]  ;;  %1919 = vst.msk [vmem:[#allocation3 + $0x28] sm:$0xff] %vm1913_vm3, %v1876_v17 }
 0x389   :  { %2208 = vst.msk [vmem:[#allocation3 + $0x18] sm:$0xff] %vm2204_vm6, %v2163_v30  ;;  %2769 = vmatprep.mubr.msk.f32.mxu1 %vm2246_vm7, %v2223_v44  ;;  %1988 = vrot.lane.b32.xlu0 %v1943_v19, %s2850_s0 }
 0x38a   :  { %1986 = vrot.lane.b32.xlu1 %v1942_v35, %s2850_s0 }
 0x38b   :  { %v1589_v25 = vpop.permute.xlu0 %1588  ;;  %v1587_v34 = vpop.permute.xlu1 %1586 }
 0x38c   :  { %1630 = vst.msk [vmem:[#allocation3 + $0x38] sm:$0xff] %vm1622_vm15, %v1589_v25  ;;  %1629 = vst.msk [vmem:[#allocation3 + $0x30] sm:$0xff] %vm1622_vm15, %v1587_v34 }
 0x38d   :  { %1701 = vrot.lane.b32.xlu0 %v1943_v19, %s2847_s17 }
 0x38e   :  { %1699 = vrot.lane.b32.xlu1 %v1942_v35, %s2847_s17 }
 0x38f   :  { %v1973_v5 = vpop.permute.xlu0 %1972  ;;  %v1971_v40 = vpop.permute.xlu1 %1970 }
 0x390   :  { %v2224_v41 = vld [vmem:[#allocation3 + $0x18] sm:$0xff]  ;;  %2016 = vst.msk [vmem:[#allocation3 + $0x28] sm:$0xff] %vm2010_vm4, %v1973_v5  ;;  %2015 = vst.msk [vmem:[#allocation3 + $0x20] sm:$0xff] %vm2010_vm4, %v1971_v40 }
 0x391   :  { %2770 = vmatmul.mubr.msk.f32.vlgmr.msra.gmra.mrb[0].mxu1 %vm2246_vm7, %v2224_v41  ;;  %2085 = vrot.lane.b32.xlu0 %v2040_v43, %s2851_s21 }
 0x392   :  { %2083 = vrot.lane.b32.xlu1 %v2039_v45, %s2851_s21 }
 0x393   :  { %v1686_v46 = vpop.permute.xlu0 %1685  ;;  %v1684_v47 = vpop.permute.xlu1 %1683 }
 0x394   :  { %1727 = vst.msk [vmem:[#allocation3 + $0x38] sm:$0xff] %vm1719_vm1, %v1686_v46  ;;  %1726 = vst.msk [vmem:[#allocation3 + $0x30] sm:$0xff] %vm1719_vm1, %v1684_v47 }
 0x395   :  { %1798 = vrot.lane.b32.xlu0 %v2040_v43, %s2849_s8 }
 0x396   :  { %1796 = vrot.lane.b32.xlu1 %v2039_v45, %s2849_s8 }
 0x397   :  { %v2070_v48 = vpop.permute.xlu0 %2069  ;;  %v2068_v49 = vpop.permute.xlu1 %2067 }
 0x398   :  { %2113 = vst.msk [vmem:[#allocation3 + $0x28] sm:$0xff] %vm2107_vm5, %v2070_v48  ;;  %2112 = vst.msk [vmem:[#allocation3 + $0x20] sm:$0xff] %vm2107_vm5, %v2068_v49 }
 0x399   :  { %2182 = vrot.lane.b32.xlu0 %v2137_v50, %s2852_s23 }
 0x39a   :  { %2180 = vrot.lane.b32.xlu1 %v2136_v51, %s2852_s23 }
 0x39b   :  { %v1878_v52 = vpop.permute.xlu0 %1877  ;;  %v1781_v53 = vpop.permute.xlu1 %1780 }
 0x39c   :  { %1823 = vst.msk [vmem:[#allocation3 + $0x30] sm:$0xff] %vm1816_vm2, %v1781_v53 }
 0x39d   :  { %1920 = vst.msk [vmem:[#allocation3 + $0x30] sm:$0xff] %vm1913_vm3, %v1878_v52  ;;  %1990 = vrot.lane.b32.xlu0 %v1944_v36, %s2850_s0 }
 0x39e   :  { %1893 = vrot.lane.b32.xlu1 %v2136_v51, %s2853_s3  ;;  %2017 = vst.msk [vmem:[#allocation3 + $0x30] sm:$0xff] %vm2010_vm4, %v3802_v23  ;;  %v2042_v23 = vld [vmem:[#allocation2 + $0x111] sm:$0xff] }
 0x39f   :  { %2114 = vst.msk [vmem:[#allocation3 + $0x30] sm:$0xff] %vm2107_vm5, %v3808_v37  ;;  %v1880_v55 = vpop.permute.xlu0 %1879  ;;  %v2165_v56 = vpop.permute.xlu1 %2164 }
 0x3a0   :  { %2211 = vst.msk [vmem:[#allocation3 + $0x30] sm:$0xff] %vm2204_vm6, %v3814_v21  ;;  %2209 = vst.msk [vmem:[#allocation3 + $0x20] sm:$0xff] %vm2204_vm6, %v2165_v56 }
 0x3a1   :  { %2087 = vrot.lane.b32.xlu0 %v2041_v54, %s2851_s21 }
 0x3a2   :  { %1895 = vrot.lane.b32.xlu1 %v2137_v50, %s2853_s3 }
 0x3a3   :  { %v1690_v60 = vpop.permute.xlu0 %1689  ;;  %v1783_v61 = vpop.permute.xlu1 %1782 }
 0x3a4   :  { %1729 = vst.msk [vmem:[#allocation3 + $0x48] sm:$0xff] %vm1719_vm1, %v1690_v60 }
 0x3a5   :  { %1824 = vst.msk [vmem:[#allocation3 + $0x38] sm:$0xff] %vm1816_vm2, %v1783_v61  ;;  %2184 = vrot.lane.b32.xlu0 %v2138_v58, %s2852_s23 }
 0x3a6   :  { %1921 = vst.msk [vmem:[#allocation3 + $0x38] sm:$0xff] %vm1913_vm3, %v1880_v55  ;;  %1992 = vrot.lane.b32.xlu1 %v1945_v39, %s2850_s0 }
 0x3a7   :  { %2018 = vst.msk [vmem:[#allocation3 + $0x38] sm:$0xff] %vm2010_vm4, %v3812_v29  ;;  %v1498_v37 = vpop.permute.xlu0 %1497  ;;  %v2167_v21 = vpop.permute.xlu1 %2166  ;;  %v2225_v62 = vld [vmem:[#allocation3 + $0x20] sm:$0xff] }
 0x3a8   :  { %2115 = vst.msk [vmem:[#allocation3 + $0x38] sm:$0xff] %vm2107_vm5, %v3821_v22  ;;  %2772 = vmatprep.mubr.msk.f32.mxu1 %vm2246_vm7, %v2225_v62 }
 0x3a9   :  { %2212 = vst.msk [vmem:[#allocation3 + $0x38] sm:$0xff] %vm2204_vm6, %v3823_v38  ;;  %2210 = vst.msk [vmem:[#allocation3 + $0x28] sm:$0xff] %vm2204_vm6, %v2167_v21  ;;  %v2227_v38 = vld [vmem:[#allocation3 + $0x30] sm:$0xff] }
 0x3aa   :  { %1536 = vst.msk [vmem:[#allocation3 + $0x50] sm:$0xff] %vm1525_vm14, %v1498_v37  ;;  %2089 = vrot.lane.b32.xlu1 %v2042_v23, %s2851_s21 }
 0x3ab   :  { %v1882_v29 = vpop.permute.xlu0 %1881  ;;  %v1688_v0 = vpop.permute.xlu1 %1687 }
 0x3ac   :  { %1728 = vst.msk [vmem:[#allocation3 + $0x40] sm:$0xff] %vm1719_vm1, %v1688_v0 }
 0x3ae   :  { %2186 = vrot.lane.b32.xlu1 %v2139_v63, %s2852_s23 }
 0x3af   :  { %v1500_v22 = vpop.permute.xlu0 %1499  ;;  %v1785_v6 = vpop.permute.xlu1 %1784 }
 0x3b0   :  { %v2226_v7 = vld [vmem:[#allocation3 + $0x28] sm:$0xff]  ;;  %1537 = vst.msk [vmem:[#allocation3 + $0x58] sm:$0xff] %vm1525_vm14, %v1500_v22  ;;  %v2228_v9 = vld [vmem:[#allocation3 + $0x38] sm:$0xff] }
 0x3b1   :  { %1825 = vst.msk [vmem:[#allocation3 + $0x40] sm:$0xff] %vm1816_vm2, %v1785_v6  ;;  %2773 = vmatmul.mubr.msk.f32.gmra.mrb[2].mxu1 %vm2246_vm7, %v2226_v7 }
 0x3b2   :  { %1922 = vst.msk [vmem:[#allocation3 + $0x40] sm:$0xff] %vm1913_vm3, %v1882_v29  ;;  %2775 = vmatprep.mubr.msk.f32.mxu1 %vm2246_vm7, %v2227_v38 }
 0x3b3   :  { %v1884_v4 = vpop.permute.xlu0 %1883  ;;  %v1787_v8 = vpop.permute.xlu1 %1786 }
 0x3b4   :  { %1826 = vst.msk [vmem:[#allocation3 + $0x48] sm:$0xff] %vm1816_vm2, %v1787_v8 }
 0x3b5   :  { %2776 = vmatmul.mubr.msk.f32.gmra.mrb[4].mxu1 %vm2246_vm7, %v2228_v9  ;;  %1923 = vst.msk [vmem:[#allocation3 + $0x48] sm:$0xff] %vm1913_vm3, %v1884_v4 }
 0x3b7   :  { %v1597_v10 = vpop.permute.xlu0 %1596  ;;  %v1595_v26 = vpop.permute.xlu1 %1594 }
 0x3b8   :  { %1634 = vst.msk [vmem:[#allocation3 + $0x58] sm:$0xff] %vm1622_vm15, %v1597_v10  ;;  %1633 = vst.msk [vmem:[#allocation3 + $0x50] sm:$0xff] %vm1622_vm15, %v1595_v26 }
 0x3bb   :  { %v1981_v27 = vpop.permute.xlu0 %1980  ;;  %v1979_v28 = vpop.permute.xlu1 %1978 }
 0x3bc   :  { %2020 = vst.msk [vmem:[#allocation3 + $0x48] sm:$0xff] %vm2010_vm4, %v1981_v27  ;;  %2019 = vst.msk [vmem:[#allocation3 + $0x40] sm:$0xff] %vm2010_vm4, %v1979_v28 }
 0x3bf   :  { %v1694_v31 = vpop.permute.xlu0 %1693  ;;  %v1692_v2 = vpop.permute.xlu1 %1691 }
 0x3c0   :  { %1731 = vst.msk [vmem:[#allocation3 + $0x58] sm:$0xff] %vm1719_vm1, %v1694_v31  ;;  %1730 = vst.msk [vmem:[#allocation3 + $0x50] sm:$0xff] %vm1719_vm1, %v1692_v2 }
 0x3c3   :  { %v2078_v32 = vpop.permute.xlu0 %2077  ;;  %v2076_v1 = vpop.permute.xlu1 %2075 }
 0x3c4   :  { %2117 = vst.msk [vmem:[#allocation3 + $0x48] sm:$0xff] %vm2107_vm5, %v2078_v32  ;;  %2116 = vst.msk [vmem:[#allocation3 + $0x40] sm:$0xff] %vm2107_vm5, %v2076_v1 }
 0x3c7   :  { %v1502_v33 = vpop.permute.xlu0 %1501  ;;  %v1789_v3 = vpop.permute.xlu1 %1788 }
 0x3c8   :  { %1538 = vst.msk [vmem:[#allocation3 + $0x60] sm:$0xff] %vm1525_vm14, %v1502_v33 }
 0x3c9   :  { %1827 = vst.msk [vmem:[#allocation3 + $0x50] sm:$0xff] %vm1816_vm2, %v1789_v3 }
 0x3cb   :  { %v1886_v20 = vpop.permute.xlu0 %1885  ;;  %v2173_v11 = vpop.permute.xlu1 %2172 }
 0x3cc   :  { %1924 = vst.msk [vmem:[#allocation3 + $0x50] sm:$0xff] %vm1913_vm3, %v1886_v20 }
 0x3cd   :  { %2213 = vst.msk [vmem:[#allocation3 + $0x40] sm:$0xff] %vm2204_vm6, %v2173_v11 }
 0x3cf   :  { %v1504_v42 = vpop.permute.xlu0 %1503  ;;  %v1791_v12 = vpop.permute.xlu1 %1790 }
 0x3d0   :  { %1539 = vst.msk [vmem:[#allocation3 + $0x68] sm:$0xff] %vm1525_vm14, %v1504_v42 }
 0x3d1   :  { %1828 = vst.msk [vmem:[#allocation3 + $0x58] sm:$0xff] %vm1816_vm2, %v1791_v12 }
 0x3d3   :  { %v1888_v13 = vpop.permute.xlu0 %1887  ;;  %v2175_v14 = vpop.permute.xlu1 %2174 }
 0x3d4   :  { %v2229_v18 = vld [vmem:[#allocation3 + $0x40] sm:$0xff]  ;;  %1925 = vst.msk [vmem:[#allocation3 + $0x58] sm:$0xff] %vm1913_vm3, %v1888_v13 }
 0x3d5   :  { %2214 = vst.msk [vmem:[#allocation3 + $0x48] sm:$0xff] %vm2204_vm6, %v2175_v14  ;;  %2778 = vmatprep.mubr.msk.f32.mxu1 %vm2246_vm7, %v2229_v18 }
 0x3d7   :  { %v1601_v15 = vpop.permute.xlu0 %1600  ;;  %v1599_v24 = vpop.permute.xlu1 %1598 }
 0x3d8   :  { %1636 = vst.msk [vmem:[#allocation3 + $0x68] sm:$0xff] %vm1622_vm15, %v1601_v15  ;;  %1635 = vst.msk [vmem:[#allocation3 + $0x60] sm:$0xff] %vm1622_vm15, %v1599_v24 }
 0x3db   :  { %v1985_v16 = vpop.permute.xlu0 %1984  ;;  %v1983_v17 = vpop.permute.xlu1 %1982 }
 0x3dc   :  { %v2230_v30 = vld [vmem:[#allocation3 + $0x48] sm:$0xff]  ;;  %2022 = vst.msk [vmem:[#allocation3 + $0x58] sm:$0xff] %vm2010_vm4, %v1985_v16  ;;  %2021 = vst.msk [vmem:[#allocation3 + $0x50] sm:$0xff] %vm2010_vm4, %v1983_v17 }
 0x3dd   :  { %2779 = vmatmul.mubr.msk.f32.gmra.mrb[6].mxu1 %vm2246_vm7, %v2230_v30 }
 0x3df   :  { %v1698_v44 = vpop.permute.xlu0 %1697  ;;  %v1696_v19 = vpop.permute.xlu1 %1695 }
 0x3e0   :  { %1733 = vst.msk [vmem:[#allocation3 + $0x68] sm:$0xff] %vm1719_vm1, %v1698_v44  ;;  %1732 = vst.msk [vmem:[#allocation3 + $0x60] sm:$0xff] %vm1719_vm1, %v1696_v19 }
 0x3e3   :  { %v2082_v35 = vpop.permute.xlu0 %2081  ;;  %v2080_v25 = vpop.permute.xlu1 %2079 }
 0x3e4   :  { %2119 = vst.msk [vmem:[#allocation3 + $0x58] sm:$0xff] %vm2107_vm5, %v2082_v35  ;;  %2118 = vst.msk [vmem:[#allocation3 + $0x50] sm:$0xff] %vm2107_vm5, %v2080_v25 }
 0x3e7   :  { %v1506_v34 = vpop.permute.xlu0 %1505  ;;  %v1793_v5 = vpop.permute.xlu1 %1792 }
 0x3e8   :  { %1540 = vst.msk [vmem:[#allocation3 + $0x70] sm:$0xff] %vm1525_vm14, %v1506_v34 }
 0x3e9   :  { %1829 = vst.msk [vmem:[#allocation3 + $0x60] sm:$0xff] %vm1816_vm2, %v1793_v5 }
 0x3eb   :  { %v1890_v40 = vpop.permute.xlu0 %1889  ;;  %v2177_v41 = vpop.permute.xlu1 %2176 }
 0x3ec   :  { %1926 = vst.msk [vmem:[#allocation3 + $0x60] sm:$0xff] %vm1913_vm3, %v1890_v40 }
 0x3ed   :  { %2215 = vst.msk [vmem:[#allocation3 + $0x50] sm:$0xff] %vm2204_vm6, %v2177_v41 }
 0x3ef   :  { %v1508_v43 = vpop.permute.xlu0 %1507  ;;  %v1795_v45 = vpop.permute.xlu1 %1794 }
 0x3f0   :  { %1541 = vst.msk [vmem:[#allocation3 + $0x78] sm:$0xff] %vm1525_vm14, %v1508_v43 }
 0x3f1   :  { %1830 = vst.msk [vmem:[#allocation3 + $0x68] sm:$0xff] %vm1816_vm2, %v1795_v45 }
 0x3f3   :  { %v1892_v46 = vpop.permute.xlu0 %1891 }
 0x3f4   :  { %v2179_v47 = vpop.permute.xlu1 %2178  ;;  %v2231_v48 = vld [vmem:[#allocation3 + $0x50] sm:$0xff]  ;;  %1927 = vst.msk [vmem:[#allocation3 + $0x68] sm:$0xff] %vm1913_vm3, %v1892_v46 }
 0x3f5   :  { %2216 = vst.msk [vmem:[#allocation3 + $0x58] sm:$0xff] %vm2204_vm6, %v2179_v47  ;;  %2781 = vmatprep.mubr.msk.f32.mxu1 %vm2246_vm7, %v2231_v48 }
 0x3f7   :  { %v1605_v49 = vpop.permute.xlu0 %1604 }
 0x3f8   :  { %v1603_v50 = vpop.permute.xlu1 %1602  ;;  %1638 = vst.msk [vmem:[#allocation3 + $0x78] sm:$0xff] %vm1622_vm15, %v1605_v49 }
 0x3f9   :  { %1637 = vst.msk [vmem:[#allocation3 + $0x70] sm:$0xff] %vm1622_vm15, %v1603_v50 }
 0x3fb   :  { %v1989_v51 = vpop.permute.xlu0 %1988 }
 0x3fc   :  { %v1987_v36 = vpop.permute.xlu1 %1986  ;;  %v2232_v52 = vld [vmem:[#allocation3 + $0x58] sm:$0xff]  ;;  %2024 = vst.msk [vmem:[#allocation3 + $0x68] sm:$0xff] %vm2010_vm4, %v1989_v51 }
 0x3fd   :  { %2023 = vst.msk [vmem:[#allocation3 + $0x60] sm:$0xff] %vm2010_vm4, %v1987_v36  ;;  %2782 = vmatmul.mubr.msk.f32.gmra.mrb[8].mxu1 %vm2246_vm7, %v2232_v52 }
 0x3ff   :  { %v1702_v53 = vpop.permute.xlu0 %1701 }
 0x400   :  { %v1700_v54 = vpop.permute.xlu1 %1699  ;;  %1735 = vst.msk [vmem:[#allocation3 + $0x78] sm:$0xff] %vm1719_vm1, %v1702_v53 }
 0x401   :  { %1734 = vst.msk [vmem:[#allocation3 + $0x70] sm:$0xff] %vm1719_vm1, %v1700_v54 }
 0x403   :  { %v2086_v55 = vpop.permute.xlu0 %2085 }
 0x404   :  { %v2084_v56 = vpop.permute.xlu1 %2083  ;;  %2121 = vst.msk [vmem:[#allocation3 + $0x68] sm:$0xff] %vm2107_vm5, %v2086_v55 }
 0x405   :  { %2120 = vst.msk [vmem:[#allocation3 + $0x60] sm:$0xff] %vm2107_vm5, %v2084_v56 }
 0x407   :  { %v1799_v39 = vpop.permute.xlu0 %1798 }
 0x408   :  { %v1797_v58 = vpop.permute.xlu1 %1796  ;;  %1832 = vst.msk [vmem:[#allocation3 + $0x78] sm:$0xff] %vm1816_vm2, %v1799_v39 }
 0x409   :  { %1831 = vst.msk [vmem:[#allocation3 + $0x70] sm:$0xff] %vm1816_vm2, %v1797_v58 }
 0x40b   :  { %v2183_v60 = vpop.permute.xlu0 %2182 }
 0x40c   :  { %v2181_v61 = vpop.permute.xlu1 %2180  ;;  %2218 = vst.msk [vmem:[#allocation3 + $0x68] sm:$0xff] %vm2204_vm6, %v2183_v60 }
 0x40d   :  { %2217 = vst.msk [vmem:[#allocation3 + $0x60] sm:$0xff] %vm2204_vm6, %v2181_v61 }
 0x40f   :  { %v1991_v37 = vpop.permute.xlu0 %1990 }
 0x410   :  { %v1894_v23 = vpop.permute.xlu1 %1893 }
 0x411   :  { %1928 = vst.msk [vmem:[#allocation3 + $0x70] sm:$0xff] %vm1913_vm3, %v1894_v23 }
 0x412   :  { %2025 = vst.msk [vmem:[#allocation3 + $0x70] sm:$0xff] %vm2010_vm4, %v1991_v37 }
 0x413   :  { %v2234_v63 = vld [vmem:[#allocation3 + $0x68] sm:$0xff]  ;;  %v2088_v29 = vpop.permute.xlu0 %2087 }
 0x414   :  { %v1896_v21 = vpop.permute.xlu1 %1895  ;;  %v2233_v62 = vld [vmem:[#allocation3 + $0x60] sm:$0xff]  ;;  %2122 = vst.msk [vmem:[#allocation3 + $0x70] sm:$0xff] %vm2107_vm5, %v2088_v29 }
 0x415   :  { %1929 = vst.msk [vmem:[#allocation3 + $0x78] sm:$0xff] %vm1913_vm3, %v1896_v21  ;;  %2784 = vmatprep.mubr.msk.f32.mxu1 %vm2246_vm7, %v2233_v62 }
 0x416   :  { %2785 = vmatmul.mubr.msk.f32.gmra.mrb[10].mxu1 %vm2246_vm7, %v2234_v63 }
 0x417   :  { %v2185_v22 = vpop.permute.xlu0 %2184 }
 0x418   :  { %v1993_v0 = vpop.permute.xlu1 %1992  ;;  %2219 = vst.msk [vmem:[#allocation3 + $0x70] sm:$0xff] %vm2204_vm6, %v2185_v22 }
 0x419   :  { %2026 = vst.msk [vmem:[#allocation3 + $0x78] sm:$0xff] %vm2010_vm4, %v1993_v0 }
 0x41c   :  { %v2090_v6 = vpop.permute.xlu1 %2089 }
 0x41d   :  { %2123 = vst.msk [vmem:[#allocation3 + $0x78] sm:$0xff] %vm2107_vm5, %v2090_v6 }
 0x41f   :  { %v2235_v38 = vld [vmem:[#allocation3 + $0x70] sm:$0xff] }
 0x420   :  { %v2187_v7 = vpop.permute.xlu1 %2186  ;;  %2787 = vmatprep.mubr.msk.f32.mxu1 %vm2246_vm7, %v2235_v38 }
 0x421   :  { %2220 = vst.msk [vmem:[#allocation3 + $0x78] sm:$0xff] %vm2204_vm6, %v2187_v7 }
 0x428   :  { %v2236_v4 = vld [vmem:[#allocation3 + $0x78] sm:$0xff] }
 0x429   :  { %2788 = vmatmul.mubr.msk.f32.gmra.mrb[12].mxu1 %vm2246_vm7, %v2236_v4 }
 0x454   :  { %v2768_v8 = vpop.f32.mrb[16].mxu0 }
 0x455   :  { %v2441_v9 = vsel %vm138_vm0, %v2768_v8, 0.0  ;;  %v2361_v10 = vpop.f32.mrb[17].mxu0 }
 0x456   :  { %v2440_v26 = vsel %vm138_vm0, %v2361_v10, 0.0 }
 0x457   :  { %v2442_v27 = vadd.f32 %v2441_v9, %v2440_v26 }
 0x464   :  { %v2771_v28 = vpop.f32.mrb[0].mxu1 }
 0x465   :  { %v2371_v31 = vpop.f32.mrb[1].mxu1  ;;  %v2445_v1 = vsel %vm138_vm0, %v2771_v28, 0.0 }
 0x466   :  { %v2443_v2 = vsel %vm138_vm0, %v2371_v31, 0.0 }
 0x467   :  { %v2444_v32 = vadd.f32 %v2443_v2, %v2442_v27 }
 0x469   :  { %v2446_v33 = vadd.f32 %v2445_v1, %v2444_v32 }
 0x484   :  { %v2774_v3 = vpop.f32.mrb[2].mxu1 }
 0x485   :  { %v2381_v20 = vpop.f32.mrb[3].mxu1  ;;  %v2449_v12 = vsel %vm138_vm0, %v2774_v3, 0.0 }
 0x486   :  { %v2447_v11 = vsel %vm138_vm0, %v2381_v20, 0.0 }
 0x487   :  { %v2448_v42 = vadd.f32 %v2447_v11, %v2446_v33 }
 0x488   :  { %v2777_v13 = vpop.f32.mrb[4].mxu1 }
 0x489   :  { %v2391_v14 = vpop.f32.mrb[5].mxu1  ;;  %v2450_v18 = vadd.f32 %v2449_v12, %v2448_v42  ;;  %v2453_v16 = vsel %vm138_vm0, %v2777_v13, 0.0 }
 0x48a   :  { %v2451_v15 = vsel %vm138_vm0, %v2391_v14, 0.0 }
 0x48b   :  { %v2452_v24 = vadd.f32 %v2451_v15, %v2450_v18 }
 0x48d   :  { %v2454_v17 = vadd.f32 %v2453_v16, %v2452_v24 }
 0x4b0   :  { %v2780_v30 = vpop.f32.mrb[6].mxu1 }
 0x4b1   :  { %v2401_v44 = vpop.f32.mrb[7].mxu1  ;;  %v2457_v25 = vsel %vm138_vm0, %v2780_v30, 0.0 }
 0x4b2   :  { %v2455_v19 = vsel %vm138_vm0, %v2401_v44, 0.0 }
 0x4b3   :  { %v2456_v35 = vadd.f32 %v2455_v19, %v2454_v17 }
 0x4b5   :  { %v2458_v34 = vadd.f32 %v2457_v25, %v2456_v35 }
 0x4d0   :  { %v2783_v5 = vpop.f32.mrb[8].mxu1 }
 0x4d1   :  { %v2411_v40 = vpop.f32.mrb[9].mxu1  ;;  %v2461_v45 = vsel %vm138_vm0, %v2783_v5, 0.0 }
 0x4d2   :  { %v2459_v41 = vsel %vm138_vm0, %v2411_v40, 0.0 }
 0x4d3   :  { %v2460_v43 = vadd.f32 %v2459_v41, %v2458_v34 }
 0x4d5   :  { %v2462_v46 = vadd.f32 %v2461_v45, %v2460_v43 }
 0x4e9   :  { %v2786_v47 = vpop.f32.mrb[10].mxu1 }
 0x4ea   :  { %v2421_v48 = vpop.f32.mrb[11].mxu1  ;;  %v2465_v51 = vsel %vm138_vm0, %v2786_v47, 0.0 }
 0x4eb   :  { %v2463_v49 = vsel %vm138_vm0, %v2421_v48, 0.0 }
 0x4ec   :  { %v2464_v50 = vadd.f32 %v2463_v49, %v2462_v46 }
 0x4ee   :  { %v2466_v36 = vadd.f32 %v2465_v51, %v2464_v50 }
 0x4fc   :  { %v2789_v52 = vpop.f32.mrb[12].mxu1 }
 0x4fd   :  { %v2431_v53 = vpop.f32.mrb[13].mxu1  ;;  %v2469_v56 = vsel %vm138_vm0, %v2789_v52, 0.0 }
 0x4fe   :  { %v2467_v54 = vsel %vm138_vm0, %v2431_v53, 0.0 }
 0x4ff   :  { %v2468_v55 = vadd.f32 %v2467_v54, %v2466_v36 }
 0x501   :  { %v2470_v39 = vadd.f32 %v2469_v56, %v2468_v55 }
 0x503   :  { %v2471_v58 = vrot.slane %v2470_v39, 4 }
 0x505   :  { %v2472_v60 = vadd.f32 %v2471_v58, %v2470_v39 }
 0x507   :  { %v2473_v61 = vrot.slane %v2472_v60, 2 }
 0x509   :  { %v2474_v23 = vadd.f32 %v2473_v61, %v2472_v60 }
 0x50b   :  { %v2475_v37 = vrot.slane %v2474_v23, 1 }
 0x50d   :  { %v2476_v21 = vadd.f32 %v2475_v37, %v2474_v23 }
 0x50f   :  { %v2477_v62 = vmul.f32 0.0078125, %v2476_v21 }
 0x511   :  { %v4050_v63 = vsub.f32 %v2361_v10, %v2477_v62  ;;  %v4052_v29 = vsub.f32 %v2768_v8, %v2477_v62  ;;  %v4054_v0 = vsub.f32 %v2371_v31, %v2477_v62  ;;  %v4056_v22 = vsub.f32 %v2771_v28, %v2477_v62 }
 0x512   :  { %v4058_v6 = vsub.f32 %v2381_v20, %v2477_v62  ;;  %v4060_v7 = vsub.f32 %v2774_v3, %v2477_v62  ;;  %v4062_v38 = vsub.f32 %v2391_v14, %v2477_v62  ;;  %v4064_v4 = vsub.f32 %v2777_v13, %v2477_v62 }
 0x513   :  { %v4066_v9 = vsub.f32 %v2401_v44, %v2477_v62  ;;  %v4068_v26 = vsub.f32 %v2780_v30, %v2477_v62  ;;  %v4070_v10 = vsub.f32 %v2411_v40, %v2477_v62  ;;  %v4072_v8 = vsub.f32 %v2783_v5, %v2477_v62 }
 0x514   :  { %v4074_v27 = vsub.f32 %v2421_v48, %v2477_v62  ;;  %v4076_v28 = vsub.f32 %v2786_v47, %v2477_v62  ;;  %v4078_v31 = vsub.f32 %v2431_v53, %v2477_v62  ;;  %v4080_v2 = vsub.f32 %v2789_v52, %v2477_v62 }
 0x515   :  { %v2494_v32 = vmul.f32 %v4050_v63, %v4050_v63  ;;  %v2495_v1 = vmul.f32 %v4052_v29, %v4052_v29  ;;  %v2496_v33 = vmul.f32 %v4054_v0, %v4054_v0  ;;  %v2497_v3 = vmul.f32 %v4056_v22, %v4056_v22 }
 0x516   :  { %v2498_v12 = vmul.f32 %v4058_v6, %v4058_v6  ;;  %v2499_v18 = vmul.f32 %v4060_v7, %v4060_v7  ;;  %v2500_v16 = vmul.f32 %v4062_v38, %v4062_v38  ;;  %v2501_v44 = vmul.f32 %v4064_v4, %v4064_v4 }
 0x517   :  { %v2510_v20 = vsel %vm138_vm0, %v2494_v32, 0.0  ;;  %v2511_v11 = vsel %vm138_vm0, %v2495_v1, 0.0  ;;  %v2513_v13 = vsel %vm138_vm0, %v2496_v33, 0.0  ;;  %v2515_v15 = vsel %vm138_vm0, %v2497_v3, 0.0 }
 0x518   :  { %v2512_v42 = vadd.f32 %v2511_v11, %v2510_v20  ;;  %v2517_v17 = vsel %vm138_vm0, %v2498_v12, 0.0  ;;  %v2519_v19 = vsel %vm138_vm0, %v2499_v18, 0.0  ;;  %v2502_v25 = vmul.f32 %v4066_v9, %v4066_v9 }
 0x519   :  { %v2521_v34 = vsel %vm138_vm0, %v2500_v16, 0.0  ;;  %v2503_v40 = vmul.f32 %v4068_v26, %v4068_v26  ;;  %v2523_v41 = vsel %vm138_vm0, %v2501_v44, 0.0  ;;  %v2504_v45 = vmul.f32 %v4070_v10, %v4070_v10 }
 0x51a   :  { %v2514_v14 = vadd.f32 %v2513_v13, %v2512_v42  ;;  %v2525_v46 = vsel %vm138_vm0, %v2502_v25, 0.0  ;;  %v2505_v48 = vmul.f32 %v4072_v8, %v4072_v8  ;;  %v2506_v51 = vmul.f32 %v4074_v27, %v4074_v27 }
 0x51b   :  { %v2527_v49 = vsel %vm138_vm0, %v2503_v40, 0.0  ;;  %v2529_v36 = vsel %vm138_vm0, %v2504_v45, 0.0  ;;  %v2507_v53 = vmul.f32 %v4076_v28, %v4076_v28  ;;  %v2508_v56 = vmul.f32 %v4078_v31, %v4078_v31 }
 0x51c   :  { %v2516_v24 = vadd.f32 %v2515_v15, %v2514_v14  ;;  %v2531_v54 = vsel %vm138_vm0, %v2505_v48, 0.0  ;;  %v2533_v39 = vsel %vm138_vm0, %v2506_v51, 0.0  ;;  %v2509_v60 = vmul.f32 %v4080_v2, %v4080_v2  ;;  %v2548_v14 = vld [vmem:[%s4223_s5] sm:$0x1] }
 0x51d   :  { %v2535_v61 = vsel %vm138_vm0, %v2507_v53, 0.0  ;;  %v2537_v37 = vsel %vm138_vm0, %v2508_v56, 0.0 }
 0x51e   :  { %v2518_v30 = vadd.f32 %v2517_v17, %v2516_v24  ;;  %v2539_v62 = vsel %vm138_vm0, %v2509_v60, 0.0 }
 0x520   :  { %v2520_v35 = vadd.f32 %v2519_v19, %v2518_v30 }
 0x522   :  { %v2522_v5 = vadd.f32 %v2521_v34, %v2520_v35 }
 0x524   :  { %v2524_v43 = vadd.f32 %v2523_v41, %v2522_v5 }
 0x526   :  { %v2526_v47 = vadd.f32 %v2525_v46, %v2524_v43 }
 0x528   :  { %v2528_v50 = vadd.f32 %v2527_v49, %v2526_v47 }
 0x52a   :  { %v2530_v52 = vadd.f32 %v2529_v36, %v2528_v50 }
 0x52c   :  { %v2532_v55 = vadd.f32 %v2531_v54, %v2530_v52 }
 0x52e   :  { %v2534_v58 = vadd.f32 %v2533_v39, %v2532_v55 }
 0x530   :  { %v2536_v23 = vadd.f32 %v2535_v61, %v2534_v58 }
 0x532   :  { %v2538_v21 = vadd.f32 %v2537_v37, %v2536_v23 }
 0x534   :  { %v2540_v32 = vadd.f32 %v2539_v62, %v2538_v21 }
 0x536   :  { %v2541_v1 = vrot.slane %v2540_v32, 4 }
 0x538   :  { %v2542_v33 = vadd.f32 %v2541_v1, %v2540_v32 }
 0x53a   :  { %v2543_v3 = vrot.slane %v2542_v33, 2 }
 0x53c   :  { %v2544_v20 = vadd.f32 %v2543_v3, %v2542_v33 }
 0x53e   :  { %v2545_v11 = vrot.slane %v2544_v20, 1 }
 0x540   :  { %v2546_v42 = vadd.f32 %v2545_v11, %v2544_v20 }
 0x542   :  { %v2547_v12 = vmul.f32 0.0078125, %v2546_v42 }
 0x544   :  { %v2549_v13 = vadd.f32 1e-05, %v2547_v12 }
 0x546   :  { %2839 = vrsqrt.f32 %v2549_v13 }
 0x550   :  { %v2840_v18 = vpop.eup %2839 }
 0x551   :  { %v2551_v15 = vmul.f32 %v2840_v18, %v2548_v14 }
 0x553   :  { %v2556_v24 = vrot.slane %v2551_v15, %v1339_v59 }
 0x555   :  { %v2558_v16 = vmul.f32 %v2556_v24, %v4050_v63  ;;  %v2559_v17 = vmul.f32 %v2556_v24, %v4052_v29  ;;  %v2560_v30 = vmul.f32 %v2556_v24, %v4054_v0  ;;  %v2561_v44 = vmul.f32 %v2556_v24, %v4056_v22 }
 0x556   :  { %v2562_v19 = vmul.f32 %v2556_v24, %v4058_v6  ;;  %v2563_v35 = vmul.f32 %v2556_v24, %v4060_v7  ;;  %v2564_v25 = vmul.f32 %v2556_v24, %v4062_v38  ;;  %v2565_v34 = vmul.f32 %v2556_v24, %v4064_v4 }
 0x557   :  { %v2566_v59 = vmul.f32 %v2556_v24, %v4066_v9  ;;  %v2567_v63 = vmul.f32 %v2556_v24, %v4068_v26  ;;  %v2568_v29 = vmul.f32 %v2556_v24, %v4070_v10  ;;  %v2569_v0 = vmul.f32 %v2556_v24, %v4072_v8 }
 0x558   :  { %v2570_v22 = vmul.f32 %v2556_v24, %v4074_v27  ;;  %v2571_v6 = vmul.f32 %v2556_v24, %v4076_v28  ;;  %v2572_v7 = vmul.f32 %v2556_v24, %v4078_v31  ;;  %v2573_v38 = vmul.f32 %v2556_v24, %v4080_v2 }
 0x559   :  { %v2581_v4 = vadd.f32 %v2667_v57, %v2558_v16  ;;  %v2582_v5 = vadd.f32 %v2667_v57, %v2559_v17  ;;  %v2583_v40 = vadd.f32 %v2667_v57, %v2560_v30  ;;  %v2584_v41 = vadd.f32 %v2667_v57, %v2561_v44 }
 0x55a   :  { %v2585_v43 = vadd.f32 %v2667_v57, %v2562_v19  ;;  %v2586_v9 = vadd.f32 %v2667_v57, %v2563_v35  ;;  %v2587_v45 = vadd.f32 %v2667_v57, %v2564_v25  ;;  %v2588_v26 = vadd.f32 %v2667_v57, %v2565_v34 }
 0x55b   :  { %v2589_v46 = vadd.f32 %v2667_v57, %v2566_v59  ;;  %v2590_v10 = vadd.f32 %v2667_v57, %v2567_v63  ;;  %v2591_v47 = vadd.f32 %v2667_v57, %v2568_v29  ;;  %v2592_v8 = vadd.f32 %v2667_v57, %v2569_v0 }
 0x55c   :  { %v2593_v48 = vadd.f32 %v2667_v57, %v2570_v22  ;;  %v2594_v27 = vadd.f32 %v2667_v57, %v2571_v6  ;;  %v2595_v49 = vadd.f32 %v2667_v57, %v2572_v7  ;;  %v2596_v28 = vadd.f32 %v2667_v57, %v2573_v38 }
 0x55d   :  { %v2597_v50 = vmax.f32 %v2581_v4, 0.0  ;;  %v2598_v31 = vmax.f32 %v2582_v5, 0.0  ;;  %v2599_v51 = vmax.f32 %v2583_v40, 0.0  ;;  %v2600_v2 = vmax.f32 %v2584_v41, 0.0 }
 0x55e   :  { %v2601_v36 = vmax.f32 %v2585_v43, 0.0  ;;  %v2602_v52 = vmax.f32 %v2586_v9, 0.0  ;;  %v2603_v53 = vmax.f32 %v2587_v45, 0.0  ;;  %v2604_v54 = vmax.f32 %v2588_v26, 0.0 }
 0x55f   :  { %v2605_v55 = vmax.f32 %v2589_v46, 0.0  ;;  %v2606_v56 = vmax.f32 %v2590_v10, 0.0  ;;  %v2607_v39 = vmax.f32 %v2591_v47, 0.0  ;;  %v2608_v58 = vmax.f32 %v2592_v8, 0.0  ;;  %2613 = vst.msk [vmem:[%s4225_s7] sm:$0xff] %vm138_vm0, %v2597_v50  ;;  %2614 = vst.msk [vmem:[%s4225_s7 + $0x8] sm:$0xff] %vm138_vm0, %v2598_v31 }
 0x560   :  { %2615 = vst.msk [vmem:[%s4225_s7 + $0x10] sm:$0xff] %vm138_vm0, %v2599_v51  ;;  %2616 = vst.msk [vmem:[%s4225_s7 + $0x18] sm:$0xff] %vm138_vm0, %v2600_v2  ;;  %v2609_v60 = vmax.f32 %v2593_v48, 0.0  ;;  %v2610_v61 = vmax.f32 %v2594_v27, 0.0  ;;  %v2611_v23 = vmax.f32 %v2595_v49, 0.0  ;;  %v2612_v37 = vmax.f32 %v2596_v28, 0.0 }
 0x561   :  { %2617 = vst.msk [vmem:[%s4225_s7 + $0x20] sm:$0xff] %vm138_vm0, %v2601_v36  ;;  %2618 = vst.msk [vmem:[%s4225_s7 + $0x28] sm:$0xff] %vm138_vm0, %v2602_v52 }
 0x562   :  { %2619 = vst.msk [vmem:[%s4225_s7 + $0x30] sm:$0xff] %vm138_vm0, %v2603_v53  ;;  %2620 = vst.msk [vmem:[%s4225_s7 + $0x38] sm:$0xff] %vm138_vm0, %v2604_v54 }
 0x563   :  { %2621 = vst.msk [vmem:[%s4225_s7 + $0x40] sm:$0xff] %vm138_vm0, %v2605_v55  ;;  %2622 = vst.msk [vmem:[%s4225_s7 + $0x48] sm:$0xff] %vm138_vm0, %v2606_v56 }
 0x564   :  { %2623 = vst.msk [vmem:[%s4225_s7 + $0x50] sm:$0xff] %vm138_vm0, %v2607_v39  ;;  %2624 = vst.msk [vmem:[%s4225_s7 + $0x58] sm:$0xff] %vm138_vm0, %v2608_v58 }
 0x565   :  { %2625 = vst.msk [vmem:[%s4225_s7 + $0x60] sm:$0xff] %vm138_vm0, %v2609_v60  ;;  %2626 = vst.msk [vmem:[%s4225_s7 + $0x68] sm:$0xff] %vm138_vm0, %v2610_v61 }
 0x566   :  { %2627 = vst.msk [vmem:[%s4225_s7 + $0x70] sm:$0xff] %vm138_vm0, %v2611_v23  ;;  %2628 = vst.msk [vmem:[%s4225_s7 + $0x78] sm:$0xff] %vm138_vm0, %v2612_v37 }

</bundles_post_ra>
